<compile_context>
chip_gen: v6e
topology: v6e:2x2x1
jax: 0.10.0
libtpu: 0.0.40
codegen_flags: <defaults>
</compile_context>

<pallas_src>
import functools

import jax
import jax.numpy as jnp
from jax import lax
from jax.experimental import pallas as pl
from jax.experimental.pallas import tpu as pltpu


def _round_up(v, m):
    return ((v + m - 1) // m) * m


def _pick_vmem_limit_bytes():
    # ~half of physical VMEM: 64 MiB on v5e/v6e (128 MiB), 32 MiB on v7x (64 MiB per TC).
    try:
        cap = int(pltpu.get_tpu_info().vmem_capacity_bytes)
    except Exception:
        cap = 64 * 1024 * 1024
    return max(32 * 1024 * 1024, min(cap // 2, 96 * 1024 * 1024))


def cnn_classifier_kernel(x_ref, wconv_ref, bconv_ref, wfc_ref, bfc_ref, o_ref,
                          *, l_chunk, true_len):
    bt, L_pad = x_ref.shape
    C = wconv_ref.shape[1]
    n_chunks = L_pad // l_chunk

    # Per-tap weights with the channel axis on sublanes, hoisted out of the chunk loop.
    w = wconv_ref[...]                        # (3, C)
    w_l = w[0:1, :][:, :, None]               # (1, C, 1)  tap for x[l-1]
    w_c = w[1:2, :][:, :, None]               # (1, C, 1)  tap for x[l]
    w_r = w[2:3, :][:, :, None]               # (1, C, 1)  tap for x[l+1]

    zero_col = jnp.zeros((bt, 1), jnp.float32)

    # Lane-shaped running max of the raw conv response (bias/ReLU applied after the loop).
    pooled_lane = jnp.full((bt, C, 128), -jnp.inf, dtype=jnp.float32)

    # TODO(synk): for very long sequences move this loop onto a second ("arbitrary") grid axis
    # with the running max kept in a VMEM scratch accumulator (pl.when init/finalize).
    for ci in range(n_chunks):
        c0 = ci * l_chunk
        c1 = c0 + l_chunk
        x_c = x_ref[:, c0:c1]                                            # (bt, lc)
        x_l = (jnp.concatenate([zero_col, x_ref[:, :c1 - 1]], axis=1) if ci == 0
               else x_ref[:, c0 - 1:c1 - 1])
        x_r = (jnp.concatenate([x_ref[:, c0 + 1:c1], zero_col], axis=1)
               if ci == n_chunks - 1 else x_ref[:, c0 + 1:c1 + 1])

        # 3-tap conv on the VPU: (bt, 1, lc) * (1, C, 1) -> (bt, C, lc); positions stay on lanes.
        z = (x_l[:, None, :] * w_l + x_c[:, None, :] * w_c + x_r[:, None, :] * w_r)

        if c1 > true_len:  # static: only the last chunk carries length padding
            col = lax.broadcasted_iota(jnp.int32, (1, 1, l_chunk), 2) + c0
            z = jnp.where(col < true_len, z, -jnp.inf)

        # Fold 128-wide lane groups with elementwise maxima (layout-preserving slices).
        for g in range(l_chunk // 128):
            pooled_lane = jnp.maximum(pooled_lane, z[:, :, g * 128:(g + 1) * 128])

    max_z = jnp.max(pooled_lane, axis=-1)                    # (bt, C): single XLU reduce
    pooled = jnp.maximum(max_z + bconv_ref[...], 0.0)        # hoisted bias + ReLU, lane-dense C
    out = jnp.dot(pooled, wfc_ref[...],
                  preferred_element_type=jnp.float32) + bfc_ref[...]
    o_ref[...] = out.astype(o_ref.dtype)


def cnn_classifier_forward(x, w_conv, b_conv, w_fc, b_fc, *, b_tile=None, l_chunk=512):
    """x: (B, input_dim) f32. Returns (B, output_dim) f32."""
    x = x.astype(jnp.float32)
    B, L = x.shape
    C = w_conv.shape[0]
    out_dim = w_fc.shape[0]

    C_pad = _round_up(C, 128)
    out_pad = _round_up(out_dim, 128)
    l_chunk = max(128, min(_round_up(l_chunk, 128), _round_up(L, 128)))
    L_pad = _round_up(L, l_chunk)

    vmem_limit = _pick_vmem_limit_bytes()

    if b_tile is None:
        # Budget-driven batch tile (64-256 rows when VMEM permits, 8-row aligned).
        budget = max(4 * 1024 * 1024, vmem_limit // 3)
        per_row = (2 * L_pad * 4             # double-buffered input block
                   + l_chunk * C_pad * 4     # per-chunk conv response
                   + 3 * l_chunk * 4         # shifted tap slices
                   + 128 * C_pad * 4)        # lane-shaped running max
        b_tile = max(8, min(256, int(budget // per_row) // 8 * 8))
    else:
        b_tile = max(8, _round_up(b_tile, 8))
    b_tile = min(b_tile, _round_up(B, 8))
    # Keep >= 2 batch tiles when the batch allows it so "parallel" can use both v7x cores.
    if _round_up(B, 8) >= 16 and b_tile >= _round_up(B, 8):
        b_tile = _round_up(_round_up(B, 8) // 2, 8)
    B_pad = _round_up(B, b_tile)

    x_p = jnp.pad(x, ((0, B_pad - B), (0, L_pad - L)))

    # Conv weight (C,1,3) -> (3, C_pad): row k holds the tap-k weights for every channel.
    w_conv2 = jnp.zeros((3, C_pad), jnp.float32).at[:, :C].set(
        w_conv.reshape(C, 3).T.astype(jnp.float32))
    b_conv2 = jnp.zeros((1, C_pad), jnp.float32).at[:, :C].set(
        b_conv.reshape(1, C).astype(jnp.float32))
    w_fc_p = jnp.zeros((C_pad, out_pad), jnp.float32).at[:C, :out_dim].set(
        w_fc.T.astype(jnp.float32))
    b_fc_p = jnp.zeros((1, out_pad), jnp.float32).at[:, :out_dim].set(
        b_fc.reshape(1, -1).astype(jnp.float32))

    kernel = functools.partial(cnn_classifier_kernel, l_chunk=l_chunk, true_len=L)

    out = pl.pallas_call(
        kernel,
        out_shape=jax.ShapeDtypeStruct((B_pad, out_pad), jnp.float32),
        grid_spec=pltpu.PrefetchScalarGridSpec(
            num_scalar_prefetch=0,
            grid=(B_pad // b_tile,),
            in_specs=[
                pl.BlockSpec((b_tile, L_pad), lambda i: (i, 0)),    # x: tiled over batch
                pl.BlockSpec((3, C_pad), lambda i: (0, 0)),         # conv weight (resident)
                pl.BlockSpec((1, C_pad), lambda i: (0, 0)),         # conv bias
                pl.BlockSpec((C_pad, out_pad), lambda i: (0, 0)),   # fc weight (T, padded)
                pl.BlockSpec((1, out_pad), lambda i: (0, 0)),       # fc bias (padded)
            ],
            out_specs=pl.BlockSpec((b_tile, out_pad), lambda i: (i, 0)),
        ),
        compiler_params=pltpu.CompilerParams(
            dimension_semantics=("parallel",),     # shard batch tiles over v7x TCs
            vmem_limit_bytes=vmem_limit,
        ),
    )(x_p, w_conv2, b_conv2, w_fc_p, b_fc_p)

    return out[:B, :out_dim]


def _reference_forward(x, w_conv, b_conv, w_fc, b_fc):
    """Pure-JAX reference matching torch semantics (f32, highest-precision FC)."""
    B, L = x.shape
    C = w_conv.shape[0]
    xpad = jnp.pad(x, ((0, 0), (1, 1)))
    w = w_conv.reshape(C, 3)
    y = (xpad[:, None, 0:L] * w[None, :, 0:1]
         + xpad[:, None, 1:L + 1] * w[None, :, 1:2]
         + xpad[:, None, 2:L + 2] * w[None, :, 2:3]
         + b_conv[None, :, None])
    y = jnp.maximum(y, 0.0)
    pooled = jnp.max(y, axis=-1)
    return jnp.dot(pooled, w_fc.T, precision=lax.Precision.HIGHEST) + b_fc


if __name__ == "__main__":
    # Small shapes consistent with the forward pass.
    B, input_dim, output_dim, C = 2, 16, 5, 100

    key = jax.random.PRNGKey(0)
    k_x, k_wc, k_bc, k_wf, k_bf = jax.random.split(key, 5)

    x = jax.random.normal(k_x, (B, input_dim), dtype=jnp.float32)

    # Deterministic parameter init (PyTorch-default-style uniform bounds).
    fan_conv = 1 * 3
    bound_c = 1.0 / jnp.sqrt(fan_conv)
    w_conv = jax.random.uniform(k_wc, (C, 1, 3), jnp.float32, -bound_c, bound_c)
    b_conv = jax.random.uniform(k_bc, (C,), jnp.float32, -bound_c, bound_c)

    bound_f = 1.0 / jnp.sqrt(C)
    w_fc = jax.random.uniform(k_wf, (output_dim, C), jnp.float32, -bound_f, bound_f)
    b_fc = jax.random.uniform(k_bf, (output_dim,), jnp.float32, -bound_f, bound_f)

    out = cnn_classifier_forward(x, w_conv, b_conv, w_fc, b_fc)
    out = jax.block_until_ready(out)

    ref = _reference_forward(x, w_conv, b_conv, w_fc, b_fc)
    assert out.shape == (B, output_dim)
    # f32 path: tight tolerance (conv is exact VPU f32; MXU f32 matmul is multi-pass accurate).
    assert jnp.allclose(out, ref, atol=1e-4, rtol=1e-3), "mismatch vs reference"

    print("KERNEL_OK")
</pallas_src>

<mosaic_0001>
module attributes {stable_mosaic.version = 11 : i64} {
  func.func @cnn_classifier_kernel(%arg0: i32, %arg1: memref<8x128xf32, #tpu.memory_space<vmem>>, %arg2: memref<3x128xf32, #tpu.memory_space<vmem>>, %arg3: memref<1x128xf32, #tpu.memory_space<vmem>>, %arg4: memref<128x128xf32, #tpu.memory_space<vmem>>, %arg5: memref<1x128xf32, #tpu.memory_space<vmem>>, %arg6: memref<8x128xf32, #tpu.memory_space<vmem>>) attributes {dimension_semantics = [#tpu.dimension_semantics<parallel>], iteration_bounds = array<i64: 1>, scalar_prefetch = 0 : i64, scratch_operands = 0 : i64, tpu.core_type = #tpu.core_type<tc>, window_params = [{transform_indices = @transform_0, window_bounds = array<i64: 8, 128>}, {pipeline_mode = #tpu.pipeline_mode<synchronous>, transform_indices = @transform_1, window_bounds = array<i64: 3, 128>}, {pipeline_mode = #tpu.pipeline_mode<synchronous>, transform_indices = @transform_2, window_bounds = array<i64: 1, 128>}, {pipeline_mode = #tpu.pipeline_mode<synchronous>, transform_indices = @transform_3, window_bounds = array<i64: 128, 128>}, {pipeline_mode = #tpu.pipeline_mode<synchronous>, transform_indices = @transform_4, window_bounds = array<i64: 1, 128>}, {transform_indices = @transform_5, window_bounds = array<i64: 8, 128>}]} {
    %c0 = arith.constant 0 : index
    %c0_0 = arith.constant 0 : index
    %0 = vector.load %arg2[%c0, %c0_0] : memref<3x128xf32, #tpu.memory_space<vmem>>, vector<3x128xf32>
    %1 = vector.extract_strided_slice %0 {offsets = [0, 0], sizes = [1, 128], strides = [1, 1]} : vector<3x128xf32> to vector<1x128xf32>
    %2 = vector.shape_cast %1 : vector<1x128xf32> to vector<1x128x1xf32>
    %3 = vector.extract_strided_slice %0 {offsets = [1, 0], sizes = [1, 128], strides = [1, 1]} : vector<3x128xf32> to vector<1x128xf32>
    %4 = vector.shape_cast %3 : vector<1x128xf32> to vector<1x128x1xf32>
    %5 = vector.extract_strided_slice %0 {offsets = [2, 0], sizes = [1, 128], strides = [1, 1]} : vector<3x128xf32> to vector<1x128xf32>
    %6 = vector.shape_cast %5 : vector<1x128xf32> to vector<1x128x1xf32>
    %cst = arith.constant 0.000000e+00 : f32
    %7 = vector.broadcast %cst : f32 to vector<8x1xf32>
    %cst_1 = arith.constant 0xFF800000 : f32
    %8 = vector.broadcast %cst_1 : f32 to vector<8x128x128xf32>
    %c0_2 = arith.constant 0 : index
    %c0_3 = arith.constant 0 : index
    %9 = vector.load %arg1[%c0_2, %c0_3] : memref<8x128xf32, #tpu.memory_space<vmem>>, vector<8x128xf32>
    %c0_4 = arith.constant 0 : index
    %c0_5 = arith.constant 0 : index
    %10 = vector.load %arg1[%c0_4, %c0_5] : memref<8x128xf32, #tpu.memory_space<vmem>>, vector<8x127xf32>
    %11 = tpu.concatenate %7, %10 in 1 : vector<8x1xf32>, vector<8x127xf32> -> vector<8x128xf32>
    %c0_6 = arith.constant 0 : index
    %c1 = arith.constant 1 : index
    %12 = vector.load %arg1[%c0_6, %c1] : memref<8x128xf32, #tpu.memory_space<vmem>>, vector<8x127xf32>
    %13 = tpu.concatenate %12, %7 in 1 : vector<8x127xf32>, vector<8x1xf32> -> vector<8x128xf32>
    %14 = vector.shape_cast %11 : vector<8x128xf32> to vector<8x1x128xf32>
    %15 = vector.broadcast %14 : vector<8x1x128xf32> to vector<8x128x128xf32>
    %16 = vector.broadcast %2 : vector<1x128x1xf32> to vector<8x128x128xf32>
    %17 = arith.mulf %15, %16 : vector<8x128x128xf32>
    %18 = vector.shape_cast %9 : vector<8x128xf32> to vector<8x1x128xf32>
    %19 = vector.broadcast %18 : vector<8x1x128xf32> to vector<8x128x128xf32>
    %20 = vector.broadcast %4 : vector<1x128x1xf32> to vector<8x128x128xf32>
    %21 = arith.mulf %19, %20 : vector<8x128x128xf32>
    %22 = arith.addf %17, %21 : vector<8x128x128xf32>
    %23 = vector.shape_cast %13 : vector<8x128xf32> to vector<8x1x128xf32>
    %24 = vector.broadcast %23 : vector<8x1x128xf32> to vector<8x128x128xf32>
    %25 = vector.broadcast %6 : vector<1x128x1xf32> to vector<8x128x128xf32>
    %26 = arith.mulf %24, %25 : vector<8x128x128xf32>
    %27 = arith.addf %22, %26 : vector<8x128x128xf32>
    %28 = tpu.iota {dimensions = array<i32: 2>} : vector<1x1x128xi32>
    %c0_i32 = arith.constant 0 : i32
    %29 = vector.broadcast %c0_i32 : i32 to vector<1x1x128xi32>
    %30 = arith.addi %28, %29 : vector<1x1x128xi32>
    %c16_i32 = arith.constant 16 : i32
    %31 = vector.broadcast %c16_i32 : i32 to vector<1x1x128xi32>
    %32 = arith.cmpi slt, %30, %31 : vector<1x1x128xi32>
    %cst_7 = arith.constant 0xFF800000 : f32
    %33 = vector.shape_cast %32 : vector<1x1x128xi1> to vector<1x1x128xi1>
    %34 = vector.broadcast %33 : vector<1x1x128xi1> to vector<8x128x128xi1>
    %35 = vector.broadcast %cst_7 : f32 to vector<8x128x128xf32>
    %36 = arith.select %34, %27, %35 : vector<8x128x128xi1>, vector<8x128x128xf32>
    %37 = arith.maximumf %8, %36 : vector<8x128x128xf32>
    %cst_8 = arith.constant dense<0xFF800000> : vector<8x128xf32>
    %38 = vector.multi_reduction <maximumf>, %37, %cst_8 [2] : vector<8x128x128xf32> to vector<8x128xf32>
    %c0_9 = arith.constant 0 : index
    %c0_10 = arith.constant 0 : index
    %39 = vector.load %arg3[%c0_9, %c0_10] : memref<1x128xf32, #tpu.memory_space<vmem>>, vector<1x128xf32>
    %40 = vector.broadcast %39 : vector<1x128xf32> to vector<8x128xf32>
    %41 = arith.addf %38, %40 : vector<8x128xf32>
    %cst_11 = arith.constant 0.000000e+00 : f32
    %42 = vector.broadcast %cst_11 : f32 to vector<8x128xf32>
    %43 = arith.maximumf %41, %42 : vector<8x128xf32>
    %c0_12 = arith.constant 0 : index
    %c0_13 = arith.constant 0 : index
    %44 = vector.load %arg4[%c0_12, %c0_13] : memref<128x128xf32, #tpu.memory_space<vmem>>, vector<128x128xf32>
    %cst_14 = arith.constant dense<0.000000e+00> : vector<8x128xf32>
    %45 = tpu.matmul %43, %44, %cst_14 {dimension_numbers = #tpu.dot_dimension_numbers<[1], [0], [0], [1], [0, 0, 1, 1], [], []>} : vector<8x128xf32>, vector<128x128xf32>, vector<8x128xf32> -> vector<8x128xf32>
    %c0_15 = arith.constant 0 : index
    %c0_16 = arith.constant 0 : index
    %46 = vector.load %arg5[%c0_15, %c0_16] : memref<1x128xf32, #tpu.memory_space<vmem>>, vector<1x128xf32>
    %47 = vector.broadcast %46 : vector<1x128xf32> to vector<8x128xf32>
    %48 = arith.addf %45, %47 : vector<8x128xf32>
    %c0_17 = arith.constant 0 : index
    %c0_18 = arith.constant 0 : index
    %49 = vector.load %arg6[%c0_17, %c0_18] : memref<8x128xf32, #tpu.memory_space<vmem>>, vector<8x128xf32>
    tpu.vector_store %arg6[%c0_17, %c0_18], %48 {strides = array<i32>} : memref<8x128xf32, #tpu.memory_space<vmem>>, vector<8x128xf32>,
    return
  }
  func.func @transform_0(%arg0: i32) -> (i32, i32) {
    %c0_i32 = arith.constant 0 : i32
    %c0_i32_0 = arith.constant 0 : i32
    return %arg0, %c0_i32 : i32, i32
  }
  func.func @transform_1(%arg0: i32) -> (i32, i32) {
    %c0_i32 = arith.constant 0 : i32
    %c0_i32_0 = arith.constant 0 : i32
    %c0_i32_1 = arith.constant 0 : i32
    return %c0_i32, %c0_i32_0 : i32, i32
  }
  func.func @transform_2(%arg0: i32) -> (i32, i32) {
    %c0_i32 = arith.constant 0 : i32
    %c0_i32_0 = arith.constant 0 : i32
    %c0_i32_1 = arith.constant 0 : i32
    return %c0_i32, %c0_i32_0 : i32, i32
  }
  func.func @transform_3(%arg0: i32) -> (i32, i32) {
    %c0_i32 = arith.constant 0 : i32
    %c0_i32_0 = arith.constant 0 : i32
    %c0_i32_1 = arith.constant 0 : i32
    return %c0_i32, %c0_i32_0 : i32, i32
  }
  func.func @transform_4(%arg0: i32) -> (i32, i32) {
    %c0_i32 = arith.constant 0 : i32
    %c0_i32_0 = arith.constant 0 : i32
    %c0_i32_1 = arith.constant 0 : i32
    return %c0_i32, %c0_i32_0 : i32, i32
  }
  func.func @transform_5(%arg0: i32) -> (i32, i32) {
    %c0_i32 = arith.constant 0 : i32
    %c0_i32_0 = arith.constant 0 : i32
    return %arg0, %c0_i32 : i32, i32
  }
}

</mosaic_0001>

<bundles_post_ra>
// kernel: tpu_custom_call.1
= control target key start
LH: loop header
LB: loop body
LE: loop exit
PB: predicated region body
PF: predicated region fallthrough
CT: control target
= control target key end

     0   :  { %10 = vsyncpa [#allocation3], 0  ;;  %s6759_s0 = inlined_call_operand.hbm [shape: f32[8,128], index: 0, kind: input, shape index: {}]   ;;  %s6760_s1 = inlined_call_operand.hbm [shape: f32[3,128], index: 1, kind: input, shape index: {}]   ;;  %s6761_s2 = inlined_call_operand.vmem [shape: f32[1,128], index: 2, kind: input, shape index: {}]   ;;  %s6762_s3 = inlined_call_operand.hbm [shape: f32[128,128], index: 3, kind: input, shape index: {}]   ;;  %s6763_s4 = inlined_call_operand.vmem [shape: f32[1,128], index: 4, kind: input, shape index: {}]   ;;  %s6764_s5 = inlined_call_operand.hbm [shape: f32[8,128], index: 5, kind: output, shape index: {}]  }
   0x1   :  { %11 = vsyncpa [#allocation6], 0 }
   0x2   :  { %12 = vsyncpa [#allocation4], 0  ;;  %s3685_s18 = smov [#allocation5]   ;;  %s3686_s20 = smov [#allocation2]  }
   0x3   :  { %s29_s19 = sshll.u32 %s3685_s18, 4  ;;  %s19_s21 = sshll.u32 %s3686_s20, 4  ;;  %s30_s19 = int_to_ptr.vmem [resolvable:$true] %s29_s19  ;;  %s20_s21 = int_to_ptr.vmem [resolvable:$true] %s19_s21 }
   0x4   :  { %s3607_s22 = scalar_lea.vmem %s30_s19, 64  ;;  %p3612_p1 = scmp.lt.s32.totalorder %s30_s19, %s30_s19 }
   0x5   :  { %p3608_p0 = scmp.ne.s32.totalorder %s30_s19, %s3607_s22  ;;  %p3613_p2 = scmp.lt.s32.totalorder %s3607_s22, %s3607_s22 }
   0x7   :  { %p3614_p3 = por %p3613_p2, %p3612_p1 }
   0x9   :  { %p3615_p4 = pnand %p3614_p3, %p3608_p0 }
   0xb   :  { %3618 = shalt.err (!%p3615_p4)
}
   0xc   :  { %32 = dma.hbm_to_vmem [thread:$0]  %s6760_s1, 64, %s30_s19, [#allocation6]  }
   0xd   :  { %s3627_s25 = scalar_lea.vmem %s20_s21, 128  ;;  %p3632_p6 = scmp.lt.s32.totalorder %s20_s21, %s20_s21 }
   0xe   :  { %p3628_p5 = scmp.ne.s32.totalorder %s20_s21, %s3627_s25  ;;  %p3633_p7 = scmp.lt.s32.totalorder %s3627_s25, %s3627_s25 }
  0x10   :  { %p3634_p8 = por %p3633_p7, %p3632_p6 }
  0x12   :  { %p3635_p9 = pnand %p3634_p8, %p3628_p5 }
  0x14   :  { %3638 = shalt.err (!%p3635_p9)
}
  0x15   :  { %22 = dma.hbm_to_vmem [thread:$0]  %s6759_s0, 128, %s20_s21, [#allocation3]  }
  0x16   :  { %s3687_s28 = smov [#allocation7]  }
  0x17   :  { %s40_s29 = sshll.u32 %s3687_s28, 4  ;;  %s41_s29 = int_to_ptr.vmem [resolvable:$true] %s40_s29 }
  0x18   :  { %s3647_s30 = scalar_lea.vmem %s41_s29, 2048  ;;  %p3652_p11 = scmp.lt.s32.totalorder %s41_s29, %s41_s29 }
  0x19   :  { %p3648_p10 = scmp.ne.s32.totalorder %s41_s29, %s3647_s30  ;;  %p3653_p12 = scmp.lt.s32.totalorder %s3647_s30, %s3647_s30 }
  0x1b   :  { %p3654_p13 = por %p3653_p12, %p3652_p11 }
  0x1d   :  { %p3655_p0 = pnand %p3654_p13, %p3648_p10 }
  0x1f   :  { %3658 = shalt.err (!%p3655_p0)
}
  0x20   :  { %s3688_s1 = smov 128   ;;  %s3689_s6 = smov 8  }
  0x21   :  { %46 = dma.hbm_to_vmem [thread:$0]  %s6762_s3, 2048, %s41_s29, [#allocation6], %s3688_s1, %s3688_s1, %s3689_s6  }
  0x22   :  { %3679 = dma.done.wait [#allocation3], 128  }
  0x23   :  { %3680 = vsyncadd [#allocation3], 4294967168 }
  0x24   :  { %3681 = dma.done.wait [#allocation6], 2112  }
  0x25   :  { %3682 = vsyncadd [#allocation6], 4294965184  ;;  %v59_v0 = vlaneseq  ;;  %v58_v3 = vld [vmem:[#allocation5] sm:$0x7]  ;;  %v260_v9 = vld [vmem:[#allocation2] sm:$0xff]  ;;  %s3690_s0 = smov 127  }
  0x26   :  { %s3691_s3 = smov 1   ;;  %v3692_v34 = vmov 1966171168   ;;  %v490_v44 = vcombine.high %v260_v9, %v260_v9  ;;  %vm270_vm0 = vcmask 1039360   ;;  %vm265_vm1 = vcmask 7168   ;;  %s3696_s12 = smov [#allocation8]  }
  0x27   :  { %v3737_v1 = vshrl.u32 %v59_v0, 7  ;;  %v275_v35 = vunpack.c.l.s4 %v3692_v34  ;;  %vm2455_vm3 = vcmask 130112   ;;  %vm2462_vm4 = vcmask 195712   ;;  %s3200_s13 = sshll.u32 %s3696_s12, 4  ;;  %s3201_s13 = int_to_ptr.vmem [resolvable:$true] %s3200_s13 }
  0x28   :  { %vm2469_vm5 = vcmask 261312   ;;  %vm2476_vm6 = vcmask 326912   ;;  %vm2483_vm7 = vcmask 392512   ;;  %vm2490_vm8 = vcmask 458112   ;;  %s3659_s14 = scalar_lea.vmem %s3201_s13, 128  ;;  %p3664_p2 = scmp.lt.s32.totalorder %s3201_s13, %s3201_s13 }
  0x29   :  { %6826 = vst [vmem:[#allocation12_spill] sm:$0xff] %v3737_v1  ;;  %v3740_v2 = vsub.s32 0, %v3737_v1  ;;  %v128_v5 = vsub.s32 1, %v3737_v1  ;;  %v195_v7 = vsub.s32 2, %v3737_v1  ;;  %v276_v38 = vunpack.c.0.s8 %v275_v35  ;;  %p3660_p1 = scmp.ne.s32.totalorder %s3201_s13, %s3659_s14  ;;  %p3665_p3 = scmp.lt.s32.totalorder %s3659_s14, %s3659_s14 }
  0x2a   :  { %vm2497_vm9 = vcmask 523712   ;;  %vm3695_vm10 = vmmov 0   ;;  %vm2504_vm11 = vcmask 589312   ;;  %vm2511_vm12 = vcmask 654912  }
  0x2b   :  { %6827 = vst [vmem:[#allocation13_spill] sm:$0xff] %v3740_v2  ;;  %v62_v4 = vrot.slane %v58_v3, %v3740_v2  ;;  %v129_v6 = vrot.slane %v58_v3, %v128_v5  ;;  %v196_v8 = vrot.slane %v58_v3, %v195_v7  ;;  %v3802_v41 = vsub.s32 %v276_v38, %v3737_v1  ;;  %p3666_p4 = por %p3665_p3, %p3664_p2 }
  0x2c   :  { %v3853_v38 = vand.u32 127, %v59_v0  ;;  %vm2518_vm13 = vcmask 720512   ;;  %vm2525_vm14 = vcmask 786112   ;;  %vm2532_vm15 = vcmask 851712  }
  0x2d   :  { %72 = vbcast.lane.b32.xlu1 %v62_v4, 272  ;;  %64 = vbcast.lane.b32.xlu0 %v62_v4, 256  ;;  %v497_v45 = vrot.slane %v260_v9, %v3802_v41  ;;  %v504_v48 = vrot.slane %v490_v44, %v3802_v41  ;;  %p3667_p5 = pnand %p3666_p4, %p3660_p1 }
  0x2e   :  { %6847 = vst [vmem:[#allocation33_spill] sm:$0xff] %v3853_v38  ;;  %vm1183_vm2 = vcmp.lt.s32.totalorder %v3853_v38, 16 }
  0x2f   :  { %v505_v49 = vcombine.high %v497_v45, %v497_v45  ;;  %v506_v52 = vcombine.high %v504_v48, %v504_v48  ;;  %v513_v53 = vrot.slane %v497_v45, %v3802_v41  ;;  %v520_v57 = vrot.slane %v504_v48, %v3802_v41 }
  0x31   :  { %76 = vbcast.lane.b32.xlu1 %v62_v4, 280  ;;  %68 = vbcast.lane.b32.xlu0 %v62_v4, 264  ;;  %v527_v54 = vrot.slane %v505_v49, %v3802_v41  ;;  %v534_v58 = vrot.slane %v506_v52, %v3802_v41  ;;  %v535_v59 = vcombine.high %v513_v53, %v513_v53 }
  0x32   :  { %v536_v63 = vcombine.high %v520_v57, %v520_v57 }
  0x33   :  { %v537_v60 = vcombine.high %v527_v54, %v527_v54  ;;  %v538_v3 = vcombine.high %v534_v58, %v534_v58  ;;  %v3834_v5 = vrot.slane %v527_v54, %v3740_v2 }
  0x34   :  { %v3856_v44 = vrot.slane %v536_v63, %v3740_v2 }
  0x35   :  { %84 = vbcast.lane.b32.xlu1 %v62_v4, 296  ;;  %80 = vbcast.lane.b32.xlu0 %v62_v4, 288  ;;  %v3840_v7 = vrot.slane %v537_v60, %v3740_v2  ;;  %v3859_v45 = vrot.slane %v538_v3, %v3740_v2 }
  0x37   :  { %6848 = vst [vmem:[#allocation34_spill] sm:$0xff] %v3859_v45 }
  0x39   :  { %92 = vbcast.lane.b32.xlu1 %v62_v4, 312  ;;  %88 = vbcast.lane.b32.xlu0 %v62_v4, 304 }
  0x3d   :  { %100 = vbcast.lane.b32.xlu1 %v62_v4, 328  ;;  %96 = vbcast.lane.b32.xlu0 %v62_v4, 320 }
  0x41   :  { %108 = vbcast.lane.b32.xlu1 %v62_v4, 344  ;;  %104 = vbcast.lane.b32.xlu0 %v62_v4, 336 }
  0x45   :  { %116 = vbcast.lane.b32.xlu1 %v62_v4, 360  ;;  %112 = vbcast.lane.b32.xlu0 %v62_v4, 352 }
  0x49   :  { %124 = vbcast.lane.b32.xlu1 %v62_v4, 376  ;;  %120 = vbcast.lane.b32.xlu0 %v62_v4, 368  ;;  %v3831_v4 = vrot.slane %v513_v53, %v3740_v2 }
  0x4d   :  { %135 = vbcast.lane.b32.xlu1 %v129_v6, 264  ;;  %131 = vbcast.lane.b32.xlu0 %v129_v6, 256 }
  0x51   :  { %143 = vbcast.lane.b32.xlu1 %v129_v6, 280  ;;  %139 = vbcast.lane.b32.xlu0 %v129_v6, 272 }
  0x55   :  { %151 = vbcast.lane.b32.xlu1 %v129_v6, 296  ;;  %147 = vbcast.lane.b32.xlu0 %v129_v6, 288 }
  0x59   :  { %159 = vbcast.lane.b32.xlu1 %v129_v6, 312  ;;  %155 = vbcast.lane.b32.xlu0 %v129_v6, 304 }
  0x5d   :  { %167 = vbcast.lane.b32.xlu1 %v129_v6, 328  ;;  %163 = vbcast.lane.b32.xlu0 %v129_v6, 320 }
  0x61   :  { %175 = vbcast.lane.b32.xlu1 %v129_v6, 344  ;;  %171 = vbcast.lane.b32.xlu0 %v129_v6, 336 }
  0x65   :  { %183 = vbcast.lane.b32.xlu1 %v129_v6, 360  ;;  %179 = vbcast.lane.b32.xlu0 %v129_v6, 352 }
  0x69   :  { %191 = vbcast.lane.b32.xlu1 %v129_v6, 376  ;;  %187 = vbcast.lane.b32.xlu0 %v129_v6, 368  ;;  %v3837_v6 = vrot.slane %v535_v59, %v3740_v2 }
  0x6d   :  { %202 = vbcast.lane.b32.xlu1 %v196_v8, 264  ;;  %198 = vbcast.lane.b32.xlu0 %v196_v8, 256 }
  0x71   :  { %210 = vbcast.lane.b32.xlu1 %v196_v8, 280  ;;  %206 = vbcast.lane.b32.xlu0 %v196_v8, 272 }
  0x75   :  { %218 = vbcast.lane.b32.xlu1 %v196_v8, 296  ;;  %214 = vbcast.lane.b32.xlu0 %v196_v8, 288 }
  0x79   :  { %226 = vbcast.lane.b32.xlu1 %v196_v8, 312  ;;  %222 = vbcast.lane.b32.xlu0 %v196_v8, 304 }
  0x7d   :  { %234 = vbcast.lane.b32.xlu1 %v196_v8, 328  ;;  %230 = vbcast.lane.b32.xlu0 %v196_v8, 320 }
  0x81   :  { %242 = vbcast.lane.b32.xlu1 %v196_v8, 344  ;;  %238 = vbcast.lane.b32.xlu0 %v196_v8, 336 }
  0x85   :  { %250 = vbcast.lane.b32.xlu1 %v196_v8, 360  ;;  %246 = vbcast.lane.b32.xlu0 %v196_v8, 352 }
  0x89   :  { %258 = vbcast.lane.b32.xlu1 %v196_v8, 376  ;;  %254 = vbcast.lane.b32.xlu0 %v196_v8, 368  ;;  %v3843_v8 = vrot.slane %v520_v57, %v3740_v2 }
  0x8d   :  { %267 = vrot.lane.b32.xlu1 %v260_v9, %s3690_s0  ;;  %262 = vrot.lane.b32.xlu0 %v260_v9, %s3691_s3  ;;  %v3846_v9 = vrot.slane %v534_v58, %v3740_v2 }
  0x9f   :  { %v3745_v10 = vpop.permute.xlu1 %72  ;;  %v3747_v11 = vpop.permute.xlu0 %64 }
  0xa0   :  { %6828 = vst [vmem:[#allocation14_spill] sm:$0xff] %v3747_v11 }
  0xa3   :  { %v3749_v12 = vpop.permute.xlu1 %76  ;;  %v3751_v13 = vpop.permute.xlu0 %68 }
  0xa4   :  { %6829 = vst [vmem:[#allocation15_spill] sm:$0xff] %v3751_v13 }
  0xa7   :  { %v3753_v14 = vpop.permute.xlu1 %84  ;;  %v3755_v15 = vpop.permute.xlu0 %80 }
  0xa8   :  { %6830 = vst [vmem:[#allocation16_spill] sm:$0xff] %v3755_v15 }
  0xab   :  { %v3757_v16 = vpop.permute.xlu1 %92  ;;  %v3759_v17 = vpop.permute.xlu0 %88 }
  0xac   :  { %6831 = vst [vmem:[#allocation17_spill] sm:$0xff] %v3759_v17 }
  0xaf   :  { %v3761_v18 = vpop.permute.xlu1 %100  ;;  %v3763_v19 = vpop.permute.xlu0 %96 }
  0xb0   :  { %6832 = vst [vmem:[#allocation18_spill] sm:$0xff] %v3761_v18 }
  0xb3   :  { %v3765_v20 = vpop.permute.xlu1 %108  ;;  %v3767_v21 = vpop.permute.xlu0 %104 }
  0xb4   :  { %6833 = vst [vmem:[#allocation19_spill] sm:$0xff] %v3765_v20 }
  0xb7   :  { %v3769_v22 = vpop.permute.xlu1 %116  ;;  %v3771_v23 = vpop.permute.xlu0 %112 }
  0xb8   :  { %6834 = vst [vmem:[#allocation20_spill] sm:$0xff] %v3769_v22  ;;  %6835 = vst [vmem:[#allocation21_spill] sm:$0xff] %v3771_v23 }
  0xbb   :  { %v3773_v24 = vpop.permute.xlu1 %124  ;;  %v3775_v25 = vpop.permute.xlu0 %120 }
  0xbc   :  { %6836 = vst [vmem:[#allocation22_spill] sm:$0xff] %v3773_v24  ;;  %6837 = vst [vmem:[#allocation23_spill] sm:$0xff] %v3775_v25 }
  0xbf   :  { %v3777_v26 = vpop.permute.xlu1 %135  ;;  %v3779_v27 = vpop.permute.xlu0 %131 }
  0xc0   :  { %v3863_v48 = vmul.f32 %v3831_v4, %v3777_v26  ;;  %v3867_v49 = vmul.f32 %v3831_v4, %v3779_v27  ;;  %v3871_v52 = vmul.f32 %v3834_v5, %v3779_v27  ;;  %v3875_v0 = vmul.f32 %v3834_v5, %v3777_v26 }
  0xc1   :  { %v3879_v53 = vmul.f32 %v3837_v6, %v3779_v27  ;;  %v3883_v54 = vmul.f32 %v3837_v6, %v3777_v26  ;;  %v3887_v57 = vmul.f32 %v3840_v7, %v3779_v27  ;;  %v3895_v60 = vmul.f32 %v3840_v7, %v3777_v26 }
  0xc2   :  { %6849 = vst [vmem:[#allocation35_spill] sm:$0xff] %v3871_v52  ;;  %6850 = vst [vmem:[#allocation36_spill] sm:$0xff] %v3875_v0  ;;  %v3899_v63 = vmul.f32 %v3843_v8, %v3779_v27  ;;  %v3903_v3 = vmul.f32 %v3843_v8, %v3777_v26  ;;  %v3907_v1 = vmul.f32 %v3846_v9, %v3779_v27 }
  0xc3   :  { %v3781_v28 = vpop.permute.xlu1 %143  ;;  %v3783_v29 = vpop.permute.xlu0 %139  ;;  %6851 = vst [vmem:[#allocation37_spill] sm:$0xff] %v3879_v53  ;;  %6852 = vst [vmem:[#allocation38_spill] sm:$0xff] %v3883_v54  ;;  %v3915_v54 = vmul.f32 %v3846_v9, %v3777_v26 }
  0xc4   :  { %6853 = vst [vmem:[#allocation39_spill] sm:$0xff] %v3887_v57  ;;  %6855 = vst [vmem:[#allocation41_spill] sm:$0xff] %v3895_v60  ;;  %v3911_v57 = vmul.f32 %v3831_v4, %v3783_v29  ;;  %v3919_v60 = vmul.f32 %v3856_v44, %v3779_v27  ;;  %v3935_v53 = vmul.f32 %v3834_v5, %v3781_v28 }
  0xc5   :  { %6856 = vst [vmem:[#allocation42_spill] sm:$0xff] %v3899_v63  ;;  %6857 = vst [vmem:[#allocation43_spill] sm:$0xff] %v3903_v3  ;;  %v3923_v63 = vmul.f32 %v3856_v44, %v3777_v26  ;;  %v3927_v3 = vmul.f32 %v3831_v4, %v3781_v28  ;;  %v3951_v0 = vmul.f32 %v3840_v7, %v3781_v28 }
  0xc6   :  { %6858 = vst [vmem:[#allocation44_spill] sm:$0xff] %v3907_v1  ;;  %6859 = vst [vmem:[#allocation45_spill] sm:$0xff] %v3915_v54  ;;  %v3931_v1 = vmul.f32 %v3834_v5, %v3783_v29  ;;  %v3939_v54 = vmul.f32 %v3837_v6, %v3783_v29 }
  0xc7   :  { %v3785_v30 = vpop.permute.xlu1 %151  ;;  %v3787_v31 = vpop.permute.xlu0 %147  ;;  %6860 = vst [vmem:[#allocation46_spill] sm:$0xff] %v3919_v60  ;;  %6861 = vst [vmem:[#allocation47_spill] sm:$0xff] %v3923_v63  ;;  %v3943_v60 = vmul.f32 %v3837_v6, %v3781_v28  ;;  %v3947_v63 = vmul.f32 %v3840_v7, %v3783_v29 }
  0xc8   :  { %6862 = vst [vmem:[#allocation48_spill] sm:$0xff] %v3931_v1  ;;  %6863 = vst [vmem:[#allocation49_spill] sm:$0xff] %v3935_v53  ;;  %v3955_v1 = vmul.f32 %v3843_v8, %v3783_v29  ;;  %v3983_v24 = vmul.f32 %v3831_v4, %v3785_v30  ;;  %v4015_v22 = vmul.f32 %v3843_v8, %v3787_v31 }
  0xc9   :  { %6864 = vst [vmem:[#allocation50_spill] sm:$0xff] %v3939_v54  ;;  %6865 = vst [vmem:[#allocation51_spill] sm:$0xff] %v3943_v60  ;;  %v3963_v54 = vmul.f32 %v3843_v8, %v3781_v28  ;;  %v3967_v60 = vmul.f32 %v3846_v9, %v3783_v29  ;;  %v4297_v18 = vmul.f32 %v3859_v45, %v3787_v31 }
  0xca   :  { %6866 = vst [vmem:[#allocation52_spill] sm:$0xff] %v3947_v63  ;;  %6867 = vst [vmem:[#allocation53_spill] sm:$0xff] %v3951_v0  ;;  %v3971_v63 = vmul.f32 %v3846_v9, %v3781_v28  ;;  %v3975_v0 = vmul.f32 %v3856_v44, %v3783_v29 }
  0xcb   :  { %v3789_v32 = vpop.permute.xlu1 %159  ;;  %v3791_v33 = vpop.permute.xlu0 %155  ;;  %6868 = vst [vmem:[#allocation54_spill] sm:$0xff] %v3955_v1  ;;  %6871 = vst [vmem:[#allocation57_spill] sm:$0xff] %v3963_v54  ;;  %v3979_v1 = vmul.f32 %v3831_v4, %v3787_v31  ;;  %v3987_v54 = vmul.f32 %v3834_v5, %v3787_v31 }
  0xcc   :  { %6872 = vst [vmem:[#allocation58_spill] sm:$0xff] %v3967_v60  ;;  %6873 = vst [vmem:[#allocation59_spill] sm:$0xff] %v3971_v63  ;;  %v3991_v60 = vmul.f32 %v3856_v44, %v3781_v28  ;;  %v3999_v63 = vmul.f32 %v3837_v6, %v3787_v31  ;;  %v4059_v20 = vmul.f32 %v3837_v6, %v3789_v32 }
  0xcd   :  { %6874 = vst [vmem:[#allocation60_spill] sm:$0xff] %v3975_v0  ;;  %6875 = vst [vmem:[#allocation61_spill] sm:$0xff] %v3987_v54  ;;  %v3995_v0 = vmul.f32 %v3834_v5, %v3785_v30  ;;  %v4007_v54 = vmul.f32 %v3840_v7, %v3787_v31 }
  0xce   :  { %6876 = vst [vmem:[#allocation62_spill] sm:$0xff] %v3991_v60  ;;  %6878 = vst [vmem:[#allocation64_spill] sm:$0xff] %v3999_v63  ;;  %v4011_v60 = vmul.f32 %v3840_v7, %v3785_v30  ;;  %v4023_v63 = vmul.f32 %v3846_v9, %v3787_v31 }
  0xcf   :  { %v3793_v36 = vpop.permute.xlu1 %167  ;;  %v3795_v37 = vpop.permute.xlu0 %163  ;;  %6877 = vst [vmem:[#allocation63_spill] sm:$0xff] %v3995_v0  ;;  %6880 = vst [vmem:[#allocation66_spill] sm:$0xff] %v4007_v54  ;;  %v4019_v0 = vmul.f32 %v3843_v8, %v3785_v30  ;;  %v4031_v54 = vmul.f32 %v3831_v4, %v3791_v33 }
  0xd0   :  { %6881 = vst [vmem:[#allocation67_spill] sm:$0xff] %v4011_v60  ;;  %6882 = vst [vmem:[#allocation68_spill] sm:$0xff] %v4015_v22  ;;  %v4035_v60 = vmul.f32 %v3831_v4, %v3789_v32  ;;  %v4039_v22 = vmul.f32 %v3846_v9, %v3785_v30 }
  0xd1   :  { %6883 = vst [vmem:[#allocation69_spill] sm:$0xff] %v4019_v0  ;;  %6884 = vst [vmem:[#allocation70_spill] sm:$0xff] %v4023_v63  ;;  %v4043_v0 = vmul.f32 %v3856_v44, %v3787_v31  ;;  %v4047_v63 = vmul.f32 %v3834_v5, %v3791_v33 }
  0xd2   :  { %6887 = vst [vmem:[#allocation73_spill] sm:$0xff] %v4035_v60  ;;  %6888 = vst [vmem:[#allocation74_spill] sm:$0xff] %v4039_v22  ;;  %v4063_v22 = vmul.f32 %v3840_v7, %v3791_v33  ;;  %v4301_v60 = vmul.f32 %v3859_v45, %v3781_v28 }
  0xd3   :  { %v3797_v39 = vpop.permute.xlu1 %175  ;;  %v3799_v40 = vpop.permute.xlu0 %171  ;;  %6889 = vst [vmem:[#allocation75_spill] sm:$0xff] %v4043_v0  ;;  %6890 = vst [vmem:[#allocation76_spill] sm:$0xff] %v4047_v63  ;;  %v4067_v0 = vmul.f32 %v3840_v7, %v3789_v32  ;;  %v4071_v63 = vmul.f32 %v3843_v8, %v3791_v33 }
  0xd4   :  { %6838 = vst [vmem:[#allocation24_spill] sm:$0xff] %v3797_v39  ;;  %6839 = vst [vmem:[#allocation25_spill] sm:$0xff] %v3799_v40 }
  0xd5   :  { %6893 = vst [vmem:[#allocation79_spill] sm:$0xff] %v4059_v20  ;;  %6894 = vst [vmem:[#allocation80_spill] sm:$0xff] %v4063_v22  ;;  %v4083_v20 = vmul.f32 %v3846_v9, %v3789_v32  ;;  %v4087_v22 = vmul.f32 %v3856_v44, %v3791_v33 }
  0xd6   :  { %6895 = vst [vmem:[#allocation81_spill] sm:$0xff] %v4067_v0  ;;  %6896 = vst [vmem:[#allocation82_spill] sm:$0xff] %v4071_v63  ;;  %v4091_v0 = vmul.f32 %v3856_v44, %v3785_v30 }
  0xd7   :  { %v3804_v42 = vpop.permute.xlu1 %183  ;;  %v3806_v43 = vpop.permute.xlu0 %179  ;;  %6899 = vst [vmem:[#allocation85_spill] sm:$0xff] %v4083_v20  ;;  %6900 = vst [vmem:[#allocation86_spill] sm:$0xff] %v4087_v22  ;;  %v4107_v20 = vmul.f32 %v3834_v5, %v3795_v37  ;;  %v4111_v22 = vmul.f32 %v3859_v45, %v3779_v27  ;;  %v4131_v27 = vmul.f32 %v3840_v7, %v3793_v36 }
  0xd8   :  { %6840 = vst [vmem:[#allocation26_spill] sm:$0xff] %v3804_v42  ;;  %6841 = vst [vmem:[#allocation27_spill] sm:$0xff] %v3806_v43 }
  0xd9   :  { %6901 = vst [vmem:[#allocation87_spill] sm:$0xff] %v4091_v0  ;;  %6905 = vst [vmem:[#allocation91_spill] sm:$0xff] %v4107_v20  ;;  %v4115_v0 = vmul.f32 %v3834_v5, %v3793_v36 }
  0xda   :  { %6906 = vst [vmem:[#allocation92_spill] sm:$0xff] %v4111_v22  ;;  %6911 = vst [vmem:[#allocation97_spill] sm:$0xff] %v4131_v27  ;;  %v4135_v22 = vmul.f32 %v3843_v8, %v3795_v37  ;;  %v4155_v27 = vmul.f32 %v3856_v44, %v3789_v32 }
  0xdb   :  { %v3809_v46 = vpop.permute.xlu1 %191  ;;  %v3811_v47 = vpop.permute.xlu0 %187  ;;  %6907 = vst [vmem:[#allocation93_spill] sm:$0xff] %v4115_v0  ;;  %v4139_v0 = vmul.f32 %v3843_v8, %v3793_v36  ;;  %6945 = vst [vmem:[#allocation131_spill] sm:$0xff] %v4297_v18 }
  0xdc   :  { %6842 = vst [vmem:[#allocation28_spill] sm:$0xff] %v3809_v46  ;;  %6843 = vst [vmem:[#allocation29_spill] sm:$0xff] %v3811_v47  ;;  %v4318_v31 = vmul.f32 %v3837_v6, %v3811_v47  ;;  %v4322_v28 = vmul.f32 %v3837_v6, %v3809_v46 }
  0xdd   :  { %6912 = vst [vmem:[#allocation98_spill] sm:$0xff] %v4135_v22  ;;  %6913 = vst [vmem:[#allocation99_spill] sm:$0xff] %v4139_v0  ;;  %v4159_v22 = vmul.f32 %v3859_v45, %v3783_v29 }
  0xde   :  { %6917 = vst [vmem:[#allocation103_spill] sm:$0xff] %v4155_v27  ;;  %v4175_v27 = vmul.f32 %v3859_v45, %v3777_v26  ;;  %v4197_v26 = vmul.f32 %v3840_v7, %v3799_v40  ;;  %6946 = vst [vmem:[#allocation132_spill] sm:$0xff] %v4301_v60  ;;  %v4330_v60 = vmul.f32 %v3840_v7, %v3809_v46 }
  0xdf   :  { %v3814_v50 = vpop.permute.xlu1 %202  ;;  %v3816_v51 = vpop.permute.xlu0 %198  ;;  %6918 = vst [vmem:[#allocation104_spill] sm:$0xff] %v4159_v22  ;;  %6948 = vst [vmem:[#allocation134_spill] sm:$0xff] %v4318_v31 }
  0xe0   :  { %6921 = vst [vmem:[#allocation107_spill] sm:$0xff] %v4175_v27  ;;  %6925 = vst [vmem:[#allocation111_spill] sm:$0xff] %v4197_v26  ;;  %v4221_v26 = vmul.f32 %v3846_v9, %v3799_v40 }
  0xe1   :  { %6949 = vst [vmem:[#allocation135_spill] sm:$0xff] %v4322_v28  ;;  %6951 = vst [vmem:[#allocation137_spill] sm:$0xff] %v4330_v60  ;;  %v4354_v60 = vmul.f32 %v3846_v9, %v3809_v46 }
  0xe2   :  { %6929 = vst [vmem:[#allocation115_spill] sm:$0xff] %v4221_v26  ;;  %v4245_v26 = vmul.f32 %v3837_v6, %v3806_v43 }
  0xe3   :  { %v3820_v55 = vpop.permute.xlu1 %210  ;;  %v3822_v56 = vpop.permute.xlu0 %206  ;;  %6955 = vst [vmem:[#allocation141_spill] sm:$0xff] %v4354_v60 }
  0xe4   :  { %6844 = vst [vmem:[#allocation30_spill] sm:$0xff] %v3820_v55  ;;  %6845 = vst [vmem:[#allocation31_spill] sm:$0xff] %v3822_v56 }
  0xe5   :  { %6935 = vst [vmem:[#allocation121_spill] sm:$0xff] %v4245_v26  ;;  %v4269_v26 = vmul.f32 %v3846_v9, %v3806_v43 }
  0xe7   :  { %v3826_v61 = vpop.permute.xlu1 %218  ;;  %v3828_v62 = vpop.permute.xlu0 %214  ;;  %6941 = vst [vmem:[#allocation127_spill] sm:$0xff] %v4269_v26  ;;  %v4293_v26 = vmul.f32 %v3856_v44, %v3793_v36 }
  0xe9   :  { %6944 = vst [vmem:[#allocation130_spill] sm:$0xff] %v4293_v26  ;;  %v4314_v26 = vmul.f32 %v3834_v5, %v3809_v46 }
  0xeb   :  { %v3848_v34 = vpop.permute.xlu1 %226  ;;  %v3850_v35 = vpop.permute.xlu0 %222  ;;  %6947 = vst [vmem:[#allocation133_spill] sm:$0xff] %v4314_v26 }
  0xec   :  { %6846 = vst [vmem:[#allocation32_spill] sm:$0xff] %v3848_v34  ;;  %v4185_v34 = vmul.f32 %v3834_v5, %v3797_v39 }
  0xee   :  { %6922 = vst [vmem:[#allocation108_spill] sm:$0xff] %v4185_v34  ;;  %v4233_v34 = vmul.f32 %v3834_v5, %v3806_v43 }
  0xef   :  { %v3889_v58 = vpop.permute.xlu1 %234  ;;  %v3891_v59 = vpop.permute.xlu0 %230 }
  0xf0   :  { %6854 = vst [vmem:[#allocation40_spill] sm:$0xff] %v3889_v58  ;;  %6932 = vst [vmem:[#allocation118_spill] sm:$0xff] %v4233_v34  ;;  %v4257_v34 = vmul.f32 %v3840_v7, %v3804_v42 }
  0xf2   :  { %6938 = vst [vmem:[#allocation124_spill] sm:$0xff] %v4257_v34  ;;  %v4281_v34 = vmul.f32 %v3846_v9, %v3804_v42 }
  0xf3   :  { %v3957_v53 = vpop.permute.xlu1 %242  ;;  %v3959_v52 = vpop.permute.xlu0 %238 }
  0xf4   :  { %6869 = vst [vmem:[#allocation55_spill] sm:$0xff] %v3957_v53  ;;  %6870 = vst [vmem:[#allocation56_spill] sm:$0xff] %v3959_v52  ;;  %v4003_v53 = vmul.f32 %v3837_v6, %v3785_v30  ;;  %v4237_v52 = vmul.f32 %v3846_v9, %v3797_v39 }
  0xf5   :  { %6942 = vst [vmem:[#allocation128_spill] sm:$0xff] %v4281_v34  ;;  %v4346_v34 = vmul.f32 %v3843_v8, %v3809_v46 }
  0xf6   :  { %6879 = vst [vmem:[#allocation65_spill] sm:$0xff] %v4003_v53  ;;  %6933 = vst [vmem:[#allocation119_spill] sm:$0xff] %v4237_v52  ;;  %v4261_v52 = vmul.f32 %v3843_v8, %v3806_v43 }
  0xf7   :  { %v4025_v53 = vpop.permute.xlu1 %250  ;;  %v4027_v58 = vpop.permute.xlu0 %246  ;;  %6953 = vst [vmem:[#allocation139_spill] sm:$0xff] %v4346_v34  ;;  %v4370_v34 = vmul.f32 %v3856_v44, %v3806_v43 }
  0xf8   :  { %6885 = vst [vmem:[#allocation71_spill] sm:$0xff] %v4025_v53  ;;  %6886 = vst [vmem:[#allocation72_spill] sm:$0xff] %v4027_v58  ;;  %v4051_v53 = vmul.f32 %v3834_v5, %v3789_v32  ;;  %v4055_v58 = vmul.f32 %v3837_v6, %v3791_v33 }
  0xf9   :  { %6939 = vst [vmem:[#allocation125_spill] sm:$0xff] %v4261_v52  ;;  %v4285_v52 = vmul.f32 %v3856_v44, %v3799_v40  ;;  %6959 = vst [vmem:[#allocation145_spill] sm:$0xff] %v4370_v34 }
  0xfa   :  { %6891 = vst [vmem:[#allocation77_spill] sm:$0xff] %v4051_v53  ;;  %6892 = vst [vmem:[#allocation78_spill] sm:$0xff] %v4055_v58  ;;  %v4075_v53 = vmul.f32 %v3843_v8, %v3789_v32  ;;  %v4079_v58 = vmul.f32 %v3846_v9, %v3791_v33 }
  0xfb   :  { %v4093_v63 = vpop.permute.xlu1 %258  ;;  %v4095_v25 = vpop.permute.xlu0 %254  ;;  %6943 = vst [vmem:[#allocation129_spill] sm:$0xff] %v4285_v52  ;;  %v4310_v52 = vmul.f32 %v3834_v5, %v3811_v47 }
  0xfc   :  { %6897 = vst [vmem:[#allocation83_spill] sm:$0xff] %v4075_v53  ;;  %6898 = vst [vmem:[#allocation84_spill] sm:$0xff] %v4079_v58  ;;  %v4099_v53 = vmul.f32 %v3831_v4, %v3795_v37  ;;  %v4103_v58 = vmul.f32 %v3831_v4, %v3793_v36 }
  0xfd   :  { %6902 = vst [vmem:[#allocation88_spill] sm:$0xff] %v4093_v63  ;;  %6903 = vst [vmem:[#allocation89_spill] sm:$0xff] %v4095_v25  ;;  %v4119_v63 = vmul.f32 %v3837_v6, %v3795_v37  ;;  %v4123_v25 = vmul.f32 %v3837_v6, %v3793_v36 }
  0xfe   :  { %6904 = vst [vmem:[#allocation90_spill] sm:$0xff] %v4103_v58  ;;  %v4127_v58 = vmul.f32 %v3840_v7, %v3795_v37 }
  0xff   :  { %6908 = vst [vmem:[#allocation94_spill] sm:$0xff] %v4119_v63  ;;  %6909 = vst [vmem:[#allocation95_spill] sm:$0xff] %v4123_v25  ;;  %v4143_v63 = vmul.f32 %v3846_v9, %v3795_v37  ;;  %v4147_v25 = vmul.f32 %v3846_v9, %v3793_v36  ;;  %v268_v0 = vpop.permute.xlu1 %267  ;;  %v263_v20 = vpop.permute.xlu0 %262 }
 0x100   :  { %6910 = vst [vmem:[#allocation96_spill] sm:$0xff] %v4127_v58  ;;  %v4151_v58 = vmul.f32 %v3856_v44, %v3795_v37  ;;  %v4178_v29 = vsel %vm270_vm0, %v268_v0, 0.0  ;;  %v4181_v22 = vsel %vm265_vm1, 0.0, %v263_v20  ;;  %v4201_v20 = vmul.f32 %v3840_v7, %v3797_v39 }
 0x101   :  { %6914 = vst [vmem:[#allocation100_spill] sm:$0xff] %v4143_v63  ;;  %6915 = vst [vmem:[#allocation101_spill] sm:$0xff] %v4147_v25  ;;  %v4163_v63 = vmul.f32 %v3831_v4, %v3799_v40  ;;  %v4167_v25 = vmul.f32 %v3831_v4, %v3797_v39  ;;  %v4205_v0 = vmul.f32 %v3843_v8, %v3799_v40  ;;  %vm2539_vm0 = vcmask 917312  }
 0x102   :  { %6916 = vst [vmem:[#allocation102_spill] sm:$0xff] %v4151_v58  ;;  %v4171_v58 = vmul.f32 %v3834_v5, %v3799_v40  ;;  %6926 = vst [vmem:[#allocation112_spill] sm:$0xff] %v4201_v20  ;;  %v4209_v27 = vrot.slane %v4178_v29, %v3802_v41  ;;  %v4225_v20 = vmul.f32 %v3831_v4, %v3806_v43  ;;  %vm2546_vm1 = vcmask 982912  }
 0x103   :  { %6919 = vst [vmem:[#allocation105_spill] sm:$0xff] %v4167_v25  ;;  %v4189_v25 = vmul.f32 %v3837_v6, %v3799_v40  ;;  %6927 = vst [vmem:[#allocation113_spill] sm:$0xff] %v4205_v0  ;;  %v4229_v0 = vmul.f32 %v3831_v4, %v3804_v42  ;;  %v4306_v40 = vmul.f32 %v3831_v4, %v3809_v46 }
 0x104   :  { %6920 = vst [vmem:[#allocation106_spill] sm:$0xff] %v4171_v58  ;;  %v4193_v58 = vmul.f32 %v3837_v6, %v3797_v39  ;;  %6930 = vst [vmem:[#allocation116_spill] sm:$0xff] %v4225_v20  ;;  %v4249_v20 = vmul.f32 %v3837_v6, %v3804_v42 }
 0x105   :  { %6923 = vst [vmem:[#allocation109_spill] sm:$0xff] %v4189_v25  ;;  %v4213_v25 = vrot.slane %v4181_v22, %v3802_v41  ;;  %6931 = vst [vmem:[#allocation117_spill] sm:$0xff] %v4229_v0  ;;  %v4253_v0 = vmul.f32 %v3840_v7, %v3806_v43  ;;  %v4390_v43 = vmul.f32 %v3856_v44, %v3811_v47 }
 0x106   :  { %6924 = vst [vmem:[#allocation110_spill] sm:$0xff] %v4193_v58  ;;  %v4217_v58 = vmul.f32 %v3843_v8, %v3797_v39  ;;  %6936 = vst [vmem:[#allocation122_spill] sm:$0xff] %v4249_v20  ;;  %v4273_v20 = vrot.slane %v4209_v27, %v3802_v41 }
 0x107   :  { %6937 = vst [vmem:[#allocation123_spill] sm:$0xff] %v4253_v0  ;;  %v4277_v0 = vrot.slane %v4213_v25, %v3802_v41  ;;  %6963 = vst [vmem:[#allocation149_spill] sm:$0xff] %v4390_v43 }
 0x108   :  { %6928 = vst [vmem:[#allocation114_spill] sm:$0xff] %v4217_v58  ;;  %v4241_v58 = vmul.f32 %v3834_v5, %v3804_v42  ;;  %v4334_v5 = vmul.f32 %v3843_v8, %v3811_v47  ;;  %v4338_v18 = vrot.slane %v4273_v20, %v3740_v2 }
 0x109   :  { %v4342_v6 = vrot.slane %v4277_v0, %v3740_v2 }
 0x10a   :  { %6934 = vst [vmem:[#allocation120_spill] sm:$0xff] %v4241_v58  ;;  %v4265_v58 = vmul.f32 %v3843_v8, %v3804_v42  ;;  %6952 = vst [vmem:[#allocation138_spill] sm:$0xff] %v4334_v5  ;;  %v4362_v5 = vmul.f32 %v3859_v45, %v3791_v33  ;;  %v4366_v8 = vmul.f32 %v3859_v45, %v3785_v30 }
 0x10b   :  { %v4382_v33 = vmul.f32 %v3859_v45, %v3789_v32  ;;  %v363_v30 = vmul.f32 %v4342_v6, %v3751_v13  ;;  %v926_v32 = vmul.f32 %v4338_v18, %v3814_v50  ;;  %v365_v43 = vmul.f32 %v4342_v6, %v3749_v12 }
 0x10c   :  { %6940 = vst [vmem:[#allocation126_spill] sm:$0xff] %v4265_v58  ;;  %v4289_v58 = vmul.f32 %v3831_v4, %v3811_v47  ;;  %v4326_v4 = vmul.f32 %v3840_v7, %v3811_v47  ;;  %v4350_v7 = vmul.f32 %v3846_v9, %v3811_v47  ;;  %6957 = vst [vmem:[#allocation143_spill] sm:$0xff] %v4362_v5 }
 0x10d   :  { %6958 = vst [vmem:[#allocation144_spill] sm:$0xff] %v4366_v8  ;;  %v4374_v9 = vmul.f32 %v3856_v44, %v3804_v42  ;;  %6962 = vst [vmem:[#allocation148_spill] sm:$0xff] %v4382_v33  ;;  %v362_v8 = vmul.f32 %v4342_v6, %v3747_v11  ;;  %v4394_v42 = vmul.f32 %v3859_v45, %v3793_v36 }
 0x10e   :  { %6950 = vst [vmem:[#allocation136_spill] sm:$0xff] %v4326_v4  ;;  %6954 = vst [vmem:[#allocation140_spill] sm:$0xff] %v4350_v7  ;;  %v4358_v4 = vmul.f32 %v3856_v44, %v3797_v39  ;;  %v4378_v39 = vmul.f32 %v3859_v45, %v3795_v37  ;;  %v836_v37 = vcombine.high %v4178_v29, %v4178_v29 }
 0x10f   :  { %6960 = vst [vmem:[#allocation146_spill] sm:$0xff] %v4374_v9  ;;  %6964 = vst [vmem:[#allocation150_spill] sm:$0xff] %v4394_v42  ;;  %v366_v33 = vmul.f32 %v4342_v6, %v3755_v15  ;;  %v708_v5 = vadd.f32 %v3863_v48, %v363_v30  ;;  %v707_v47 = vadd.f32 %v3867_v49, %v362_v8 }
 0x110   :  { %6956 = vst [vmem:[#allocation142_spill] sm:$0xff] %v4358_v4  ;;  %6961 = vst [vmem:[#allocation147_spill] sm:$0xff] %v4378_v39  ;;  %v364_v39 = vmul.f32 %v4342_v6, %v3745_v10  ;;  %v925_v36 = vmul.f32 %v4338_v18, %v3816_v51  ;;  %v368_v42 = vmul.f32 %v4342_v6, %v3759_v17 }
 0x111   :  { %v711_v29 = vadd.f32 %v3979_v1, %v366_v33  ;;  %v929_v45 = vmul.f32 %v4338_v18, %v3828_v62  ;;  %v273_v48 = vcombine.high %v4181_v22, %v4181_v22  ;;  %v1054_v49 = vadd.f32 %v926_v32, %v708_v5 }
 0x112   :  { %v709_v9 = vadd.f32 %v3911_v57, %v364_v39  ;;  %v1053_v8 = vadd.f32 %v925_v36, %v707_v47  ;;  %v927_v30 = vmul.f32 %v4338_v18, %v3822_v56  ;;  %v713_v34 = vadd.f32 %v4031_v54, %v368_v42 }
 0x113   :  { %v1057_v4 = vadd.f32 %v929_v45, %v711_v29  ;;  %v370_v1 = vmul.f32 %v4342_v6, %v3763_v19  ;;  %v4425_v39 = vmul.f32 %v3856_v44, %v3809_v46  ;;  %v1187_v57 = vsel %vm1183_vm2, %v1054_v49, -inf }
 0x114   :  { %v1186_v22 = vsel %vm1183_vm2, %v1053_v8, -inf  ;;  %v1055_v47 = vadd.f32 %v927_v30, %v709_v9  ;;  %v710_v5 = vadd.f32 %v3927_v3, %v365_v43  ;;  %v850_v45 = vrot.slane %v836_v37, %v3802_v41  ;;  %1316 = vmax.xlane.f32.xlu1 %v1187_v57 }
 0x115   :  { %6965 = vst [vmem:[#allocation151_spill] sm:$0xff] %v4425_v39  ;;  %1314 = vmax.xlane.f32.xlu0 %v1186_v22  ;;  %v931_v42 = vmul.f32 %v4338_v18, %v3850_v35  ;;  %v367_v44 = vmul.f32 %v4342_v6, %v3753_v14  ;;  %v851_v54 = vcombine.high %v4209_v27, %v4209_v27  ;;  %v1190_v3 = vsel %vm1183_vm2, %v1057_v4, -inf  ;;  %v6974_v39 = vld [vmem:[#allocation19_spill] sm:$0xff] }
 0x116   :  { %v287_v33 = vrot.slane %v273_v48, %v3802_v41  ;;  %v288_v9 = vcombine.high %v4213_v25, %v4213_v25  ;;  %v928_v43 = vmul.f32 %v4338_v18, %v3820_v55  ;;  %v715_v32 = vadd.f32 %v4099_v53, %v370_v1 }
 0x117   :  { %v1059_v37 = vadd.f32 %v931_v42, %v713_v34  ;;  %v372_v36 = vmul.f32 %v4342_v6, %v3767_v21  ;;  %v1188_v27 = vsel %vm1183_vm2, %v1055_v47, -inf  ;;  %v712_v48 = vadd.f32 %v3983_v24, %v367_v44  ;;  %v6967_v44 = vld [vmem:[#allocation18_spill] sm:$0xff] }
 0x118   :  { %v1056_v29 = vadd.f32 %v928_v43, %v710_v5  ;;  %v369_v25 = vmul.f32 %v4342_v6, %v3757_v16  ;;  %v852_v49 = vcombine.high %v850_v45, %v850_v45  ;;  %v4455_v8 = vrot.slane %v850_v45, %v3802_v41  ;;  %1322 = vmax.xlane.f32.xlu1 %v1190_v3  ;;  %v6968_v3 = vld [vmem:[#allocation56_spill] sm:$0xff] }
 0x119   :  { %1318 = vmax.xlane.f32.xlu0 %v1188_v27  ;;  %v933_v34 = vmul.f32 %v4338_v18, %v3891_v59  ;;  %v873_v53 = vrot.slane %v851_v54, %v3802_v41  ;;  %v881_v4 = vcombine.high %v4273_v20, %v4273_v20  ;;  %v4463_v30 = vrot.slane %v288_v9, %v3802_v41  ;;  %v6966_v20 = vld [vmem:[#allocation73_spill] sm:$0xff]  ;;  %v6970_v27 = vld [vmem:[#allocation32_spill] sm:$0xff] }
 0x11a   :  { %v930_v24 = vmul.f32 %v4338_v18, %v3826_v61  ;;  %v1192_v1 = vsel %vm1183_vm2, %v1059_v37, -inf  ;;  %v717_v22 = vadd.f32 %v4163_v63, %v372_v36  ;;  %v374_v47 = vmul.f32 %v4342_v6, %v3771_v23 }
 0x11b   :  { %v1061_v57 = vadd.f32 %v933_v34, %v715_v32  ;;  %v1189_v5 = vsel %vm1183_vm2, %v1056_v29, -inf  ;;  %v714_v42 = vadd.f32 %v6966_v20, %v369_v25  ;;  %v371_v54 = vmul.f32 %v4342_v6, %v6967_v44  ;;  %v6971_v25 = vld [vmem:[#allocation116_spill] sm:$0xff]  ;;  %v6973_v20 = vld [vmem:[#allocation90_spill] sm:$0xff] }
 0x11c   :  { %v1058_v45 = vadd.f32 %v930_v24, %v712_v48  ;;  %v289_v9 = vcombine.high %v287_v33, %v287_v33  ;;  %v4478_v43 = vrot.slane %v287_v33, %v3802_v41  ;;  %1326 = vmax.xlane.f32.xlu1 %v1192_v1  ;;  %v935_v63 = vmul.f32 %v4338_v18, %v6968_v3  ;;  %v6972_v24 = vld [vmem:[#allocation23_spill] sm:$0xff] }
 0x11d   :  { %1320 = vmax.xlane.f32.xlu0 %v1189_v5  ;;  %v4483_v37 = vrot.slane %v852_v49, %v3802_v41  ;;  %v882_v32 = vcombine.high %v4455_v8, %v4455_v8  ;;  %v4489_v36 = vrot.slane %v4463_v30, %v3740_v2  ;;  %v932_v29 = vmul.f32 %v4338_v18, %v6970_v27 }
 0x11e   :  { %v1194_v33 = vsel %vm1183_vm2, %v1061_v57, -inf  ;;  %v1063_v48 = vadd.f32 %v935_v63, %v717_v22  ;;  %v719_v34 = vadd.f32 %v6971_v25, %v374_v47  ;;  %v376_v49 = vmul.f32 %v4342_v6, %v6972_v24  ;;  %v6975_v57 = vld [vmem:[#allocation72_spill] sm:$0xff] }
 0x11f   :  { %6969 = vst [vmem:[#allocation73_spill] sm:$0xff] %v4483_v37  ;;  %v1191_v1 = vsel %vm1183_vm2, %v1058_v45, -inf  ;;  %v1060_v5 = vadd.f32 %v932_v29, %v714_v42  ;;  %v716_v46 = vadd.f32 %v6973_v20, %v371_v54  ;;  %v373_v60 = vmul.f32 %v4342_v6, %v6974_v39  ;;  %v6977_v42 = vld [vmem:[#allocation40_spill] sm:$0xff]  ;;  %v6980_v20 = vld [vmem:[#allocation105_spill] sm:$0xff] }
 0x120   :  { %v883_v7 = vcombine.high %v873_v53, %v873_v53  ;;  %v4504_v28 = vrot.slane %v873_v53, %v3740_v2  ;;  %1330 = vmax.xlane.f32.xlu1 %v1194_v33  ;;  %v937_v22 = vmul.f32 %v4338_v18, %v6975_v57  ;;  %v4509_v47 = vrot.slane %v881_v4, %v3740_v2  ;;  %v6978_v63 = vld [vmem:[#allocation20_spill] sm:$0xff] }
 0x121   :  { %1324 = vmax.xlane.f32.xlu0 %v1191_v1  ;;  %v4513_v45 = vrot.slane %v4455_v8, %v3740_v2  ;;  %v934_v54 = vmul.f32 %v4338_v18, %v6977_v42  ;;  %v375_v29 = vmul.f32 %v4342_v6, %v6978_v63  ;;  %v4520_v53 = vrot.slane %v289_v9, %v3802_v41  ;;  %v6981_v9 = vld [vmem:[#allocation89_spill] sm:$0xff] }
 0x122   :  { %v1196_v33 = vsel %vm1183_vm2, %v1063_v48, -inf  ;;  %v1065_v25 = vadd.f32 %v937_v22, %v719_v34  ;;  %v721_v4 = vadd.f32 %v4289_v58, %v376_v49  ;;  %v1193_v1 = vsel %vm1183_vm2, %v1060_v5, -inf  ;;  %v6985_v49 = vld [vmem:[#allocation117_spill] sm:$0xff] }
 0x123   :  { %6976 = vst [vmem:[#allocation56_spill] sm:$0xff] %v4513_v45  ;;  %6979 = vst [vmem:[#allocation32_spill] sm:$0xff] %v4520_v53  ;;  %v1062_v8 = vadd.f32 %v934_v54, %v716_v46  ;;  %v718_v45 = vadd.f32 %v6980_v20, %v373_v60  ;;  %v378_v31 = vmul.f32 %v4489_v36, %v3747_v11  ;;  %v6984_v60 = vld [vmem:[#allocation55_spill] sm:$0xff] }
 0x124   :  { %v318_v41 = vcombine.high %v4277_v0, %v4277_v0  ;;  %1334 = vmax.xlane.f32.xlu1 %v1196_v33  ;;  %v939_v58 = vmul.f32 %v4338_v18, %v6981_v9  ;;  %v4537_v48 = vrot.slane %v883_v7, %v3740_v2  ;;  %v4541_v46 = vrot.slane %v4483_v37, %v3740_v2  ;;  %v6986_v54 = vld [vmem:[#allocation71_spill] sm:$0xff] }
 0x125   :  { %1328 = vmax.xlane.f32.xlu0 %v1193_v1  ;;  %v936_v34 = vmul.f32 %v4338_v18, %v6984_v60  ;;  %v720_v5 = vadd.f32 %v6985_v49, %v375_v29  ;;  %v1198_v0 = vsel %vm1183_vm2, %v1065_v25, -inf  ;;  %v938_v33 = vmul.f32 %v4338_v18, %v6986_v54  ;;  %v6987_v1 = vld [vmem:[#allocation22_spill] sm:$0xff]  ;;  %v6988_v37 = vld [vmem:[#allocation35_spill] sm:$0xff] }
 0x126   :  { %6982 = vst [vmem:[#allocation116_spill] sm:$0xff] %v4537_v48  ;;  %6983 = vst [vmem:[#allocation90_spill] sm:$0xff] %v4541_v46  ;;  %v1067_v22 = vadd.f32 %v939_v58, %v721_v4  ;;  %v377_v7 = vmul.f32 %v4342_v6, %v6987_v1  ;;  %v1195_v20 = vsel %vm1183_vm2, %v1062_v8, -inf  ;;  %v723_v46 = vadd.f32 %v6988_v37, %v378_v31  ;;  %v6994_v4 = vld [vmem:[#allocation36_spill] sm:$0xff] }
 0x127   :  { %v1064_v26 = vadd.f32 %v936_v34, %v718_v45  ;;  %v380_v48 = vmul.f32 %v4489_v36, %v3745_v10  ;;  %v4558_v29 = vrot.slane %v882_v32, %v3740_v2  ;;  %v320_v25 = vcombine.high %v4463_v30, %v4463_v30 }
 0x128   :  { %1338 = vmax.xlane.f32.xlu1 %v1198_v0  ;;  %v379_v6 = vmul.f32 %v4489_v36, %v3751_v13  ;;  %v1066_v45 = vadd.f32 %v938_v33, %v720_v5  ;;  %v941_v31 = vmul.f32 %v4504_v28, %v3816_v51  ;;  %v382_v37 = vmul.f32 %v4489_v36, %v3755_v15  ;;  %v6991_v0 = vld [vmem:[#allocation48_spill] sm:$0xff] }
 0x129   :  { %6989 = vst [vmem:[#allocation72_spill] sm:$0xff] %v4558_v29  ;;  %1332 = vmax.xlane.f32.xlu0 %v1195_v20  ;;  %v4573_v30 = vrot.slane %v318_v41, %v3740_v2  ;;  %v4577_v8 = vrot.slane %v4478_v43, %v3740_v2  ;;  %v722_v58 = vadd.f32 %v4306_v40, %v377_v7  ;;  %v1200_v34 = vsel %vm1183_vm2, %v1067_v22, -inf  ;;  %v6993_v41 = vld [vmem:[#allocation88_spill] sm:$0xff] }
 0x12a   :  { %v1197_v49 = vsel %vm1183_vm2, %v1064_v26, -inf  ;;  %v1069_v5 = vadd.f32 %v941_v31, %v723_v46  ;;  %v725_v33 = vadd.f32 %v6991_v0, %v380_v48  ;;  %v4586_v20 = vrot.slane %v320_v25, %v3740_v2  ;;  %v6995_v26 = vld [vmem:[#allocation61_spill] sm:$0xff] }
 0x12b   :  { %6990 = vst [vmem:[#allocation40_spill] sm:$0xff] %v4577_v8  ;;  %v940_v32 = vmul.f32 %v4338_v18, %v6993_v41  ;;  %v724_v29 = vadd.f32 %v6994_v4, %v379_v6  ;;  %v1199_v40 = vsel %vm1183_vm2, %v1066_v45, -inf  ;;  %v943_v22 = vmul.f32 %v4504_v28, %v3822_v56  ;;  %v6997_v0 = vld [vmem:[#allocation49_spill] sm:$0xff] }
 0x12c   :  { %6992 = vst [vmem:[#allocation105_spill] sm:$0xff] %v4586_v20  ;;  %1342 = vmax.xlane.f32.xlu1 %v1200_v34  ;;  %v727_v46 = vadd.f32 %v6995_v26, %v382_v37  ;;  %v381_v48 = vmul.f32 %v4489_v36, %v3749_v12  ;;  %v942_v25 = vmul.f32 %v4504_v28, %v3814_v50  ;;  %v1202_v4 = vsel %vm1183_vm2, %v1069_v5, -inf }
 0x12d   :  { %1336 = vmax.xlane.f32.xlu0 %v1197_v49  ;;  %v1068_v7 = vadd.f32 %v940_v32, %v722_v58  ;;  %v384_v18 = vmul.f32 %v4489_v36, %v3759_v17  ;;  %v383_v6 = vmul.f32 %v4489_v36, %v3753_v14  ;;  %v1071_v45 = vadd.f32 %v943_v22, %v725_v33 }
 0x12e   :  { %v945_v31 = vmul.f32 %v4504_v28, %v3828_v62  ;;  %v386_v37 = vmul.f32 %v4489_v36, %v3763_v19  ;;  %v4612_v32 = vrot.slane %v4520_v53, %v3740_v2  ;;  %v1070_v58 = vadd.f32 %v942_v25, %v724_v29  ;;  %v6998_v53 = vld [vmem:[#allocation76_spill] sm:$0xff]  ;;  %v7000_v25 = vld [vmem:[#allocation91_spill] sm:$0xff] }
 0x12f   :  { %v385_v34 = vmul.f32 %v4489_v36, %v3757_v16  ;;  %v726_v5 = vadd.f32 %v6997_v0, %v381_v48  ;;  %v944_v33 = vmul.f32 %v4504_v28, %v3820_v55  ;;  %v388_v22 = vmul.f32 %v4489_v36, %v3767_v21 }
 0x130   :  { %6996 = vst [vmem:[#allocation89_spill] sm:$0xff] %v4612_v32  ;;  %1346 = vmax.xlane.f32.xlu1 %v1202_v4  ;;  %v1073_v49 = vadd.f32 %v945_v31, %v727_v46  ;;  %v1201_v26 = vsel %vm1183_vm2, %v1068_v7, -inf  ;;  %v729_v32 = vadd.f32 %v6998_v53, %v384_v18  ;;  %v387_v29 = vmul.f32 %v4489_v36, %v6967_v44  ;;  %v7001_v18 = vld [vmem:[#allocation77_spill] sm:$0xff] }
 0x131   :  { %1340 = vmax.xlane.f32.xlu0 %v1199_v40  ;;  %v6999_v40 = vld [vmem:[#allocation63_spill] sm:$0xff]  ;;  %v1204_v46 = vsel %vm1183_vm2, %v1071_v45, -inf  ;;  %v947_v48 = vmul.f32 %v4504_v28, %v3850_v35  ;;  %v731_v31 = vadd.f32 %v7000_v25, %v386_v37  ;;  %v390_v0 = vmul.f32 %v4489_v36, %v3771_v23  ;;  %v7003_v23 = vld [vmem:[#allocation93_spill] sm:$0xff] }
 0x132   :  { %v728_v4 = vadd.f32 %v6999_v40, %v383_v6  ;;  %v1203_v53 = vsel %vm1183_vm2, %v1070_v58, -inf  ;;  %v946_v7 = vmul.f32 %v4504_v28, %v3826_v61  ;;  %v730_v6 = vadd.f32 %v7001_v18, %v385_v34 }
 0x133   :  { %v389_v45 = vmul.f32 %v4489_v36, %v6974_v39  ;;  %v1206_v40 = vsel %vm1183_vm2, %v1073_v49, -inf  ;;  %v1072_v37 = vadd.f32 %v944_v33, %v726_v5  ;;  %v949_v25 = vmul.f32 %v4504_v28, %v3891_v59  ;;  %v7004_v5 = vld [vmem:[#allocation118_spill] sm:$0xff] }
 0x134   :  { %1350 = vmax.xlane.f32.xlu1 %v1204_v46  ;;  %v1075_v8 = vadd.f32 %v947_v48, %v729_v32  ;;  %v1074_v20 = vadd.f32 %v946_v7, %v728_v4  ;;  %v948_v58 = vmul.f32 %v4504_v28, %v6970_v27  ;;  %v732_v44 = vadd.f32 %v7003_v23, %v387_v29 }
 0x135   :  { %1344 = vmax.xlane.f32.xlu0 %v1201_v26  ;;  %v7002_v26 = vld [vmem:[#allocation106_spill] sm:$0xff]  ;;  %v1077_v34 = vadd.f32 %v949_v25, %v731_v31  ;;  %v951_v18 = vmul.f32 %v4504_v28, %v6968_v3  ;;  %v950_v49 = vmul.f32 %v4504_v28, %v6977_v42  ;;  %v735_v33 = vadd.f32 %v7004_v5, %v390_v0 }
 0x136   :  { %v733_v46 = vadd.f32 %v7002_v26, %v388_v22  ;;  %v1076_v39 = vadd.f32 %v948_v58, %v730_v6  ;;  %v7005_v22 = vld [vmem:[#allocation108_spill] sm:$0xff]  ;;  %v392_v4 = vmul.f32 %v4489_v36, %v6972_v24  ;;  %v7006_v23 = vcombine.high %v4478_v43, %v4478_v43 }
 0x137   :  { %v734_v32 = vadd.f32 %v7005_v22, %v389_v45  ;;  %v953_v31 = vmul.f32 %v4504_v28, %v6975_v57  ;;  %v391_v0 = vmul.f32 %v4489_v36, %v6978_v63  ;;  %v1208_v7 = vsel %vm1183_vm2, %v1075_v8, -inf  ;;  %v7009_v22 = vld [vmem:[#allocation37_spill] sm:$0xff] }
 0x138   :  { %1354 = vmax.xlane.f32.xlu1 %v1206_v40  ;;  %v4661_v29 = vrot.slane %v7006_v23, %v3740_v2  ;;  %v1079_v48 = vadd.f32 %v951_v18, %v733_v46  ;;  %v1078_v6 = vadd.f32 %v950_v49, %v732_v44  ;;  %v952_v45 = vmul.f32 %v4504_v28, %v6984_v60 }
 0x139   :  { %1348 = vmax.xlane.f32.xlu0 %v1203_v53  ;;  %v1205_v53 = vsel %vm1183_vm2, %v1072_v37, -inf  ;;  %v1207_v43 = vsel %vm1183_vm2, %v1074_v20, -inf  ;;  %v1210_v40 = vsel %vm1183_vm2, %v1077_v34, -inf  ;;  %v1081_v25 = vadd.f32 %v953_v31, %v735_v33  ;;  %v7008_v34 = vld [vmem:[#allocation120_spill] sm:$0xff] }
 0x13a   :  { %7007 = vst [vmem:[#allocation55_spill] sm:$0xff] %v4661_v29  ;;  %v394_v26 = vmul.f32 %v4573_v30, %v3747_v11  ;;  %v1209_v37 = vsel %vm1183_vm2, %v1076_v39, -inf  ;;  %v1080_v8 = vadd.f32 %v952_v45, %v734_v32  ;;  %v737_v44 = vadd.f32 %v4310_v52, %v392_v4 }
 0x13b   :  { %v393_v46 = vmul.f32 %v4489_v36, %v6987_v1  ;;  %v1212_v20 = vsel %vm1183_vm2, %v1079_v48, -inf  ;;  %v955_v58 = vmul.f32 %v4504_v28, %v6981_v9  ;;  %v736_v18 = vadd.f32 %v7008_v34, %v391_v0 }
 0x13c   :  { %1358 = vmax.xlane.f32.xlu1 %v1208_v7  ;;  %v396_v49 = vmul.f32 %v4573_v30, %v3745_v10  ;;  %v1211_v39 = vsel %vm1183_vm2, %v1078_v6, -inf  ;;  %v954_v52 = vmul.f32 %v4504_v28, %v6986_v54  ;;  %v395_v36 = vmul.f32 %v4573_v30, %v3751_v13 }
 0x13d   :  { %1352 = vmax.xlane.f32.xlu0 %v1205_v53  ;;  %v398_v5 = vmul.f32 %v4573_v30, %v3755_v15  ;;  %v1214_v33 = vsel %vm1183_vm2, %v1081_v25, -inf  ;;  %v739_v32 = vadd.f32 %v7009_v22, %v394_v26  ;;  %v397_v4 = vmul.f32 %v4573_v30, %v3749_v12  ;;  %v7010_v53 = vld [vmem:[#allocation133_spill] sm:$0xff]  ;;  %v7011_v25 = vld [vmem:[#allocation50_spill] sm:$0xff] }
 0x13e   :  { %v400_v23 = vmul.f32 %v4573_v30, %v3759_v17  ;;  %v1213_v48 = vsel %vm1183_vm2, %v1080_v8, -inf  ;;  %v1083_v31 = vadd.f32 %v955_v58, %v737_v44  ;;  %v957_v0 = vmul.f32 %v4509_v47, %v3816_v51  ;;  %v7013_v44 = vld [vmem:[#allocation64_spill] sm:$0xff] }
 0x13f   :  { %v738_v7 = vadd.f32 %v7010_v53, %v393_v46  ;;  %v1082_v6 = vadd.f32 %v954_v52, %v736_v18  ;;  %v956_v45 = vmul.f32 %v4504_v28, %v6993_v41  ;;  %v741_v26 = vadd.f32 %v7011_v25, %v396_v49  ;;  %v7014_v28 = vld [vmem:[#allocation51_spill] sm:$0xff]  ;;  %v7015_v49 = vld [vmem:[#allocation78_spill] sm:$0xff] }
 0x140   :  { %1362 = vmax.xlane.f32.xlu1 %v1210_v40  ;;  %v399_v34 = vmul.f32 %v4573_v30, %v3753_v14  ;;  %v7012_v40 = vld [vmem:[#allocation38_spill] sm:$0xff]  ;;  %v743_v58 = vadd.f32 %v7013_v44, %v398_v5  ;;  %v402_v22 = vmul.f32 %v4573_v30, %v3763_v19  ;;  %v1085_v46 = vadd.f32 %v957_v0, %v739_v32 }
 0x141   :  { %1356 = vmax.xlane.f32.xlu0 %v1207_v43  ;;  %v959_v43 = vmul.f32 %v4509_v47, %v3822_v56  ;;  %v740_v8 = vadd.f32 %v7012_v40, %v395_v36  ;;  %v958_v18 = vmul.f32 %v4509_v47, %v3814_v50  ;;  %v742_v52 = vadd.f32 %v7014_v28, %v397_v4 }
 0x142   :  { %v745_v53 = vadd.f32 %v7015_v49, %v400_v23  ;;  %v1216_v25 = vsel %vm1183_vm2, %v1083_v31, -inf  ;;  %v1084_v2 = vadd.f32 %v956_v45, %v738_v7  ;;  %v961_v36 = vmul.f32 %v4509_v47, %v3828_v62  ;;  %v7016_v23 = vld [vmem:[#allocation65_spill] sm:$0xff]  ;;  %v7017_v45 = vld [vmem:[#allocation94_spill] sm:$0xff] }
 0x143   :  { %v401_v5 = vmul.f32 %v4573_v30, %v3757_v16  ;;  %v1087_v32 = vadd.f32 %v959_v43, %v741_v26  ;;  %v960_v0 = vmul.f32 %v4509_v47, %v3820_v55  ;;  %v963_v4 = vmul.f32 %v4509_v47, %v3850_v35 }
 0x144   :  { %1366 = vmax.xlane.f32.xlu1 %v1212_v20  ;;  %v1215_v20 = vsel %vm1183_vm2, %v1082_v6, -inf  ;;  %v1086_v31 = vadd.f32 %v958_v18, %v740_v8  ;;  %v1089_v7 = vadd.f32 %v961_v36, %v743_v58  ;;  %v747_v40 = vadd.f32 %v7017_v45, %v402_v22  ;;  %v7018_v8 = vld [vmem:[#allocation79_spill] sm:$0xff]  ;;  %v7019_v18 = vld [vmem:[#allocation18_spill] sm:$0xff] }
 0x145   :  { %1360 = vmax.xlane.f32.xlu0 %v1209_v37  ;;  %v744_v37 = vadd.f32 %v7016_v23, %v399_v34  ;;  %v1088_v44 = vadd.f32 %v960_v0, %v742_v52  ;;  %v1091_v28 = vadd.f32 %v963_v4, %v745_v53  ;;  %v962_v26 = vmul.f32 %v4509_v47, %v3826_v61  ;;  %v7021_v0 = vld [vmem:[#allocation19_spill] sm:$0xff]  ;;  %v7022_v23 = vld [vmem:[#allocation109_spill] sm:$0xff] }
 0x146   :  { %v404_v43 = vmul.f32 %v4573_v30, %v3767_v21  ;;  %v1218_v34 = vsel %vm1183_vm2, %v1085_v46, -inf  ;;  %v965_v6 = vmul.f32 %v4509_v47, %v3891_v59  ;;  %v746_v58 = vadd.f32 %v7018_v8, %v401_v5 }
 0x147   :  { %v403_v22 = vmul.f32 %v4573_v30, %v7019_v18  ;;  %v1217_v52 = vsel %vm1183_vm2, %v1084_v2, -inf  ;;  %v1220_v49 = vsel %vm1183_vm2, %v1087_v32, -inf  ;;  %v1090_v53 = vadd.f32 %v962_v26, %v744_v37 }
 0x148   :  { %1370 = vmax.xlane.f32.xlu1 %v1214_v33  ;;  %v1219_v46 = vsel %vm1183_vm2, %v1086_v31, -inf  ;;  %v1093_v36 = vadd.f32 %v965_v6, %v747_v40  ;;  %v964_v5 = vmul.f32 %v4509_v47, %v6970_v27  ;;  %v405_v4 = vmul.f32 %v4573_v30, %v7021_v0 }
 0x149   :  { %1364 = vmax.xlane.f32.xlu0 %v1211_v39  ;;  %v7020_v39 = vld [vmem:[#allocation21_spill] sm:$0xff]  ;;  %v1222_v2 = vsel %vm1183_vm2, %v1089_v7, -inf  ;;  %v749_v45 = vadd.f32 %v7022_v23, %v404_v43  ;;  %v408_v32 = vmul.f32 %v4573_v30, %v6972_v24  ;;  %v407_v37 = vmul.f32 %v4573_v30, %v6978_v63  ;;  %v7023_v7 = vld [vmem:[#allocation95_spill] sm:$0xff]  ;;  %v7028_v63 = vld [vmem:[#allocation122_spill] sm:$0xff] }
 0x14a   :  { %v406_v33 = vmul.f32 %v4573_v30, %v7020_v39  ;;  %v4772_v31 = vsel %vm1183_vm2, %v1088_v44, -inf  ;;  %v4776_v40 = vsel %vm1183_vm2, %v1091_v28, -inf  ;;  %v1092_v26 = vadd.f32 %v964_v5, %v746_v58  ;;  %v7025_v23 = vld [vmem:[#allocation105_spill] sm:$0xff]  ;;  %v7026_v58 = vld [vmem:[#allocation110_spill] sm:$0xff] }
 0x14b   :  { %v748_v6 = vadd.f32 %v7023_v7, %v403_v22  ;;  %v4781_v43 = vsel %vm1183_vm2, %v1090_v53, -inf  ;;  %v967_v8 = vmul.f32 %v4509_v47, %v6968_v3  ;;  %v410_v44 = vmul.f32 %v7025_v23, %v3747_v11 }
 0x14c   :  { %1374 = vmax.xlane.f32.xlu1 %v1216_v25  ;;  %v4790_v29 = vsel %vm1183_vm2, %v1093_v36, -inf  ;;  %v966_v28 = vmul.f32 %v4509_v47, %v6977_v42  ;;  %v750_v22 = vadd.f32 %v7026_v58, %v405_v4  ;;  %v409_v53 = vmul.f32 %v4573_v30, %v6987_v1 }
 0x14d   :  { %1368 = vmax.xlane.f32.xlu0 %v1213_v48  ;;  %v7024_v48 = vld [vmem:[#allocation121_spill] sm:$0xff]  ;;  %v1095_v5 = vadd.f32 %v967_v8, %v749_v45  ;;  %v969_v7 = vmul.f32 %v4509_v47, %v6975_v57  ;;  %v752_v24 = vadd.f32 %v7028_v63, %v407_v37  ;;  %v4803_v36 = vsel %vm1183_vm2, %v1092_v26, -inf  ;;  %v7030_v37 = vld [vmem:[#allocation116_spill] sm:$0xff] }
 0x14e   :  { %v751_v25 = vadd.f32 %v7024_v48, %v406_v33  ;;  %v7027_v33 = vld [vmem:[#allocation134_spill] sm:$0xff]  ;;  %v1094_v0 = vadd.f32 %v966_v28, %v748_v6  ;;  %v968_v4 = vmul.f32 %v4509_v47, %v6984_v60  ;;  %v412_v30 = vmul.f32 %v7025_v23, %v3745_v10  ;;  %v7031_v6 = vld [vmem:[#allocation135_spill] sm:$0xff] }
 0x14f   :  { %v753_v48 = vadd.f32 %v7027_v33, %v408_v32  ;;  %v971_v8 = vmul.f32 %v4509_v47, %v6981_v9  ;;  %v970_v63 = vmul.f32 %v4509_v47, %v6986_v54  ;;  %v973_v26 = vmul.f32 %v7030_v37, %v3816_v51 }
 0x150   :  { %1378 = vmax.xlane.f32.xlu1 %v1218_v34  ;;  %v1097_v45 = vadd.f32 %v969_v7, %v751_v25  ;;  %v1096_v32 = vadd.f32 %v968_v4, %v750_v22  ;;  %v754_v28 = vadd.f32 %v7031_v6, %v409_v53  ;;  %v411_v58 = vmul.f32 %v7025_v23, %v3751_v13  ;;  %v7032_v22 = vld [vmem:[#allocation52_spill] sm:$0xff] }
 0x151   :  { %1372 = vmax.xlane.f32.xlu0 %v1215_v20  ;;  %v7029_v20 = vld [vmem:[#allocation39_spill] sm:$0xff]  ;;  %v1099_v33 = vadd.f32 %v971_v8, %v753_v48  ;;  %v1098_v1 = vadd.f32 %v970_v63, %v752_v24  ;;  %v972_v25 = vmul.f32 %v4509_v47, %v6993_v41  ;;  %v414_v7 = vmul.f32 %v7025_v23, %v3755_v15  ;;  %v7033_v63 = vld [vmem:[#allocation41_spill] sm:$0xff]  ;;  %v7040_v41 = vld [vmem:[#allocation40_spill] sm:$0xff] }
 0x152   :  { %v755_v34 = vadd.f32 %v7029_v20, %v410_v44  ;;  %v4825_v44 = vsel %vm1183_vm2, %v1095_v5, -inf  ;;  %v757_v4 = vadd.f32 %v7032_v22, %v412_v30  ;;  %v413_v53 = vmul.f32 %v7025_v23, %v3749_v12  ;;  %v7036_v22 = vld [vmem:[#allocation80_spill] sm:$0xff] }
 0x153   :  { %v416_v24 = vmul.f32 %v7025_v23, %v3759_v17  ;;  %v4834_v47 = vsel %vm1183_vm2, %v1094_v0, -inf  ;;  %v415_v5 = vmul.f32 %v7025_v23, %v3753_v14  ;;  %v4844_v48 = vsel %vm1183_vm2, %v1096_v32, -inf }
 0x154   :  { %1382 = vmax.xlane.f32.xlu1 %v1220_v49  ;;  %v1101_v49 = vadd.f32 %v973_v26, %v755_v34  ;;  %v1100_v30 = vadd.f32 %v972_v25, %v754_v28  ;;  %v975_v8 = vmul.f32 %v7030_v37, %v3822_v56  ;;  %v756_v20 = vadd.f32 %v7033_v63, %v411_v58  ;;  %v7034_v34 = vld [vmem:[#allocation66_spill] sm:$0xff]  ;;  %v7035_v58 = vld [vmem:[#allocation53_spill] sm:$0xff] }
 0x155   :  { %1376 = vmax.xlane.f32.xlu0 %v1217_v52  ;;  %v4838_v52 = vsel %vm1183_vm2, %v1097_v45, -inf  ;;  %v4851_v0 = vsel %vm1183_vm2, %v1099_v33, -inf  ;;  %v974_v45 = vmul.f32 %v7030_v37, %v3814_v50  ;;  %v759_v26 = vadd.f32 %v7034_v34, %v414_v7 }
 0x156   :  { %v418_v6 = vmul.f32 %v7025_v23, %v3763_v19  ;;  %v4860_v32 = vsel %vm1183_vm2, %v1098_v1, -inf  ;;  %v1103_v28 = vadd.f32 %v975_v8, %v757_v4  ;;  %v758_v25 = vadd.f32 %v7035_v58, %v413_v53  ;;  %v7039_v58 = vld [vmem:[#allocation96_spill] sm:$0xff] }
 0x157   :  { %v761_v33 = vadd.f32 %v7036_v22, %v416_v24  ;;  %v4866_v63 = vsel %vm1183_vm2, %v1101_v49, -inf  ;;  %v977_v7 = vmul.f32 %v7030_v37, %v3828_v62  ;;  %v4875_v1 = vsel %vm1183_vm2, %v1100_v30, -inf }
 0x158   :  { %1386 = vmax.xlane.f32.xlu1 %v1222_v2  ;;  %v7037_v2 = vld [vmem:[#allocation67_spill] sm:$0xff]  ;;  %7038 = vst [vmem:[#allocation117_spill] sm:$0xff] %v4875_v1  ;;  %v1102_v4 = vadd.f32 %v974_v45, %v756_v20  ;;  %v979_v53 = vmul.f32 %v7030_v37, %v3850_v35  ;;  %v417_v24 = vmul.f32 %v7025_v23, %v3757_v16  ;;  %v4890_v30 = vsel %vm1183_vm2, %v1103_v28, -inf  ;;  %v7043_v1 = vld [vmem:[#allocation81_spill] sm:$0xff] }
 0x159   :  { %1380 = vmax.xlane.f32.xlu0 %v1219_v46  ;;  %v976_v46 = vmul.f32 %v7030_v37, %v3820_v55  ;;  %v760_v34 = vadd.f32 %v7037_v2, %v415_v5  ;;  %v1105_v49 = vadd.f32 %v977_v7, %v759_v26  ;;  %v978_v8 = vmul.f32 %v7030_v37, %v3826_v61  ;;  %v7041_v2 = vld [vmem:[#allocation42_spill] sm:$0xff] }
 0x15a   :  { %v763_v22 = vadd.f32 %v7039_v58, %v418_v6  ;;  %v426_v5 = vmul.f32 %v7040_v41, %v3747_v11  ;;  %v4892_v45 = vadd.f32 %v979_v53, %v761_v33  ;;  %v981_v26 = vmul.f32 %v7030_v37, %v3891_v59 }
 0x15b   :  { %v1104_v20 = vadd.f32 %v976_v46, %v758_v25  ;;  %v4896_v7 = vadd.f32 %v978_v8, %v760_v34  ;;  %v980_v6 = vmul.f32 %v7030_v37, %v6970_v27  ;;  %v762_v54 = vadd.f32 %v7043_v1, %v417_v24  ;;  %v7046_v8 = vld [vmem:[#allocation54_spill] sm:$0xff] }
 0x15c   :  { %1390 = vmax.xlane.f32.xlu1 %v4776_v40  ;;  %v771_v58 = vadd.f32 %v7041_v2, %v426_v5  ;;  %v420_v28 = vmul.f32 %v7025_v23, %v3767_v21  ;;  %v4908_v25 = vmul.f32 %v7030_v37, %v6968_v3  ;;  %v428_v33 = vmul.f32 %v7040_v41, %v3745_v10 }
 0x15d   :  { %1384 = vmax.xlane.f32.xlu0 %v4772_v31  ;;  %v7042_v31 = vld [vmem:[#allocation56_spill] sm:$0xff]  ;;  %v4912_v46 = vadd.f32 %v981_v26, %v763_v22  ;;  %v419_v34 = vmul.f32 %v7025_v23, %v7019_v18  ;;  %v427_v1 = vmul.f32 %v7040_v41, %v3751_v13  ;;  %v4924_v24 = vsel %vm1183_vm2, %v1102_v4, -inf  ;;  %v7051_v13 = vld [vmem:[#allocation57_spill] sm:$0xff] }
 0x15e   :  { %v989_v40 = vmul.f32 %v7042_v31, %v3816_v51  ;;  %7045 = vst [vmem:[#allocation48_spill] sm:$0xff] %v4924_v24  ;;  %v773_v5 = vadd.f32 %v7046_v8, %v428_v33  ;;  %v991_v22 = vmul.f32 %v7042_v31, %v3822_v56  ;;  %v430_v26 = vmul.f32 %v7040_v41, %v3755_v15  ;;  %v7049_v8 = vld [vmem:[#allocation68_spill] sm:$0xff] }
 0x15f   :  { %v4933_v2 = vmul.f32 %v7030_v37, %v6977_v42  ;;  %v429_v4 = vmul.f32 %v7040_v41, %v3749_v12  ;;  %v993_v24 = vmul.f32 %v7042_v31, %v3828_v62 }
 0x160   :  { %v4916_v53 = vadd.f32 %v989_v40, %v771_v58  ;;  %1394 = vmax.xlane.f32.xlu1 %v4790_v29  ;;  %v7047_v58 = vld [vmem:[#allocation43_spill] sm:$0xff]  ;;  %v990_v29 = vmul.f32 %v7042_v31, %v3814_v50  ;;  %v4940_v40 = vadd.f32 %v980_v6, %v762_v54  ;;  %v4942_v33 = vadd.f32 %v991_v22, %v773_v5 }
 0x161   :  { %1388 = vmax.xlane.f32.xlu0 %v4781_v43  ;;  %v772_v43 = vadd.f32 %v7047_v58, %v427_v1  ;;  %v774_v56 = vadd.f32 %v7051_v13, %v429_v4  ;;  %v992_v1 = vmul.f32 %v7042_v31, %v3820_v55  ;;  %v432_v58 = vmul.f32 %v7040_v41, %v3759_v17  ;;  %v7052_v6 = vld [vmem:[#allocation111_spill] sm:$0xff]  ;;  %v7056_v4 = vld [vmem:[#allocation69_spill] sm:$0xff] }
 0x162   :  { %7044 = vst [vmem:[#allocation35_spill] sm:$0xff] %v4916_v53  ;;  %7048 = vst [vmem:[#allocation36_spill] sm:$0xff] %v4942_v33  ;;  %v775_v53 = vadd.f32 %v7049_v8, %v430_v26  ;;  %v4958_v54 = vsel %vm1183_vm2, %v1105_v49, -inf  ;;  %v765_v5 = vadd.f32 %v7052_v6, %v420_v28  ;;  %v431_v13 = vmul.f32 %v7040_v41, %v3753_v14  ;;  %v7058_v8 = vld [vmem:[#allocation98_spill] sm:$0xff] }
 0x163   :  { %v4947_v15 = vadd.f32 %v990_v29, %v772_v43  ;;  %v4965_v26 = vadd.f32 %v992_v1, %v774_v56  ;;  %v7055_v43 = vld [vmem:[#allocation82_spill] sm:$0xff]  ;;  %v422_v49 = vmul.f32 %v7025_v23, %v7020_v39  ;;  %v433_v56 = vmul.f32 %v7040_v41, %v3757_v16 }
 0x164   :  { %1398 = vmax.xlane.f32.xlu1 %v4825_v44  ;;  %v4961_v22 = vadd.f32 %v993_v24, %v775_v53  ;;  %v777_v29 = vadd.f32 %v7055_v43, %v432_v58  ;;  %v434_v44 = vmul.f32 %v7040_v41, %v3763_v19  ;;  %v776_v28 = vadd.f32 %v7056_v4, %v431_v13  ;;  %v7061_v4 = vld [vmem:[#allocation97_spill] sm:$0xff] }
 0x165   :  { %7050 = vst [vmem:[#allocation61_spill] sm:$0xff] %v4947_v15  ;;  %1392 = vmax.xlane.f32.xlu0 %v4803_v36  ;;  %7054 = vst [vmem:[#allocation76_spill] sm:$0xff] %v4965_v26  ;;  %v995_v36 = vmul.f32 %v7042_v31, %v3850_v35  ;;  %v994_v53 = vmul.f32 %v7042_v31, %v3826_v61  ;;  %v997_v58 = vmul.f32 %v7042_v31, %v3891_v59  ;;  %v7072_v15 = vld [vmem:[#allocation114_spill] sm:$0xff] }
 0x166   :  { %7053 = vst [vmem:[#allocation49_spill] sm:$0xff] %v4961_v22  ;;  %v779_v1 = vadd.f32 %v7058_v8, %v434_v44  ;;  %v996_v6 = vmul.f32 %v7042_v31, %v6970_v27  ;;  %v4990_v13 = vsel %vm1183_vm2, %v1104_v20, -inf  ;;  %v436_v44 = vmul.f32 %v7040_v41, %v3767_v21  ;;  %v7063_v20 = vld [vmem:[#allocation19_spill] sm:$0xff] }
 0x167   :  { %v4979_v24 = vadd.f32 %v995_v36, %v777_v29  ;;  %v4992_v43 = vadd.f32 %v994_v53, %v776_v28  ;;  %v7060_v29 = vld [vmem:[#allocation83_spill] sm:$0xff]  ;;  %v764_v8 = vadd.f32 %v7061_v4, %v419_v34  ;;  %v421_v28 = vmul.f32 %v7025_v23, %v7063_v20 }
 0x168   :  { %1402 = vmax.xlane.f32.xlu1 %v4838_v52  ;;  %v778_v36 = vadd.f32 %v7060_v29, %v433_v56  ;;  %v435_v52 = vmul.f32 %v7040_v41, %v7019_v18  ;;  %v7065_v56 = vld [vmem:[#allocation113_spill] sm:$0xff]  ;;  %v5015_v34 = vmul.f32 %v7030_v37, %v6984_v60  ;;  %v7066_v4 = vld [vmem:[#allocation99_spill] sm:$0xff] }
 0x169   :  { %7057 = vst [vmem:[#allocation63_spill] sm:$0xff] %v4979_v24  ;;  %1396 = vmax.xlane.f32.xlu0 %v4834_v47  ;;  %7059 = vst [vmem:[#allocation91_spill] sm:$0xff] %v4992_v43  ;;  %v5000_v24 = vmul.f32 %v7030_v37, %v6975_v57  ;;  %v5002_v47 = vadd.f32 %v997_v58, %v779_v1  ;;  %v781_v29 = vadd.f32 %v7065_v56, %v436_v44 }
 0x16a   :  { %v5008_v53 = vadd.f32 %v996_v6, %v778_v36  ;;  %v999_v43 = vmul.f32 %v7042_v31, %v6968_v3  ;;  %v780_v1 = vadd.f32 %v7066_v4, %v435_v52  ;;  %v998_v58 = vmul.f32 %v7042_v31, %v6977_v42  ;;  %v7069_v4 = vld [vmem:[#allocation125_spill] sm:$0xff] }
 0x16b   :  { %7062 = vst [vmem:[#allocation77_spill] sm:$0xff] %v5002_v47  ;;  %v438_v47 = vmul.f32 %v7040_v41, %v7020_v39  ;;  %v5027_v6 = vsel %vm1183_vm2, %v4892_v45, -inf  ;;  %v5030_v36 = vadd.f32 %v4908_v25, %v765_v5  ;;  %v437_v52 = vmul.f32 %v7040_v41, %v7063_v20  ;;  %v7071_v45 = vld [vmem:[#allocation123_spill] sm:$0xff] }
 0x16c   :  { %7064 = vst [vmem:[#allocation106_spill] sm:$0xff] %v5008_v53  ;;  %1406 = vmax.xlane.f32.xlu1 %v4851_v0  ;;  %v5032_v44 = vadd.f32 %v999_v43, %v781_v29  ;;  %v5036_v56 = vadd.f32 %v998_v58, %v780_v1  ;;  %v7070_v0 = vld [vmem:[#allocation23_spill] sm:$0xff]  ;;  %v767_v22 = vadd.f32 %v7071_v45, %v422_v49  ;;  %v7073_v43 = vld [vmem:[#allocation20_spill] sm:$0xff]  ;;  %v7075_v58 = vld [vmem:[#allocation138_spill] sm:$0xff] }
 0x16d   :  { %1400 = vmax.xlane.f32.xlu0 %v4844_v48  ;;  %v783_v53 = vadd.f32 %v7069_v4, %v438_v47  ;;  %v1001_v48 = vmul.f32 %v7042_v31, %v6975_v57  ;;  %v440_v26 = vmul.f32 %v7040_v41, %v7070_v0  ;;  %v782_v25 = vadd.f32 %v7072_v15, %v437_v52 }
 0x16e   :  { %7067 = vst [vmem:[#allocation93_spill] sm:$0xff] %v5032_v44  ;;  %7068 = vst [vmem:[#allocation118_spill] sm:$0xff] %v5036_v56  ;;  %v1000_v5 = vmul.f32 %v7042_v31, %v6984_v60  ;;  %v439_v29 = vmul.f32 %v7040_v41, %v7073_v43  ;;  %v1003_v4 = vmul.f32 %v7042_v31, %v6981_v9  ;;  %v7076_v56 = vld [vmem:[#allocation89_spill] sm:$0xff]  ;;  %v5061_v15 = vsel %vm1183_vm2, %v4896_v7, -inf }
 0x16f   :  { %v5049_v1 = vadd.f32 %v1001_v48, %v783_v53  ;;  %v785_v47 = vadd.f32 %v7075_v58, %v440_v26  ;;  %v442_v44 = vmul.f32 %v7076_v56, %v3747_v11  ;;  %v7078_v53 = vld [vmem:[#allocation126_spill] sm:$0xff]  ;;  %v7079_v26 = vld [vmem:[#allocation71_spill] sm:$0xff]  ;;  %v7081_v58 = vld [vmem:[#allocation44_spill] sm:$0xff]  ;;  %v5076_v7 = vadd.f32 %v4933_v2, %v764_v8 }
 0x170   :  { %1410 = vmax.xlane.f32.xlu1 %v4866_v63  ;;  %v5063_v49 = vadd.f32 %v1000_v5, %v782_v25  ;;  %v784_v52 = vadd.f32 %v7078_v53, %v439_v29  ;;  %v1002_v48 = vmul.f32 %v7042_v31, %v7079_v26  ;;  %v7083_v63 = vld [vmem:[#allocation22_spill] sm:$0xff]  ;;  %v424_v25 = vmul.f32 %v7025_v23, %v7070_v0  ;;  %v7087_v53 = vld [vmem:[#allocation139_spill] sm:$0xff] }
 0x171   :  { %7074 = vst [vmem:[#allocation108_spill] sm:$0xff] %v5049_v1  ;;  %1404 = vmax.xlane.f32.xlu0 %v4860_v32  ;;  %v5068_v45 = vadd.f32 %v1003_v4, %v785_v47  ;;  %v787_v1 = vadd.f32 %v7081_v58, %v442_v44  ;;  %v7082_v32 = vld [vmem:[#allocation90_spill] sm:$0xff]  ;;  %v441_v11 = vmul.f32 %v7040_v41, %v7083_v63  ;;  %v7085_v47 = vld [vmem:[#allocation112_spill] sm:$0xff]  ;;  %v1242_v2 = vsel %vm1183_vm2, %v4912_v46, -inf }
 0x172   :  { %7077 = vst [vmem:[#allocation120_spill] sm:$0xff] %v5063_v49  ;;  %v1005_v33 = vmul.f32 %v7082_v32, %v3816_v51  ;;  %v5080_v5 = vadd.f32 %v1002_v48, %v784_v52  ;;  %v444_v29 = vmul.f32 %v7076_v56, %v3745_v10  ;;  %v766_v4 = vadd.f32 %v7085_v47, %v421_v28  ;;  %v7089_v49 = vld [vmem:[#allocation117_spill] sm:$0xff]  ;;  %v7090_v8 = vld [vmem:[#allocation58_spill] sm:$0xff]  ;;  %v7091_v48 = vld [vmem:[#allocation31_spill] sm:$0xff] }
 0x173   :  { %7080 = vst [vmem:[#allocation37_spill] sm:$0xff] %v5068_v45  ;;  %v786_v58 = vadd.f32 %v7087_v53, %v441_v11  ;;  %v7088_v45 = vld [vmem:[#allocation88_spill] sm:$0xff]  ;;  %v1007_v28 = vmul.f32 %v7082_v32, %v7091_v48  ;;  %v987_v11 = vmul.f32 %v7030_v37, %v6981_v9  ;;  %v1009_v48 = vmul.f32 %v7082_v32, %v3828_v62 }
 0x174   :  { %7084 = vst [vmem:[#allocation133_spill] sm:$0xff] %v5080_v5  ;;  %v5085_v44 = vadd.f32 %v1005_v33, %v787_v1  ;;  %v1004_v41 = vmul.f32 %v7042_v31, %v7088_v45  ;;  %1414 = vmax.xlane.f32.xlu1 %v4890_v30  ;;  %v789_v52 = vadd.f32 %v7090_v8, %v444_v29  ;;  %v7092_v33 = vld [vmem:[#allocation15_spill] sm:$0xff]  ;;  %v7094_v30 = vld [vmem:[#allocation16_spill] sm:$0xff]  ;;  %v7096_v29 = vld [vmem:[#allocation45_spill] sm:$0xff] }
 0x175   :  { %1408 = vmax.xlane.f32.xlu0 %v7089_v49  ;;  %v443_v1 = vmul.f32 %v7076_v56, %v7092_v33  ;;  %v423_v31 = vmul.f32 %v7025_v23, %v7073_v43  ;;  %v446_v47 = vmul.f32 %v7076_v56, %v7094_v30  ;;  %v1006_v8 = vmul.f32 %v7082_v32, %v3814_v50  ;;  %v7097_v5 = vld [vmem:[#allocation70_spill] sm:$0xff] }
 0x176   :  { %7086 = vst [vmem:[#allocation50_spill] sm:$0xff] %v5085_v44  ;;  %v5104_v49 = vadd.f32 %v1004_v41, %v786_v58  ;;  %v5108_v46 = vadd.f32 %v1007_v28, %v789_v52  ;;  %v445_v44 = vmul.f32 %v7076_v56, %v3749_v12  ;;  %v1008_v58 = vmul.f32 %v7082_v32, %v3820_v55  ;;  %v7098_v52 = vld [vmem:[#allocation48_spill] sm:$0xff] }
 0x177   :  { %v788_v53 = vadd.f32 %v7096_v29, %v443_v1  ;;  %v791_v33 = vadd.f32 %v7097_v5, %v446_v47  ;;  %v448_v41 = vmul.f32 %v7076_v56, %v3759_v17  ;;  %v1241_v28 = vsel %vm1183_vm2, %v4940_v40, -inf  ;;  %v7099_v5 = vld [vmem:[#allocation59_spill] sm:$0xff] }
 0x178   :  { %7093 = vst [vmem:[#allocation38_spill] sm:$0xff] %v5104_v49  ;;  %7095 = vst [vmem:[#allocation64_spill] sm:$0xff] %v5108_v46  ;;  %1418 = vmax.xlane.f32.xlu1 %v4958_v54  ;;  %v790_v47 = vadd.f32 %v7099_v5, %v445_v44  ;;  %v447_v29 = vmul.f32 %v7076_v56, %v3753_v14  ;;  %v7100_v49 = vld [vmem:[#allocation84_spill] sm:$0xff]  ;;  %v450_v54 = vmul.f32 %v7076_v56, %v3763_v19 }
 0x179   :  { %1412 = vmax.xlane.f32.xlu0 %v7098_v52  ;;  %v5127_v1 = vadd.f32 %v1006_v8, %v788_v53  ;;  %v5132_v46 = vadd.f32 %v1009_v48, %v791_v33  ;;  %v793_v55 = vadd.f32 %v7100_v49, %v448_v41  ;;  %v1011_v52 = vmul.f32 %v7082_v32, %v3850_v35  ;;  %v7101_v53 = vld [vmem:[#allocation74_spill] sm:$0xff]  ;;  %v7102_v48 = vld [vmem:[#allocation100_spill] sm:$0xff] }
 0x17a   :  { %v1113_v17 = vadd.f32 %v5000_v24, %v767_v22  ;;  %v5140_v40 = vadd.f32 %v1008_v58, %v790_v47  ;;  %v792_v8 = vadd.f32 %v7101_v53, %v447_v29  ;;  %v1010_v44 = vmul.f32 %v7082_v32, %v3826_v61  ;;  %v7103_v24 = vld [vmem:[#allocation136_spill] sm:$0xff] }
 0x17b   :  { %v5145_v5 = vadd.f32 %v1011_v52, %v793_v55  ;;  %v795_v33 = vadd.f32 %v7102_v48, %v450_v54  ;;  %v1013_v49 = vmul.f32 %v7082_v32, %v3891_v59  ;;  %v449_v41 = vmul.f32 %v7076_v56, %v3757_v16  ;;  %v7105_v54 = vld [vmem:[#allocation85_spill] sm:$0xff] }
 0x17c   :  { %1422 = vmax.xlane.f32.xlu1 %v5027_v6  ;;  %v1244_v22 = vsel %vm1183_vm2, %v5030_v36, -inf  ;;  %v769_v58 = vadd.f32 %v7103_v24, %v424_v25  ;;  %v5158_v55 = vadd.f32 %v1010_v44, %v792_v8  ;;  %v452_v47 = vmul.f32 %v7076_v56, %v3767_v21  ;;  %v7106_v36 = vld [vmem:[#allocation115_spill] sm:$0xff]  ;;  %v7107_v44 = vld [vmem:[#allocation124_spill] sm:$0xff] }
 0x17d   :  { %1416 = vmax.xlane.f32.xlu0 %v4990_v13  ;;  %v986_v29 = vmul.f32 %v7030_v37, %v7079_v26  ;;  %v5164_v52 = vadd.f32 %v1013_v49, %v795_v33  ;;  %v794_v13 = vadd.f32 %v7105_v54, %v449_v41  ;;  %v1012_v6 = vmul.f32 %v7082_v32, %v6970_v27  ;;  %v7108_v41 = vld [vmem:[#allocation101_spill] sm:$0xff] }
 0x17e   :  { %7104 = vst [vmem:[#allocation51_spill] sm:$0xff] %v5158_v55  ;;  %v1112_v53 = vadd.f32 %v5015_v34, %v766_v4  ;;  %v797_v48 = vadd.f32 %v7106_v36, %v452_v47  ;;  %v1015_v25 = vmul.f32 %v7082_v32, %v6968_v3  ;;  %v451_v8 = vmul.f32 %v7076_v56, %v7019_v18 }
 0x17f   :  { %v768_v24 = vadd.f32 %v7107_v44, %v423_v31  ;;  %v5176_v55 = vadd.f32 %v1012_v6, %v794_v13  ;;  %v1014_v33 = vmul.f32 %v7082_v32, %v6977_v42  ;;  %v454_v49 = vmul.f32 %v7076_v56, %v7020_v39  ;;  %v7109_v13 = vld [vmem:[#allocation127_spill] sm:$0xff] }
 0x180   :  { %1426 = vmax.xlane.f32.xlu1 %v1242_v2  ;;  %v1243_v34 = vsel %vm1183_vm2, %v5076_v7, -inf  ;;  %v5186_v4 = vadd.f32 %v1015_v25, %v797_v48  ;;  %v796_v47 = vadd.f32 %v7108_v41, %v451_v8  ;;  %v453_v31 = vmul.f32 %v7076_v56, %v7063_v20  ;;  %v7111_v48 = vld [vmem:[#allocation119_spill] sm:$0xff] }
 0x181   :  { %1420 = vmax.xlane.f32.xlu0 %v5061_v15  ;;  %v1115_v54 = vadd.f32 %v987_v11, %v769_v58  ;;  %v799_v6 = vadd.f32 %v7109_v13, %v454_v49  ;;  %v1017_v36 = vmul.f32 %v7082_v32, %v6975_v57  ;;  %v456_v15 = vmul.f32 %v7076_v56, %v7070_v0  ;;  %v7113_v11 = vld [vmem:[#allocation140_spill] sm:$0xff]  ;;  %v7116_v13 = vld [vmem:[#allocation55_spill] sm:$0xff] }
 0x182   :  { %v425_v2 = vmul.f32 %v7025_v23, %v7083_v63  ;;  %v5198_v7 = vadd.f32 %v1014_v33, %v796_v47  ;;  %v798_v25 = vadd.f32 %v7111_v48, %v453_v31  ;;  %v1016_v8 = vmul.f32 %v7082_v32, %v6984_v60  ;;  %v7115_v31 = vld [vmem:[#allocation14_spill] sm:$0xff] }
 0x183   :  { %v5203_v44 = vadd.f32 %v1017_v36, %v799_v6  ;;  %v801_v58 = vadd.f32 %v7113_v11, %v456_v15  ;;  %v1019_v49 = vmul.f32 %v7082_v32, %v6981_v9  ;;  %v455_v41 = vmul.f32 %v7076_v56, %v7073_v43  ;;  %v7118_v15 = vld [vmem:[#allocation128_spill] sm:$0xff] }
 0x184   :  { %7110 = vst [vmem:[#allocation78_spill] sm:$0xff] %v5198_v7  ;;  %1430 = vmax.xlane.f32.xlu1 %v1244_v22  ;;  %v1246_v23 = vsel %vm1183_vm2, %v1113_v17, -inf  ;;  %v1114_v33 = vadd.f32 %v986_v29, %v768_v24  ;;  %v5212_v47 = vadd.f32 %v1016_v8, %v798_v25  ;;  %v458_v6 = vmul.f32 %v7116_v13, %v7115_v31  ;;  %v7119_v22 = vld [vmem:[#allocation137_spill] sm:$0xff]  ;;  %v7120_v7 = vld [vmem:[#allocation46_spill] sm:$0xff]  ;;  %v7121_v29 = vld [vmem:[#allocation72_spill] sm:$0xff] }
 0x185   :  { %7112 = vst [vmem:[#allocation65_spill] sm:$0xff] %v5203_v44  ;;  %1424 = vmax.xlane.f32.xlu0 %v1241_v28  ;;  %v5216_v36 = vadd.f32 %v1019_v49, %v801_v58  ;;  %v800_v48 = vadd.f32 %v7118_v15, %v455_v41  ;;  %v1018_v11 = vmul.f32 %v7082_v32, %v7079_v26  ;;  %v7122_v58 = vld [vmem:[#allocation141_spill] sm:$0xff]  ;;  %v7123_v15 = vld [vmem:[#allocation31_spill] sm:$0xff] }
 0x186   :  { %7114 = vst [vmem:[#allocation94_spill] sm:$0xff] %v5212_v47  ;;  %v457_v28 = vmul.f32 %v7076_v56, %v7083_v63  ;;  %v770_v44 = vadd.f32 %v7119_v22, %v425_v2  ;;  %v803_v17 = vadd.f32 %v7120_v7, %v458_v6  ;;  %v1021_v24 = vmul.f32 %v7121_v29, %v3816_v51  ;;  %v7125_v7 = vld [vmem:[#allocation60_spill] sm:$0xff]  ;;  %v7126_v22 = vld [vmem:[#allocation15_spill] sm:$0xff]  ;;  %v7127_v47 = vld [vmem:[#allocation13_spill] sm:$0xff] }
 0x187   :  { %7117 = vst [vmem:[#allocation79_spill] sm:$0xff] %v5216_v36  ;;  %v460_v25 = vmul.f32 %v7116_v13, %v3745_v10  ;;  %v5229_v8 = vadd.f32 %v1018_v11, %v800_v48  ;;  %v1020_v41 = vmul.f32 %v7082_v32, %v7088_v45  ;;  %v1023_v56 = vmul.f32 %v7121_v29, %v7123_v15  ;;  %v7128_v48 = vld [vmem:[#allocation73_spill] sm:$0xff] }
 0x188   :  { %v802_v49 = vadd.f32 %v7122_v58, %v457_v28  ;;  %1434 = vmax.xlane.f32.xlu1 %v1246_v23  ;;  %v5236_v2 = vadd.f32 %v1021_v24, %v803_v17  ;;  %v459_v36 = vmul.f32 %v7116_v13, %v7126_v22  ;;  %v7129_v11 = vcombine.high %v7128_v48, %v7128_v48  ;;  %v7132_v24 = vld [vmem:[#allocation47_spill] sm:$0xff] }
 0x189   :  { %1428 = vmax.xlane.f32.xlu0 %v1243_v34  ;;  %v805_v6 = vadd.f32 %v7125_v7, %v460_v25  ;;  %v1245_v32 = vsel %vm1183_vm2, %v1112_v53, -inf  ;;  %v462_v34 = vmul.f32 %v7116_v13, %v7094_v30  ;;  %v988_v23 = vmul.f32 %v7030_v37, %v7088_v45 }
 0x18a   :  { %7124 = vst [vmem:[#allocation18_spill] sm:$0xff] %v5236_v2  ;;  %v5245_v28 = vrot.slane %v7129_v11, %v7127_v47  ;;  %v5249_v58 = vadd.f32 %v1020_v41, %v802_v49  ;;  %v804_v25 = vadd.f32 %v7132_v24, %v459_v36  ;;  %v1022_v7 = vmul.f32 %v7121_v29, %v3814_v50  ;;  %v7133_v11 = vld [vmem:[#allocation75_spill] sm:$0xff] }
 0x18b   :  { %v5255_v17 = vadd.f32 %v1023_v56, %v805_v6  ;;  %v1248_v48 = vsel %vm1183_vm2, %v1115_v54, -inf  ;;  %v807_v53 = vadd.f32 %v7133_v11, %v462_v34  ;;  %v1025_v49 = vmul.f32 %v7121_v29, %v3828_v62  ;;  %v7135_v6 = vld [vmem:[#allocation17_spill] sm:$0xff]  ;;  %v7137_v34 = vld [vmem:[#allocation62_spill] sm:$0xff] }
 0x18c   :  { %7130 = vst [vmem:[#allocation21_spill] sm:$0xff] %v5249_v58  ;;  %v461_v41 = vmul.f32 %v7116_v13, %v3749_v12  ;;  %1438 = vmax.xlane.f32.xlu1 %v1248_v48  ;;  %v1247_v37 = vsel %vm1183_vm2, %v1114_v33, -inf  ;;  %v1116_v36 = vadd.f32 %v988_v23, %v770_v44  ;;  %v5269_v56 = vadd.f32 %v1022_v7, %v804_v25  ;;  %v7139_v48 = vld [vmem:[#allocation35_spill] sm:$0xff]  ;;  %v7140_v44 = vld [vmem:[#allocation86_spill] sm:$0xff] }
 0x18d   :  { %7131 = vst [vmem:[#allocation109_spill] sm:$0xff] %v5255_v17  ;;  %1432 = vmax.xlane.f32.xlu0 %v1245_v32  ;;  %v464_v24 = vmul.f32 %v7116_v13, %v7135_v6  ;;  %v5273_v54 = vadd.f32 %v1025_v49, %v807_v53  ;;  %v7138_v17 = vld [vmem:[#allocation30_spill] sm:$0xff]  ;;  %v463_v32 = vmul.f32 %v7116_v13, %v3753_v14  ;;  %v1250_v33 = vsel %vm1183_vm2, %v7139_v48, -inf  ;;  %v7142_v49 = vld [vmem:[#allocation87_spill] sm:$0xff] }
 0x18e   :  { %7134 = vst [vmem:[#allocation95_spill] sm:$0xff] %v5269_v56  ;;  %v806_v11 = vadd.f32 %v7137_v34, %v461_v41  ;;  %v1024_v58 = vmul.f32 %v7121_v29, %v7138_v17  ;;  %v1027_v25 = vmul.f32 %v7121_v29, %v3850_v35  ;;  %v466_v7 = vmul.f32 %v7116_v13, %v3763_v19 }
 0x18f   :  { %7136 = vst [vmem:[#allocation121_spill] sm:$0xff] %v5273_v54  ;;  %v809_v23 = vadd.f32 %v7140_v44, %v464_v24  ;;  %v808_v41 = vadd.f32 %v7142_v49, %v463_v32  ;;  %v1026_v34 = vmul.f32 %v7121_v29, %v3826_v61  ;;  %v465_v54 = vmul.f32 %v7116_v13, %v3757_v16  ;;  %v7144_v24 = vld [vmem:[#allocation102_spill] sm:$0xff] }
 0x190   :  { %v5288_v53 = vadd.f32 %v1024_v58, %v806_v11  ;;  %1442 = vmax.xlane.f32.xlu1 %v1250_v33  ;;  %v811_v44 = vadd.f32 %v7144_v24, %v466_v7  ;;  %v1029_v56 = vmul.f32 %v7121_v29, %v3891_v59  ;;  %v7146_v58 = vld [vmem:[#allocation103_spill] sm:$0xff]  ;;  %v1028_v32 = vmul.f32 %v7121_v29, %v6970_v27 }
 0x191   :  { %1436 = vmax.xlane.f32.xlu0 %v1247_v37  ;;  %v5295_v48 = vadd.f32 %v1027_v25, %v809_v23  ;;  %v5300_v2 = vadd.f32 %v1026_v34, %v808_v41  ;;  %v810_v11 = vadd.f32 %v7146_v58, %v465_v54  ;;  %v468_v49 = vmul.f32 %v7116_v13, %v3767_v21  ;;  %v7147_v37 = vld [vmem:[#allocation32_spill] sm:$0xff]  ;;  %v7152_v58 = vld [vmem:[#allocation129_spill] sm:$0xff] }
 0x192   :  { %7141 = vst [vmem:[#allocation105_spill] sm:$0xff] %v5288_v53  ;;  %v7148_v33 = vcombine.high %v7147_v37, %v7147_v37  ;;  %v1249_v25 = vsel %vm1183_vm2, %v1116_v36, -inf  ;;  %v5315_v7 = vadd.f32 %v1029_v56, %v811_v44  ;;  %v467_v54 = vmul.f32 %v7116_v13, %v7019_v18  ;;  %v7150_v41 = vld [vmem:[#allocation36_spill] sm:$0xff]  ;;  %v7153_v37 = vld [vmem:[#allocation130_spill] sm:$0xff] }
 0x193   :  { %7143 = vst [vmem:[#allocation110_spill] sm:$0xff] %v5295_v48  ;;  %7145 = vst [vmem:[#allocation134_spill] sm:$0xff] %v5300_v2  ;;  %v1252_v34 = vsel %vm1183_vm2, %v7150_v41, -inf  ;;  %v5322_v24 = vadd.f32 %v1028_v32, %v810_v11  ;;  %v813_v2 = vadd.f32 %v7152_v58, %v468_v49  ;;  %v1030_v56 = vmul.f32 %v7121_v29, %v6977_v42  ;;  %v7155_v32 = vld [vmem:[#allocation49_spill] sm:$0xff] }
 0x194   :  { %v5311_v23 = vrot.slane %v7148_v33, %v7127_v47  ;;  %7149 = vst [vmem:[#allocation122_spill] sm:$0xff] %v5315_v7  ;;  %v1031_v47 = vmul.f32 %v7121_v29, %v6968_v3  ;;  %1446 = vmax.xlane.f32.xlu1 %v1252_v34  ;;  %v812_v36 = vadd.f32 %v7153_v37, %v467_v54  ;;  %v7154_v33 = vld [vmem:[#allocation61_spill] sm:$0xff]  ;;  %v1254_v49 = vsel %vm1183_vm2, %v7155_v32, -inf }
 0x195   :  { %7151 = vst [vmem:[#allocation39_spill] sm:$0xff] %v5322_v24  ;;  %1440 = vmax.xlane.f32.xlu0 %v1249_v25  ;;  %v470_v44 = vmul.f32 %v7116_v13, %v7020_v39  ;;  %v1251_v11 = vsel %vm1183_vm2, %v7154_v33, -inf  ;;  %v469_v25 = vmul.f32 %v7116_v13, %v7063_v20  ;;  %v7158_v34 = vld [vmem:[#allocation145_spill] sm:$0xff]  ;;  %v1033_v37 = vmul.f32 %v7121_v29, %v6975_v57  ;;  %v7159_v33 = vld [vmem:[#allocation142_spill] sm:$0xff] }
 0x196   :  { %v5338_v41 = vadd.f32 %v1031_v47, %v813_v2  ;;  %v5342_v54 = vadd.f32 %v1030_v56, %v812_v36  ;;  %v472_v24 = vmul.f32 %v7116_v13, %v7070_v0  ;;  %v1032_v32 = vmul.f32 %v7121_v29, %v6984_v60  ;;  %v7160_v36 = vld [vmem:[#allocation76_spill] sm:$0xff] }
 0x197   :  { %v815_v58 = vadd.f32 %v7158_v34, %v470_v44  ;;  %v814_v7 = vadd.f32 %v7159_v33, %v469_v25  ;;  %v1035_v2 = vmul.f32 %v7121_v29, %v6981_v9  ;;  %v471_v47 = vmul.f32 %v7116_v13, %v7073_v43  ;;  %v7161_v34 = vld [vmem:[#allocation149_spill] sm:$0xff] }
 0x198   :  { %7156 = vst [vmem:[#allocation116_spill] sm:$0xff] %v5338_v41  ;;  %7157 = vst [vmem:[#allocation135_spill] sm:$0xff] %v5342_v54  ;;  %1450 = vmax.xlane.f32.xlu1 %v1254_v49  ;;  %v1253_v56 = vsel %vm1183_vm2, %v7160_v36, -inf  ;;  %v817_v54 = vadd.f32 %v7161_v34, %v472_v24  ;;  %v474_v25 = vmul.f32 %v5311_v23, %v7115_v31  ;;  %v7162_v41 = vld [vmem:[#allocation146_spill] sm:$0xff]  ;;  %v7163_v49 = vld [vmem:[#allocation63_spill] sm:$0xff] }
 0x199   :  { %1444 = vmax.xlane.f32.xlu0 %v1251_v11  ;;  %v5359_v44 = vadd.f32 %v1033_v37, %v815_v58  ;;  %v5364_v33 = vadd.f32 %v1032_v32, %v814_v7  ;;  %v816_v48 = vadd.f32 %v7162_v41, %v471_v47  ;;  %v1034_v53 = vmul.f32 %v7121_v29, %v7079_v26  ;;  %v7164_v24 = vld [vmem:[#allocation92_spill] sm:$0xff]  ;;  %v7165_v41 = vld [vmem:[#allocation151_spill] sm:$0xff] }
 0x19a   :  { %v473_v11 = vmul.f32 %v7116_v13, %v7083_v63  ;;  %v1256_v58 = vsel %vm1183_vm2, %v7163_v49, -inf  ;;  %v5374_v37 = vadd.f32 %v1035_v2, %v817_v54  ;;  %v819_v36 = vadd.f32 %v7164_v24, %v474_v25  ;;  %v7166_v2 = vld [vmem:[#allocation25_spill] sm:$0xff]  ;;  %v7167_v25 = vld [vmem:[#allocation34_spill] sm:$0xff]  ;;  %v7170_v24 = vld [vmem:[#allocation91_spill] sm:$0xff] }
 0x19b   :  { %v1037_v31 = vmul.f32 %v5245_v28, %v3816_v51  ;;  %v5379_v7 = vadd.f32 %v1034_v53, %v816_v48  ;;  %v1036_v47 = vmul.f32 %v7121_v29, %v7088_v45  ;;  %v476_v13 = vmul.f32 %v5311_v23, %v3745_v10  ;;  %v7168_v29 = vld [vmem:[#allocation104_spill] sm:$0xff] }
 0x19c   :  { %v818_v32 = vadd.f32 %v7165_v41, %v473_v11  ;;  %1454 = vmax.xlane.f32.xlu1 %v1256_v58  ;;  %v475_v54 = vmul.f32 %v5311_v23, %v7126_v22  ;;  %v701_v51 = vmul.f32 %v7167_v25, %v7166_v2  ;;  %v1039_v10 = vmul.f32 %v5245_v28, %v7123_v15 }
 0x19d   :  { %1448 = vmax.xlane.f32.xlu0 %v1253_v56  ;;  %v5386_v34 = vadd.f32 %v1037_v31, %v819_v36  ;;  %v5392_v53 = vpop.xlane.xlu1 %1316  ;;  %v821_v49 = vadd.f32 %v7168_v29, %v476_v13  ;;  %v7169_v56 = vld [vmem:[#allocation24_spill] sm:$0xff]  ;;  %v1255_v22 = vsel %vm1183_vm2, %v7170_v24, -inf  ;;  %v7171_v36 = vld [vmem:[#allocation107_spill] sm:$0xff]  ;;  %v1038_v41 = vmul.f32 %v5245_v28, %v3814_v50 }
 0x19e   :  { %v5394_v48 = vpop.xlane.xlu0 %1314  ;;  %v5396_v11 = vadd.f32 %v1036_v47, %v818_v32  ;;  %v5403_v58 = vmul.f32 %v7167_v25, %v7169_v56  ;;  %v820_v31 = vadd.f32 %v7171_v36, %v475_v54  ;;  %v478_v32 = vmul.f32 %v5311_v23, %v7094_v30  ;;  %v7172_v47 = vld [vmem:[#allocation77_spill] sm:$0xff]  ;;  %v7173_v50 = vld [vmem:[#allocation131_spill] sm:$0xff] }
 0x19f   :  { %v1258_v15 = vsel %vm1183_vm2, %v7172_v47, -inf  ;;  %v5416_v13 = vadd.f32 %v1039_v10, %v821_v49  ;;  %v1041_v2 = vmul.f32 %v5245_v28, %v3828_v62  ;;  %v477_v29 = vmul.f32 %v5311_v23, %v3749_v12  ;;  %v7174_v49 = vld [vmem:[#allocation106_spill] sm:$0xff]  ;;  %v7175_v10 = vld [vmem:[#allocation132_spill] sm:$0xff] }
 0x1a0   :  { %1458 = vmax.xlane.f32.xlu1 %v1258_v15  ;;  %v5422_v54 = vadd.f32 %v1038_v41, %v820_v31  ;;  %v823_v56 = vadd.f32 %v7173_v50, %v478_v32  ;;  %v480_v30 = vmul.f32 %v5311_v23, %v7135_v6  ;;  %v1257_v62 = vsel %vm1183_vm2, %v7174_v49, -inf  ;;  %v7176_v31 = vld [vmem:[#allocation93_spill] sm:$0xff]  ;;  %v7177_v32 = vld [vmem:[#allocation143_spill] sm:$0xff] }
 0x1a1   :  { %1452 = vmax.xlane.f32.xlu0 %v1255_v22  ;;  %v5427_v24 = vpop.xlane.xlu1 %1322  ;;  %v822_v47 = vadd.f32 %v7175_v10, %v477_v29  ;;  %v1040_v12 = vmul.f32 %v5245_v28, %v7138_v17  ;;  %v479_v22 = vmul.f32 %v5311_v23, %v3753_v14  ;;  %v1260_v6 = vsel %vm1183_vm2, %v7176_v31, -inf  ;;  %v7178_v29 = vld [vmem:[#allocation144_spill] sm:$0xff]  ;;  %v7179_v31 = vld [vmem:[#allocation118_spill] sm:$0xff] }
 0x1a2   :  { %v5429_v36 = vpop.xlane.xlu0 %1318  ;;  %v5442_v41 = vadd.f32 %v1041_v2, %v823_v56  ;;  %v825_v15 = vadd.f32 %v7177_v32, %v480_v30  ;;  %v1043_v50 = vmul.f32 %v5245_v28, %v3850_v35  ;;  %v1042_v17 = vmul.f32 %v5245_v28, %v3826_v61  ;;  %v7180_v30 = vld [vmem:[#allocation27_spill] sm:$0xff] }
 0x1a3   :  { %v5447_v49 = vadd.f32 %v1040_v12, %v822_v47  ;;  %v824_v10 = vadd.f32 %v7178_v29, %v479_v22  ;;  %v482_v14 = vmul.f32 %v5311_v23, %v3763_v19  ;;  %v1259_v2 = vsel %vm1183_vm2, %v7179_v31, -inf  ;;  %v7181_v19 = vld [vmem:[#allocation147_spill] sm:$0xff] }
 0x1a4   :  { %1462 = vmax.xlane.f32.xlu1 %v1260_v6  ;;  %v5457_v56 = vadd.f32 %v1043_v50, %v825_v15  ;;  %v481_v35 = vmul.f32 %v5311_v23, %v3757_v16  ;;  %v703_v47 = vmul.f32 %v7167_v25, %v7180_v30  ;;  %v1045_v6 = vmul.f32 %v5245_v28, %v3891_v59  ;;  %v7182_v15 = vld [vmem:[#allocation108_spill] sm:$0xff] }
 0x1a5   :  { %1456 = vmax.xlane.f32.xlu0 %v1257_v62  ;;  %v5463_v12 = vpop.xlane.xlu1 %1326  ;;  %v5467_v22 = vadd.f32 %v1042_v17, %v824_v10  ;;  %v827_v62 = vadd.f32 %v7181_v19, %v482_v14  ;;  %v484_v32 = vmul.f32 %v5311_v23, %v3767_v21  ;;  %v1262_v16 = vsel %vm1183_vm2, %v7182_v15, -inf  ;;  %v7183_v50 = vld [vmem:[#allocation148_spill] sm:$0xff] }
 0x1a6   :  { %v5465_v61 = vpop.xlane.xlu0 %1320  ;;  %v826_v29 = vadd.f32 %v7183_v50, %v481_v35  ;;  %v1044_v31 = vmul.f32 %v5245_v28, %v6970_v27  ;;  %v483_v10 = vmul.f32 %v5311_v23, %v7019_v18  ;;  %v1047_v59 = vmul.f32 %v5245_v28, %v6968_v3  ;;  %v7184_v35 = vld [vmem:[#allocation150_spill] sm:$0xff] }
 0x1a7   :  { %v5482_v17 = vadd.f32 %v1045_v6, %v827_v62  ;;  %v829_v14 = vadd.f32 %v701_v51, %v484_v32  ;;  %v1046_v21 = vmul.f32 %v5245_v28, %v6977_v42  ;;  %v486_v27 = vmul.f32 %v5311_v23, %v7020_v39  ;;  %v7185_v62 = vld [vmem:[#allocation29_spill] sm:$0xff]  ;;  %v7187_v32 = vld [vmem:[#allocation120_spill] sm:$0xff] }
 0x1a8   :  { %1466 = vmax.xlane.f32.xlu1 %v1262_v16  ;;  %v5488_v30 = vadd.f32 %v1044_v31, %v826_v29  ;;  %v828_v19 = vadd.f32 %v7184_v35, %v483_v10  ;;  %v485_v3 = vmul.f32 %v5311_v23, %v7063_v20  ;;  %v705_v42 = vmul.f32 %v7167_v25, %v7185_v62  ;;  %v7188_v31 = vld [vmem:[#allocation37_spill] sm:$0xff] }
 0x1a9   :  { %1460 = vmax.xlane.f32.xlu0 %v1259_v2  ;;  %v5493_v15 = vpop.xlane.xlu1 %1330  ;;  %v5497_v51 = vadd.f32 %v1047_v59, %v829_v14  ;;  %v7186_v2 = vld [vmem:[#allocation26_spill] sm:$0xff]  ;;  %v1261_v16 = vsel %vm1183_vm2, %v7187_v32, -inf  ;;  %v831_v50 = vadd.f32 %v703_v47, %v486_v27  ;;  %v1049_v29 = vmul.f32 %v5245_v28, %v6975_v57  ;;  %v7189_v57 = vld [vmem:[#allocation28_spill] sm:$0xff]  ;;  %v7190_v62 = vld [vmem:[#allocation133_spill] sm:$0xff] }
 0x1aa   :  { %v5495_v18 = vpop.xlane.xlu0 %1324  ;;  %v704_v6 = vmul.f32 %v7167_v25, %v7186_v2  ;;  %v5508_v39 = vadd.f32 %v1046_v21, %v828_v19  ;;  %v1264_v20 = vsel %vm1183_vm2, %v7188_v31, -inf  ;;  %v830_v10 = vadd.f32 %v5403_v58, %v485_v3  ;;  %v7191_v32 = vld [vmem:[#allocation50_spill] sm:$0xff] }
 0x1ab   :  { %v1048_v14 = vmul.f32 %v5245_v28, %v6984_v60  ;;  %v488_v59 = vmul.f32 %v5311_v23, %v7070_v0  ;;  %v5520_v21 = vadd.f32 %v1049_v29, %v831_v50  ;;  %v487_v47 = vmul.f32 %v5311_v23, %v7073_v43 }
 0x1ac   :  { %1470 = vmax.xlane.f32.xlu1 %v1264_v20  ;;  %v706_v35 = vmul.f32 %v7167_v25, %v7189_v57  ;;  %v1051_v0 = vmul.f32 %v5245_v28, %v6981_v9  ;;  %v489_v3 = vmul.f32 %v5311_v23, %v7083_v63  ;;  %v1263_v43 = vsel %vm1183_vm2, %v7190_v62, -inf  ;;  %v7193_v20 = vld [vmem:[#allocation64_spill] sm:$0xff] }
 0x1ad   :  { %1464 = vmax.xlane.f32.xlu0 %v1261_v16  ;;  %v5526_v19 = vpop.xlane.xlu1 %1334  ;;  %v5530_v58 = vadd.f32 %v1048_v14, %v830_v10  ;;  %v833_v60 = vadd.f32 %v705_v42, %v488_v59  ;;  %v832_v2 = vadd.f32 %v704_v6, %v487_v47  ;;  %v1050_v25 = vmul.f32 %v5245_v28, %v7079_v26  ;;  %v7192_v26 = vld [vmem:[#allocation38_spill] sm:$0xff] }
 0x1ae   :  { %v5528_v27 = vpop.xlane.xlu0 %1328  ;;  %v1266_v16 = vsel %vm1183_vm2, %v7191_v32, -inf  ;;  %v834_v42 = vadd.f32 %v706_v35, %v489_v3  ;;  %v1052_v9 = vmul.f32 %v5245_v28, %v7088_v45  ;;  %v1265_v31 = vsel %vm1183_vm2, %v7192_v26, -inf }
 0x1af   :  { %v5544_v50 = vadd.f32 %v1051_v0, %v833_v60  ;;  %v5548_v63 = vadd.f32 %v1050_v25, %v832_v2  ;;  %v1268_v10 = vsel %vm1183_vm2, %v7193_v20, -inf  ;;  %v1267_v14 = vsel %vm1183_vm2, %v5127_v1, -inf  ;;  %v7200_v20 = vld [vmem:[#allocation79_spill] sm:$0xff] }
 0x1b0   :  { %1474 = vmax.xlane.f32.xlu1 %v1266_v16  ;;  %v5554_v29 = vadd.f32 %v1052_v9, %v834_v42  ;;  %v1270_v59 = vsel %vm1183_vm2, %v5132_v46, -inf  ;;  %v1269_v35 = vsel %vm1183_vm2, %v5140_v40, -inf  ;;  %v1272_v60 = vsel %vm1183_vm2, %v5145_v5, -inf  ;;  %v7196_v46 = vld [vmem:[#allocation51_spill] sm:$0xff]  ;;  %v7198_v42 = vld [vmem:[#allocation65_spill] sm:$0xff] }
 0x1b1   :  { %1468 = vmax.xlane.f32.xlu0 %v1263_v43  ;;  %v5550_v23 = vpop.xlane.xlu1 %1338  ;;  %v1271_v3 = vsel %vm1183_vm2, %v7196_v46, -inf  ;;  %v1274_v62 = vsel %vm1183_vm2, %v5164_v52, -inf  ;;  %v1273_v5 = vsel %vm1183_vm2, %v5176_v55, -inf  ;;  %v1276_v2 = vsel %vm1183_vm2, %v5186_v4, -inf  ;;  %v7197_v52 = vld [vmem:[#allocation78_spill] sm:$0xff] }
 0x1b2   :  { %v5552_v6 = vpop.xlane.xlu0 %1332  ;;  %v1275_v16 = vsel %vm1183_vm2, %v7197_v52, -inf  ;;  %v1278_v9 = vsel %vm1183_vm2, %v7198_v42, -inf  ;;  %v7199_v4 = vld [vmem:[#allocation94_spill] sm:$0xff]  ;;  %v7203_v52 = vld [vmem:[#allocation109_spill] sm:$0xff] }
 0x1b4   :  { %1478 = vmax.xlane.f32.xlu1 %v1268_v10  ;;  %v1280_v10 = vsel %vm1183_vm2, %v7200_v20, -inf }
 0x1b5   :  { %1472 = vmax.xlane.f32.xlu0 %v1265_v31  ;;  %v5562_v45 = vpop.xlane.xlu1 %1342  ;;  %v1277_v31 = vsel %vm1183_vm2, %v7199_v4, -inf }
 0x1b6   :  { %7194 = vst [vmem:[#allocation52_spill] sm:$0xff] %v5562_v45  ;;  %v5564_v28 = vpop.xlane.xlu0 %1336 }
 0x1b8   :  { %1482 = vmax.xlane.f32.xlu1 %v1270_v59 }
 0x1b9   :  { %1476 = vmax.xlane.f32.xlu0 %v1267_v14  ;;  %v5574_v57 = vpop.xlane.xlu1 %1346 }
 0x1ba   :  { %v5572_v47 = vpop.xlane.xlu0 %1340 }
 0x1bc   :  { %1486 = vmax.xlane.f32.xlu1 %v1272_v60  ;;  %v7201_v60 = vld [vmem:[#allocation18_spill] sm:$0xff] }
 0x1bd   :  { %1480 = vmax.xlane.f32.xlu0 %v1269_v35  ;;  %v5584_v0 = vpop.xlane.xlu1 %1350  ;;  %v1279_v35 = vsel %vm1183_vm2, %v5229_v8, -inf  ;;  %v1282_v46 = vsel %vm1183_vm2, %v7201_v60, -inf  ;;  %v7207_v60 = vld [vmem:[#allocation105_spill] sm:$0xff] }
 0x1be   :  { %v5582_v1 = vpop.xlane.xlu0 %1344 }
 0x1bf   :  { %7195 = vst [vmem:[#allocation41_spill] sm:$0xff] %v5582_v1 }
 0x1c0   :  { %1490 = vmax.xlane.f32.xlu1 %v1274_v62 }
 0x1c1   :  { %1484 = vmax.xlane.f32.xlu0 %v1271_v3  ;;  %v5594_v43 = vpop.xlane.xlu1 %1354 }
 0x1c2   :  { %v5592_v40 = vpop.xlane.xlu0 %1348 }
 0x1c4   :  { %1494 = vmax.xlane.f32.xlu1 %v1276_v2 }
 0x1c5   :  { %1488 = vmax.xlane.f32.xlu0 %v1273_v5  ;;  %v5604_v32 = vpop.xlane.xlu1 %1358  ;;  %v7202_v5 = vld [vmem:[#allocation21_spill] sm:$0xff] }
 0x1c6   :  { %v5602_v25 = vpop.xlane.xlu0 %1352  ;;  %v1281_v2 = vsel %vm1183_vm2, %v7202_v5, -inf  ;;  %v7208_v5 = vld [vmem:[#allocation110_spill] sm:$0xff] }
 0x1c8   :  { %1498 = vmax.xlane.f32.xlu1 %v1278_v9  ;;  %v7205_v9 = vld [vmem:[#allocation95_spill] sm:$0xff] }
 0x1c9   :  { %1492 = vmax.xlane.f32.xlu0 %v1275_v16  ;;  %v5614_v26 = vpop.xlane.xlu1 %1362  ;;  %v1284_v16 = vsel %vm1183_vm2, %v7203_v52, -inf  ;;  %v1283_v4 = vsel %vm1183_vm2, %v7205_v9, -inf  ;;  %v7210_v9 = vld [vmem:[#allocation134_spill] sm:$0xff] }
 0x1ca   :  { %v5612_v55 = vpop.xlane.xlu0 %1356 }
 0x1cc   :  { %1502 = vmax.xlane.f32.xlu1 %v1280_v10 }
 0x1cd   :  { %1496 = vmax.xlane.f32.xlu0 %v1277_v31  ;;  %v5624_v59 = vpop.xlane.xlu1 %1366  ;;  %v7206_v31 = vld [vmem:[#allocation121_spill] sm:$0xff] }
 0x1ce   :  { %v5622_v14 = vpop.xlane.xlu0 %1360  ;;  %v1286_v20 = vsel %vm1183_vm2, %v7206_v31, -inf  ;;  %v7211_v31 = vld [vmem:[#allocation122_spill] sm:$0xff] }
 0x1d0   :  { %1506 = vmax.xlane.f32.xlu1 %v1282_v46  ;;  %v1285_v46 = vsel %vm1183_vm2, %v7207_v60, -inf }
 0x1d1   :  { %1500 = vmax.xlane.f32.xlu0 %v1279_v35  ;;  %v5634_v62 = vpop.xlane.xlu1 %1370 }
 0x1d2   :  { %v5632_v3 = vpop.xlane.xlu0 %1364 }
 0x1d4   :  { %1510 = vmax.xlane.f32.xlu1 %v1284_v16 }
 0x1d5   :  { %1504 = vmax.xlane.f32.xlu0 %v1281_v2  ;;  %v5644_v42 = vpop.xlane.xlu1 %1374  ;;  %v1288_v2 = vsel %vm1183_vm2, %v7208_v5, -inf }
 0x1d6   :  { %v5642_v8 = vpop.xlane.xlu0 %1368  ;;  %7204 = vst [vmem:[#allocation66_spill] sm:$0xff] %v5644_v42 }
 0x1d8   :  { %1514 = vmax.xlane.f32.xlu1 %v1286_v20  ;;  %v1290_v20 = vsel %vm1183_vm2, %v7211_v31, -inf }
 0x1d9   :  { %1508 = vmax.xlane.f32.xlu0 %v1283_v4  ;;  %v5654_v35 = vpop.xlane.xlu1 %1378  ;;  %v1287_v4 = vsel %vm1183_vm2, %v7210_v9, -inf }
 0x1da   :  { %v5652_v10 = vpop.xlane.xlu0 %1372 }
 0x1dc   :  { %1518 = vmax.xlane.f32.xlu1 %v1288_v2  ;;  %v7213_v2 = vld [vmem:[#allocation116_spill] sm:$0xff] }
 0x1dd   :  { %1512 = vmax.xlane.f32.xlu0 %v1285_v46  ;;  %v5664_v16 = vpop.xlane.xlu1 %1382  ;;  %v7212_v46 = vld [vmem:[#allocation39_spill] sm:$0xff] }
 0x1de   :  { %v5662_v52 = vpop.xlane.xlu0 %1376  ;;  %v1289_v5 = vsel %vm1183_vm2, %v7212_v46, -inf }
 0x1df   :  { %7209 = vst [vmem:[#allocation53_spill] sm:$0xff] %v5662_v52  ;;  %v1292_v52 = vsel %vm1183_vm2, %v7213_v2, -inf }
 0x1e0   :  { %1522 = vmax.xlane.f32.xlu1 %v1290_v20  ;;  %v1294_v20 = vsel %vm1183_vm2, %v5359_v44, -inf  ;;  %v1295_v44 = vsel %vm1183_vm2, %v5379_v7, -inf }
 0x1e1   :  { %1516 = vmax.xlane.f32.xlu0 %v1287_v4  ;;  %v5674_v42 = vpop.xlane.xlu1 %1386  ;;  %v7214_v4 = vld [vmem:[#allocation135_spill] sm:$0xff] }
 0x1e2   :  { %v5672_v60 = vpop.xlane.xlu0 %1380  ;;  %v1291_v31 = vsel %vm1183_vm2, %v7214_v4, -inf }
 0x1e4   :  { %1526 = vmax.xlane.f32.xlu1 %v1292_v52  ;;  %v1293_v52 = vsel %vm1183_vm2, %v5364_v33, -inf }
 0x1e5   :  { %1520 = vmax.xlane.f32.xlu0 %v1289_v5  ;;  %v5684_v1 = vpop.xlane.xlu1 %1390  ;;  %v1296_v5 = vsel %vm1183_vm2, %v5374_v37, -inf  ;;  %v1297_v37 = vsel %vm1183_vm2, %v5396_v11, -inf }
 0x1e6   :  { %v5682_v9 = vpop.xlane.xlu0 %1384 }
 0x1e8   :  { %1530 = vmax.xlane.f32.xlu1 %v1294_v20 }
 0x1e9   :  { %1524 = vmax.xlane.f32.xlu0 %v1291_v31  ;;  %v5694_v45 = vpop.xlane.xlu1 %1394  ;;  %v1298_v31 = vsel %vm1183_vm2, %v5386_v34, -inf  ;;  %v1299_v34 = vsel %vm1183_vm2, %v5422_v54, -inf }
 0x1ea   :  { %v5692_v46 = vpop.xlane.xlu0 %1388 }
 0x1ec   :  { %1534 = vmax.xlane.f32.xlu1 %v1296_v5 }
 0x1ed   :  { %1528 = vmax.xlane.f32.xlu0 %v1293_v52  ;;  %v5704_v4 = vpop.xlane.xlu1 %1398  ;;  %v1300_v52 = vsel %vm1183_vm2, %v5416_v13, -inf  ;;  %v1301_v13 = vsel %vm1183_vm2, %v5447_v49, -inf }
 0x1ee   :  { %v5702_v2 = vpop.xlane.xlu0 %1392  ;;  %7215 = vst [vmem:[#allocation80_spill] sm:$0xff] %v5704_v4 }
 0x1f0   :  { %1538 = vmax.xlane.f32.xlu1 %v1298_v31 }
 0x1f1   :  { %1532 = vmax.xlane.f32.xlu0 %v1295_v44  ;;  %v5714_v20 = vpop.xlane.xlu1 %1402  ;;  %v1302_v44 = vsel %vm1183_vm2, %v5442_v41, -inf  ;;  %v1303_v41 = vsel %vm1183_vm2, %v5467_v22, -inf }
 0x1f2   :  { %v5712_v33 = vpop.xlane.xlu0 %1396 }
 0x1f4   :  { %1542 = vmax.xlane.f32.xlu1 %v1300_v52 }
 0x1f5   :  { %1536 = vmax.xlane.f32.xlu0 %v1297_v37  ;;  %v5724_v5 = vpop.xlane.xlu1 %1406  ;;  %v1304_v37 = vsel %vm1183_vm2, %v5457_v56, -inf  ;;  %v1305_v56 = vsel %vm1183_vm2, %v5488_v30, -inf }
 0x1f6   :  { %v5722_v7 = vpop.xlane.xlu0 %1400  ;;  %7217 = vst [vmem:[#allocation96_spill] sm:$0xff] %v5724_v5 }
 0x1f7   :  { %7216 = vst [vmem:[#allocation67_spill] sm:$0xff] %v5722_v7 }
 0x1f8   :  { %1546 = vmax.xlane.f32.xlu1 %v1302_v44 }
 0x1f9   :  { %1540 = vmax.xlane.f32.xlu0 %v1299_v34  ;;  %v5734_v31 = vpop.xlane.xlu1 %1410  ;;  %v1306_v34 = vsel %vm1183_vm2, %v5482_v17, -inf  ;;  %v1307_v17 = vsel %vm1183_vm2, %v5508_v39, -inf }
 0x1fa   :  { %v5732_v11 = vpop.xlane.xlu0 %1404 }
 0x1fc   :  { %1550 = vmax.xlane.f32.xlu1 %v1304_v37 }
 0x1fd   :  { %1544 = vmax.xlane.f32.xlu0 %v1301_v13  ;;  %v5744_v52 = vpop.xlane.xlu1 %1414  ;;  %v1308_v13 = vsel %vm1183_vm2, %v5497_v51, -inf  ;;  %v1309_v51 = vsel %vm1183_vm2, %v5530_v58, -inf  ;;  %v1313_v58 = vsel %vm1183_vm2, %v5554_v29, -inf }
 0x1fe   :  { %v5742_v54 = vpop.xlane.xlu0 %1408 }
 0x1ff   :  { %7218 = vst [vmem:[#allocation40_spill] sm:$0xff] %v5742_v54 }
 0x200   :  { %1554 = vmax.xlane.f32.xlu1 %v1306_v34 }
 0x201   :  { %1548 = vmax.xlane.f32.xlu0 %v1303_v41  ;;  %v5754_v44 = vpop.xlane.xlu1 %1418  ;;  %v1310_v41 = vsel %vm1183_vm2, %v5520_v21, -inf  ;;  %v1311_v21 = vsel %vm1183_vm2, %v5548_v63, -inf  ;;  %v3210_v63 = vld [vmem:[%s6761_s2] ss:$0 sm:$0xff] }
 0x202   :  { %v5752_v49 = vpop.xlane.xlu0 %1412  ;;  %7219 = vst [vmem:[#allocation42_spill] sm:$0xff] %v5754_v44 }
 0x204   :  { %1558 = vmax.xlane.f32.xlu1 %v1308_v13 }
 0x205   :  { %1552 = vmax.xlane.f32.xlu0 %v1305_v56  ;;  %v5764_v37 = vpop.xlane.xlu1 %1422  ;;  %v1312_v56 = vsel %vm1183_vm2, %v5544_v50, -inf  ;;  %vm2553_vm2 = vcmask 1048512  }
 0x206   :  { %v5762_v22 = vpop.xlane.xlu0 %1416  ;;  %7220 = vst [vmem:[#allocation56_spill] sm:$0xff] %v5764_v37 }
 0x208   :  { %1562 = vmax.xlane.f32.xlu1 %v1310_v41 }
 0x209   :  { %1556 = vmax.xlane.f32.xlu0 %v1307_v17  ;;  %v5774_v34 = vpop.xlane.xlu1 %1426 }
 0x20a   :  { %v5772_v30 = vpop.xlane.xlu0 %1420  ;;  %7222 = vst [vmem:[#allocation54_spill] sm:$0xff] %v5774_v34 }
 0x20b   :  { %7221 = vst [vmem:[#allocation81_spill] sm:$0xff] %v5772_v30 }
 0x20c   :  { %1566 = vmax.xlane.f32.xlu1 %v1312_v56 }
 0x20d   :  { %1560 = vmax.xlane.f32.xlu0 %v1309_v51  ;;  %v5784_v13 = vpop.xlane.xlu1 %1430 }
 0x20e   :  { %v5782_v39 = vpop.xlane.xlu0 %1424  ;;  %7224 = vst [vmem:[#allocation68_spill] sm:$0xff] %v5784_v13 }
 0x20f   :  { %7223 = vst [vmem:[#allocation43_spill] sm:$0xff] %v5782_v39 }
 0x211   :  { %1564 = vmax.xlane.f32.xlu0 %v1311_v21  ;;  %v5791_v41 = vpop.xlane.xlu1 %1434 }
 0x212   :  { %v5789_v17 = vpop.xlane.xlu0 %1428  ;;  %7226 = vst [vmem:[#allocation111_spill] sm:$0xff] %v5791_v41 }
 0x213   :  { %7225 = vst [vmem:[#allocation57_spill] sm:$0xff] %v5789_v17  ;;  %v3693_v17 = vmov 0  }
 0x214   :  { %3282 = vset.pattern.permute.xlu1 %v3693_v17  ;;  %3276 = vset.pattern.permute.xlu0 %v3693_v17 }
 0x215   :  { %1568 = vmax.xlane.f32.xlu0 %v1313_v58  ;;  %v5798_v51 = vpop.xlane.xlu1 %1438 }
 0x216   :  { %v5796_v50 = vpop.xlane.xlu0 %1432  ;;  %7228 = vst [vmem:[#allocation69_spill] sm:$0xff] %v5798_v51 }
 0x217   :  { %7227 = vst [vmem:[#allocation82_spill] sm:$0xff] %v5796_v50 }
 0x219   :  { %v5802_v39 = vpop.xlane.xlu1 %1442 }
 0x21a   :  { %v5800_v56 = vpop.xlane.xlu0 %1436 }
 0x21b   :  { %7229 = vst [vmem:[#allocation98_spill] sm:$0xff] %v5800_v56 }
 0x21d   :  { %v5809_v37 = vpop.xlane.xlu1 %1446  ;;  %1577 = vbcast.lane.b32.xlu1 %v3210_v63, 256 }
 0x21e   :  { %v5807_v21 = vpop.xlane.xlu0 %1440 }
 0x21f   :  { %7230 = vst [vmem:[#allocation83_spill] sm:$0xff] %v5807_v21 }
 0x221   :  { %v5813_v29 = vpop.xlane.xlu1 %1450  ;;  %1585 = vbcast.lane.b32.xlu1 %v3210_v63, 272 }
 0x222   :  { %v5811_v38 = vpop.xlane.xlu0 %1444  ;;  %7232 = vst [vmem:[#allocation19_spill] sm:$0xff] %v5813_v29 }
 0x223   :  { %7231 = vst [vmem:[#allocation97_spill] sm:$0xff] %v5811_v38 }
 0x225   :  { %v5817_v51 = vpop.xlane.xlu1 %1454  ;;  %1589 = vbcast.lane.b32.xlu1 %v3210_v63, 280 }
 0x226   :  { %v5815_v58 = vpop.xlane.xlu0 %1448  ;;  %7234 = vst [vmem:[#allocation99_spill] sm:$0xff] %v5817_v51 }
 0x227   :  { %7233 = vst [vmem:[#allocation113_spill] sm:$0xff] %v5815_v58 }
 0x229   :  { %v5821_v56 = vpop.xlane.xlu1 %1458  ;;  %1597 = vbcast.lane.b32.xlu1 %v3210_v63, 296 }
 0x22a   :  { %v5819_v34 = vpop.xlane.xlu0 %1452  ;;  %7236 = vst [vmem:[#allocation23_spill] sm:$0xff] %v5821_v56 }
 0x22b   :  { %7235 = vst [vmem:[#allocation125_spill] sm:$0xff] %v5819_v34  ;;  %1581 = vbcast.lane.b32.xlu0 %v3210_v63, 264 }
 0x22d   :  { %v5825_v41 = vpop.xlane.xlu1 %1462  ;;  %1605 = vbcast.lane.b32.xlu1 %v3210_v63, 312 }
 0x22e   :  { %v5823_v21 = vpop.xlane.xlu0 %1456  ;;  %7238 = vst [vmem:[#allocation114_spill] sm:$0xff] %v5825_v41 }
 0x22f   :  { %7237 = vst [vmem:[#allocation123_spill] sm:$0xff] %v5823_v21  ;;  %1593 = vbcast.lane.b32.xlu0 %v3210_v63, 288 }
 0x231   :  { %v5829_v13 = vpop.xlane.xlu1 %1466  ;;  %1613 = vbcast.lane.b32.xlu1 %v3210_v63, 328 }
 0x232   :  { %v5827_v50 = vpop.xlane.xlu0 %1460  ;;  %7240 = vst [vmem:[#allocation138_spill] sm:$0xff] %v5829_v13 }
 0x233   :  { %7239 = vst [vmem:[#allocation20_spill] sm:$0xff] %v5827_v50  ;;  %1601 = vbcast.lane.b32.xlu0 %v3210_v63, 304 }
 0x235   :  { %v5833_v17 = vpop.xlane.xlu1 %1470  ;;  %1621 = vbcast.lane.b32.xlu1 %v3210_v63, 344 }
 0x236   :  { %v5831_v51 = vpop.xlane.xlu0 %1464  ;;  %7242 = vst [vmem:[#allocation126_spill] sm:$0xff] %v5833_v17 }
 0x237   :  { %7241 = vst [vmem:[#allocation89_spill] sm:$0xff] %v5831_v51  ;;  %1609 = vbcast.lane.b32.xlu0 %v3210_v63, 320 }
 0x239   :  { %v1475_v34 = vpop.xlane.xlu1 %1474  ;;  %1629 = vbcast.lane.b32.xlu1 %v3210_v63, 360 }
 0x23a   :  { %v5835_v56 = vpop.xlane.xlu0 %1468 }
 0x23b   :  { %7243 = vst [vmem:[#allocation71_spill] sm:$0xff] %v5835_v56  ;;  %1617 = vbcast.lane.b32.xlu0 %v3210_v63, 336 }
 0x23d   :  { %v5839_v21 = vpop.xlane.xlu1 %1478  ;;  %1637 = vbcast.lane.b32.xlu1 %v3210_v63, 376 }
 0x23e   :  { %v5837_v41 = vpop.xlane.xlu0 %1472 }
 0x23f   :  { %7244 = vst [vmem:[#allocation44_spill] sm:$0xff] %v5837_v41  ;;  %1625 = vbcast.lane.b32.xlu0 %v3210_v63, 352 }
 0x241   :  { %v5843_v50 = vpop.xlane.xlu1 %1482 }
 0x242   :  { %v5841_v13 = vpop.xlane.xlu0 %1476  ;;  %7246 = vst [vmem:[#allocation22_spill] sm:$0xff] %v5843_v50 }
 0x243   :  { %7245 = vst [vmem:[#allocation90_spill] sm:$0xff] %v5841_v13  ;;  %1633 = vbcast.lane.b32.xlu0 %v3210_v63, 368 }
 0x245   :  { %v5847_v17 = vpop.xlane.xlu1 %1486 }
 0x246   :  { %v5845_v51 = vpop.xlane.xlu0 %1480  ;;  %7248 = vst [vmem:[#allocation139_spill] sm:$0xff] %v5847_v17 }
 0x247   :  { %7247 = vst [vmem:[#allocation112_spill] sm:$0xff] %v5845_v51 }
 0x249   :  { %v5851_v56 = vpop.xlane.xlu1 %1490 }
 0x24a   :  { %v5849_v29 = vpop.xlane.xlu0 %1484  ;;  %7250 = vst [vmem:[#allocation117_spill] sm:$0xff] %v5851_v56 }
 0x24b   :  { %7249 = vst [vmem:[#allocation88_spill] sm:$0xff] %v5849_v29 }
 0x24d   :  { %v5855_v41 = vpop.xlane.xlu1 %1494 }
 0x24e   :  { %v5853_v58 = vpop.xlane.xlu0 %1488  ;;  %7252 = vst [vmem:[#allocation16_spill] sm:$0xff] %v5855_v41 }
 0x24f   :  { %7251 = vst [vmem:[#allocation58_spill] sm:$0xff] %v5853_v58 }
 0x251   :  { %v5859_v54 = vpop.xlane.xlu1 %1498 }
 0x252   :  { %v5857_v38 = vpop.xlane.xlu0 %1492  ;;  %7254 = vst [vmem:[#allocation70_spill] sm:$0xff] %v5859_v54 }
 0x253   :  { %7253 = vst [vmem:[#allocation45_spill] sm:$0xff] %v5857_v38 }
 0x255   :  { %v5863_v50 = vpop.xlane.xlu1 %1502 }
 0x256   :  { %v5861_v13 = vpop.xlane.xlu0 %1496  ;;  %7256 = vst [vmem:[#allocation59_spill] sm:$0xff] %v5863_v50 }
 0x257   :  { %7255 = vst [vmem:[#allocation48_spill] sm:$0xff] %v5861_v13 }
 0x259   :  { %v1507_v51 = vpop.xlane.xlu1 %1506 }
 0x25a   :  { %v5865_v63 = vpop.xlane.xlu0 %1500 }
 0x25b   :  { %7257 = vst [vmem:[#allocation84_spill] sm:$0xff] %v5865_v63 }
 0x25d   :  { %v5869_v29 = vpop.xlane.xlu1 %1510 }
 0x25e   :  { %v5867_v17 = vpop.xlane.xlu0 %1504 }
 0x25f   :  { %7258 = vst [vmem:[#allocation74_spill] sm:$0xff] %v5867_v17 }
 0x261   :  { %v5873_v58 = vpop.xlane.xlu1 %1514 }
 0x262   :  { %v5871_v56 = vpop.xlane.xlu0 %1508  ;;  %7260 = vst [vmem:[#allocation136_spill] sm:$0xff] %v5873_v58 }
 0x263   :  { %7259 = vst [vmem:[#allocation100_spill] sm:$0xff] %v5871_v56 }
 0x265   :  { %v5877_v38 = vpop.xlane.xlu1 %1518 }
 0x266   :  { %v5875_v41 = vpop.xlane.xlu0 %1512  ;;  %7262 = vst [vmem:[#allocation115_spill] sm:$0xff] %v5877_v38 }
 0x267   :  { %7261 = vst [vmem:[#allocation85_spill] sm:$0xff] %v5875_v41 }
 0x269   :  { %v5881_v13 = vpop.xlane.xlu1 %1522 }
 0x26a   :  { %v5879_v54 = vpop.xlane.xlu0 %1516  ;;  %7264 = vst [vmem:[#allocation101_spill] sm:$0xff] %v5881_v13 }
 0x26b   :  { %7263 = vst [vmem:[#allocation124_spill] sm:$0xff] %v5879_v54 }
 0x26d   :  { %v5885_v63 = vpop.xlane.xlu1 %1526 }
 0x26e   :  { %v5883_v50 = vpop.xlane.xlu0 %1520  ;;  %7266 = vst [vmem:[#allocation119_spill] sm:$0xff] %v5885_v63 }
 0x26f   :  { %7265 = vst [vmem:[#allocation127_spill] sm:$0xff] %v5883_v50 }
 0x271   :  { %v5889_v17 = vpop.xlane.xlu1 %1530 }
 0x272   :  { %v5887_v30 = vpop.xlane.xlu0 %1524  ;;  %7268 = vst [vmem:[#allocation14_spill] sm:$0xff] %v5889_v17 }
 0x273   :  { %7267 = vst [vmem:[#allocation140_spill] sm:$0xff] %v5887_v30 }
 0x275   :  { %v5893_v56 = vpop.xlane.xlu1 %1534 }
 0x276   :  { %v5891_v44 = vpop.xlane.xlu0 %1528  ;;  %7270 = vst [vmem:[#allocation128_spill] sm:$0xff] %v5893_v56 }
 0x277   :  { %7269 = vst [vmem:[#allocation55_spill] sm:$0xff] %v5891_v44 }
 0x279   :  { %v1539_v41 = vpop.xlane.xlu1 %1538 }
 0x27a   :  { %v5895_v58 = vpop.xlane.xlu0 %1532 }
 0x27b   :  { %7271 = vst [vmem:[#allocation137_spill] sm:$0xff] %v5895_v58 }
 0x27d   :  { %v1543_v54 = vpop.xlane.xlu1 %1542 }
 0x27e   :  { %v5897_v38 = vpop.xlane.xlu0 %1536 }
 0x27f   :  { %7272 = vst [vmem:[#allocation46_spill] sm:$0xff] %v5897_v38 }
 0x281   :  { %v5901_v13 = vpop.xlane.xlu1 %1546 }
 0x282   :  { %v5899_v5 = vpop.xlane.xlu0 %1540  ;;  %7274 = vst [vmem:[#allocation141_spill] sm:$0xff] %v5901_v13 }
 0x283   :  { %7273 = vst [vmem:[#allocation72_spill] sm:$0xff] %v5899_v5 }
 0x285   :  { %v5905_v63 = vpop.xlane.xlu1 %1550 }
 0x286   :  { %v5903_v50 = vpop.xlane.xlu0 %1544  ;;  %7276 = vst [vmem:[#allocation60_spill] sm:$0xff] %v5905_v63 }
 0x287   :  { %7275 = vst [vmem:[#allocation31_spill] sm:$0xff] %v5903_v50 }
 0x289   :  { %v5909_v17 = vpop.xlane.xlu1 %1554 }
 0x28a   :  { %v5907_v30 = vpop.xlane.xlu0 %1548  ;;  %7278 = vst [vmem:[#allocation13_spill] sm:$0xff] %v5909_v17 }
 0x28b   :  { %7277 = vst [vmem:[#allocation15_spill] sm:$0xff] %v5907_v30 }
 0x28d   :  { %v5913_v56 = vpop.xlane.xlu1 %1558 }
 0x28e   :  { %v5911_v44 = vpop.xlane.xlu0 %1552  ;;  %7280 = vst [vmem:[#allocation47_spill] sm:$0xff] %v5913_v56 }
 0x28f   :  { %7279 = vst [vmem:[#allocation73_spill] sm:$0xff] %v5911_v44 }
 0x291   :  { %v5917_v38 = vpop.xlane.xlu1 %1562 }
 0x292   :  { %v5915_v58 = vpop.xlane.xlu0 %1556  ;;  %7282 = vst [vmem:[#allocation17_spill] sm:$0xff] %v5917_v38 }
 0x293   :  { %7281 = vst [vmem:[#allocation75_spill] sm:$0xff] %v5915_v58 }
 0x295   :  { %v5921_v5 = vpop.xlane.xlu1 %1566 }
 0x296   :  { %v5919_v7 = vpop.xlane.xlu0 %1560  ;;  %7284 = vst [vmem:[#allocation30_spill] sm:$0xff] %v5921_v5 }
 0x297   :  { %7283 = vst [vmem:[#allocation62_spill] sm:$0xff] %v5919_v7 }
 0x299   :  { %v1578_v50 = vpop.permute.xlu1 %1577 }
 0x29a   :  { %v5923_v13 = vpop.xlane.xlu0 %1564  ;;  %v5925_v63 = vadd.f32 %v1578_v50, %v1539_v41  ;;  %v1655_v30 = vadd.f32 %v1578_v50, %v5394_v48  ;;  %v5929_v17 = vadd.f32 %v1578_v50, %v5574_v57  ;;  %v5932_v56 = vadd.f32 %v1578_v50, %v5654_v35 }
 0x29b   :  { %7285 = vst [vmem:[#allocation35_spill] sm:$0xff] %v5923_v13  ;;  %v5937_v7 = vadd.f32 %v1578_v50, %v5734_v31  ;;  %v5939_v5 = vadd.f32 %v1578_v50, %v1475_v34  ;;  %v5942_v13 = vadd.f32 %v1578_v50, %v5802_v39  ;;  %v5944_v41 = vadd.f32 %v1578_v50, %v1507_v51 }
 0x29c   :  { %v1783_v57 = vmax.f32 %v1655_v30, 0.0  ;;  %v1799_v35 = vmax.f32 %v5929_v17, 0.0 }
 0x29d   :  { %v1586_v38 = vpop.permute.xlu1 %1585  ;;  %7287 = vst [vmem:[#allocation87_spill] sm:$0xff] %v5942_v13 }
 0x29e   :  { %v5934_v58 = vpop.xlane.xlu0 %1568  ;;  %v5946_v48 = vadd.f32 %v1586_v38, %v1543_v54  ;;  %v1657_v44 = vadd.f32 %v1586_v38, %v5429_v36  ;;  %v1673_v34 = vadd.f32 %v1586_v38, %v5584_v0  ;;  %v5969_v0 = vadd.f32 %v1586_v38, %v5744_v52 }
 0x29f   :  { %7286 = vst [vmem:[#allocation86_spill] sm:$0xff] %v5934_v58  ;;  %v5966_v58 = vadd.f32 %v1586_v38, %v5664_v16  ;;  %v5972_v50 = vadd.f32 %v1586_v38, %v5809_v37  ;;  %v5975_v54 = vadd.f32 %v1586_v38, %v5839_v21 }
 0x2a0   :  { %v1785_v39 = vmax.f32 %v1657_v44, 0.0  ;;  %v1801_v37 = vmax.f32 %v1673_v34, 0.0 }
 0x2a1   :  { %v5953_v31 = vpop.permute.xlu1 %1589  ;;  %v1849_v34 = vmax.f32 %v5972_v50, 0.0 }
 0x2a2   :  { %v5951_v4 = vpop.permute.xlu0 %1581  ;;  %v1658_v36 = vadd.f32 %v5953_v31, %v5465_v61  ;;  %v5978_v61 = vadd.f32 %v1586_v38, %v5869_v29  ;;  %v1674_v52 = vadd.f32 %v5953_v31, %v5602_v25 }
 0x2a3   :  { %v1656_v30 = vadd.f32 %v5951_v4, %v5392_v53  ;;  %v1672_v16 = vadd.f32 %v5951_v4, %v5592_v40  ;;  %v1688_v21 = vadd.f32 %v5951_v4, %v5672_v60  ;;  %v1817_v40 = vmax.f32 %v5966_v58, 0.0 }
 0x2a4   :  { %v1786_v13 = vmax.f32 %v1658_v36, 0.0  ;;  %v1690_v36 = vadd.f32 %v5953_v31, %v5682_v9  ;;  %v5999_v25 = vadd.f32 %v5951_v4, %v5752_v49  ;;  %v1802_v58 = vmax.f32 %v1674_v52, 0.0 }
 0x2a5   :  { %v1784_v53 = vmax.f32 %v1656_v30, 0.0  ;;  %v5982_v17 = vpop.permute.xlu1 %1597  ;;  %v1800_v9 = vmax.f32 %v1672_v16, 0.0  ;;  %v6010_v49 = vadd.f32 %v5953_v31, %v5762_v22 }
 0x2a6   :  { %v5980_v51 = vpop.permute.xlu0 %1593  ;;  %v3283_v44 = vpack.i.bf16 %v1786_v13, %v1785_v39  ;;  %v1660_v29 = vadd.f32 %v5982_v17, %v5495_v18  ;;  %v1676_v16 = vadd.f32 %v5982_v17, %v5612_v55  ;;  %v1818_v52 = vmax.f32 %v1690_v36, 0.0 }
 0x2a7   :  { %v3277_v30 = vpack.i.bf16 %v1784_v53, %v1783_v57  ;;  %v1659_v38 = vadd.f32 %v5980_v51, %v5427_v24  ;;  %v1675_v57 = vadd.f32 %v5980_v51, %v5594_v43  ;;  %v1832_v22 = vmax.f32 %v5999_v25, 0.0 }
 0x2a8   :  { %3284 = vperm.xlu1 %3282, %v3283_v44   ;;  %v1788_v13 = vmax.f32 %v1660_v29, 0.0  ;;  %v1816_v29 = vmax.f32 %v1688_v21, 0.0  ;;  %v6030_v43 = vpack.i.bf16 %v1800_v9, %v1799_v35 }
 0x2a9   :  { %3278 = vperm.xlu0 %3276, %v3277_v30   ;;  %v1787_v60 = vmax.f32 %v1659_v38, 0.0  ;;  %v6006_v39 = vpop.permute.xlu1 %1605  ;;  %v1803_v35 = vmax.f32 %v1675_v57, 0.0 }
 0x2aa   :  { %v6004_v18 = vpop.permute.xlu0 %1601  ;;  %v1662_v38 = vadd.f32 %v6006_v39, %v5528_v27  ;;  %v1678_v36 = vadd.f32 %v6006_v39, %v5622_v14 }
 0x2ab   :  { %v3288_v30 = vpack.i.bf16 %v1788_v13, %v1787_v60  ;;  %v1661_v44 = vadd.f32 %v6004_v18, %v5463_v12  ;;  %v1691_v60 = vadd.f32 %v5980_v51, %v5674_v42  ;;  %v1692_v12 = vadd.f32 %v5982_v17, %v5692_v46 }
 0x2ac   :  { %v1790_v53 = vmax.f32 %v1662_v38, 0.0  ;;  %v6032_v13 = vpack.i.bf16 %v1802_v58, %v1801_v37  ;;  %v1677_v55 = vadd.f32 %v6004_v18, %v5604_v32  ;;  %v1804_v37 = vmax.f32 %v1676_v16, 0.0 }
 0x2ad   :  { %3289 = vperm.xlu1 %3282, %v3288_v30   ;;  %v1789_v24 = vmax.f32 %v1661_v44, 0.0  ;;  %v6028_v21 = vpop.permute.xlu1 %1613  ;;  %v7288_v30 = vmax.f32 %v5932_v56, 0.0  ;;  %v1819_v58 = vmax.f32 %v1691_v60, 0.0  ;;  %v1806_v38 = vmax.f32 %v1678_v36, 0.0 }
 0x2ae   :  { %v6026_v27 = vpop.permute.xlu0 %1609  ;;  %v1664_v46 = vadd.f32 %v6028_v21, %v5552_v6  ;;  %v1680_v32 = vadd.f32 %v6028_v21, %v5632_v3  ;;  %v1805_v56 = vmax.f32 %v1677_v55, 0.0  ;;  %v1696_v60 = vadd.f32 %v6028_v21, %v5712_v33 }
 0x2af   :  { %v3293_v25 = vpack.i.bf16 %v1790_v53, %v1789_v24  ;;  %v1663_v42 = vadd.f32 %v6026_v27, %v5493_v15  ;;  %v6044_v44 = vpack.i.bf16 %v1816_v29, %v7288_v30  ;;  %v1679_v9 = vadd.f32 %v6026_v27, %v5614_v26 }
 0x2b0   :  { %v1792_v24 = vmax.f32 %v1664_v46, 0.0  ;;  %v1820_v15 = vmax.f32 %v1692_v12, 0.0  ;;  %v1695_v57 = vadd.f32 %v6026_v27, %v5694_v45  ;;  %v1693_v26 = vadd.f32 %v6004_v18, %v5684_v1 }
 0x2b1   :  { %3294 = vperm.xlu0 %3276, %v3293_v25   ;;  %v1791_v14 = vmax.f32 %v1663_v42, 0.0  ;;  %v6052_v6 = vpop.permute.xlu1 %1621  ;;  %v1807_v12 = vmax.f32 %v1679_v9, 0.0  ;;  %v1808_v25 = vmax.f32 %v1680_v32, 0.0  ;;  %v6064_v55 = vpack.i.bf16 %v1818_v52, %v1817_v40 }
 0x2b2   :  { %v6050_v53 = vpop.permute.xlu0 %1617  ;;  %v1666_v16 = vadd.f32 %v6052_v6, %v5564_v28  ;;  %v1694_v45 = vadd.f32 %v6006_v39, %v5702_v2  ;;  %v6068_v42 = vpack.i.bf16 %v1804_v37, %v1803_v35  ;;  %v6070_v46 = vpack.i.bf16 %v1820_v15, %v1819_v58 }
 0x2b3   :  { %v3298_v29 = vpack.i.bf16 %v1792_v24, %v1791_v14  ;;  %v1665_v3 = vadd.f32 %v6050_v53, %v5526_v19  ;;  %v6076_v30 = vpack.i.bf16 %v1806_v38, %v1805_v56  ;;  %v1823_v33 = vmax.f32 %v1695_v57, 0.0  ;;  %v7290_v57 = vld [vmem:[#allocation80_spill] sm:$0xff] }
 0x2b4   :  { %v1794_v1 = vmax.f32 %v1666_v16, 0.0  ;;  %v1821_v9 = vmax.f32 %v1693_v26, 0.0  ;;  %v7289_v40 = vmax.f32 %v5937_v7, 0.0  ;;  %v1824_v37 = vmax.f32 %v1696_v60, 0.0  ;;  %v7292_v16 = vld [vmem:[#allocation52_spill] sm:$0xff]  ;;  %v7293_v60 = vld [vmem:[#allocation41_spill] sm:$0xff] }
 0x2b5   :  { %3299 = vperm.xlu1 %3282, %v3298_v29   ;;  %v1793_v36 = vmax.f32 %v1665_v3, 0.0  ;;  %v6074_v28 = vpop.permute.xlu1 %1629  ;;  %v6086_v14 = vpack.i.bf16 %v1808_v25, %v1807_v12  ;;  %v1681_v24 = vadd.f32 %v6050_v53, %v5624_v59  ;;  %v1682_v58 = vadd.f32 %v6052_v6, %v5642_v8  ;;  %v7291_v29 = vld [vmem:[#allocation67_spill] sm:$0xff] }
 0x2b6   :  { %v6072_v19 = vpop.permute.xlu0 %1625  ;;  %v6080_v52 = vpack.i.bf16 %v1832_v22, %v7289_v40  ;;  %v1668_v35 = vadd.f32 %v6074_v28, %v5572_v47  ;;  %v1822_v15 = vmax.f32 %v1694_v45, 0.0  ;;  %v1700_v8 = vadd.f32 %v6074_v28, %v5732_v11 }
 0x2b7   :  { %v3303_v2 = vpack.i.bf16 %v1794_v1, %v1793_v36  ;;  %v1667_v32 = vadd.f32 %v6072_v19, %v5550_v23  ;;  %v1683_v56 = vadd.f32 %v6072_v19, %v5634_v62  ;;  %v1684_v23 = vadd.f32 %v6074_v28, %v5652_v10  ;;  %v7294_v36 = vld [vmem:[#allocation66_spill] sm:$0xff]  ;;  %v7295_v1 = vld [vmem:[#allocation53_spill] sm:$0xff] }
 0x2b8   :  { %v1796_v22 = vmax.f32 %v1668_v35, 0.0  ;;  %v1699_v59 = vadd.f32 %v6072_v19, %v5714_v20  ;;  %v1697_v26 = vadd.f32 %v6050_v53, %v7290_v57  ;;  %v1698_v3 = vadd.f32 %v6052_v6, %v7291_v29 }
 0x2b9   :  { %3304 = vperm.xlu0 %3276, %v3303_v2   ;;  %v1795_v7 = vmax.f32 %v1667_v32, 0.0  ;;  %v6098_v38 = vpop.permute.xlu1 %1637  ;;  %v6112_v25 = vpack.i.bf16 %v1824_v37, %v1823_v33  ;;  %v1809_v45 = vmax.f32 %v1681_v24, 0.0  ;;  %v1810_v20 = vmax.f32 %v1682_v58, 0.0  ;;  %v7296_v37 = vld [vmem:[#allocation96_spill] sm:$0xff]  ;;  %v7297_v58 = vld [vmem:[#allocation42_spill] sm:$0xff] }
 0x2ba   :  { %v6096_v47 = vpop.permute.xlu0 %1633  ;;  %v1670_v12 = vadd.f32 %v6098_v38, %v7293_v60  ;;  %v1686_v40 = vadd.f32 %v6098_v38, %v7295_v1  ;;  %v1811_v35 = vmax.f32 %v1683_v56, 0.0  ;;  %v1828_v57 = vmax.f32 %v1700_v8, 0.0  ;;  %v7298_v56 = vld [vmem:[#allocation81_spill] sm:$0xff] }
 0x2bb   :  { %v3308_v62 = vpack.i.bf16 %v1796_v22, %v1795_v7  ;;  %v1669_v10 = vadd.f32 %v6096_v47, %v7292_v16  ;;  %v1685_v11 = vadd.f32 %v6096_v47, %v7294_v36  ;;  %v1812_v7 = vmax.f32 %v1684_v23, 0.0 }
 0x2bc   :  { %v1798_v32 = vmax.f32 %v1670_v12, 0.0  ;;  %v1827_v22 = vmax.f32 %v1699_v59, 0.0  ;;  %v1825_v29 = vmax.f32 %v1697_v26, 0.0  ;;  %v1826_v16 = vmax.f32 %v1698_v3, 0.0 }
 0x2bd   :  { %3309 = vperm.xlu1 %3282, %v3308_v62   ;;  %v1797_v2 = vmax.f32 %v1669_v10, 0.0  ;;  %v6118_v33 = vpack.i.bf16 %v1822_v15, %v1821_v9  ;;  %v6122_v24 = vadd.f32 %v6096_v47, %v7296_v37  ;;  %v6126_v36 = vadd.f32 %v5980_v51, %v7297_v58  ;;  %v7299_v15 = vld [vmem:[#allocation40_spill] sm:$0xff] }
 0x2be   :  { %v3343_v62 = vpack.i.bf16 %v1810_v20, %v1809_v45  ;;  %v1813_v10 = vmax.f32 %v1685_v11, 0.0  ;;  %v1814_v12 = vmax.f32 %v1686_v40, 0.0  ;;  %v6130_v23 = vadd.f32 %v5982_v17, %v7298_v56  ;;  %v7301_v11 = vld [vmem:[#allocation97_spill] sm:$0xff]  ;;  %v7308_v56 = vld [vmem:[#allocation100_spill] sm:$0xff] }
 0x2bf   :  { %v3313_v60 = vpack.i.bf16 %v1798_v32, %v1797_v2  ;;  %v3348_v9 = vpack.i.bf16 %v1812_v7, %v1811_v35  ;;  %v6135_v59 = vadd.f32 %v6098_v38, %v7299_v15  ;;  %v1834_v8 = vmax.f32 %v6010_v49, 0.0  ;;  %v7305_v35 = vld [vmem:[#allocation90_spill] sm:$0xff] }
 0x2c0   :  { %v7300_v26 = vmax.f32 %v5939_v5, 0.0  ;;  %v6144_v45 = vpack.i.bf16 %v1828_v57, %v1827_v22  ;;  %v6146_v20 = vpack.i.bf16 %v1826_v16, %v1825_v29  ;;  %v7302_v1 = vmax.f32 %v5975_v54, 0.0  ;;  %v7304_v5 = vld [vmem:[#allocation113_spill] sm:$0xff]  ;;  %v7306_v29 = vld [vmem:[#allocation112_spill] sm:$0xff]  ;;  %v7307_v54 = vld [vmem:[#allocation19_spill] sm:$0xff] }
 0x2c1   :  { %3319 = vperm.xlu1 %3282, %v6030_v43   ;;  %3314 = vperm.xlu0 %3276, %v3313_v60   ;;  %v1720_v43 = vadd.f32 %v5951_v4, %v7301_v11  ;;  %v7303_v40 = vmax.f32 %v5944_v41, 0.0  ;;  %v1829_v32 = vmax.f32 %v6122_v24, 0.0  ;;  %v1835_v50 = vmax.f32 %v6126_v36, 0.0 }
 0x2c2   :  { %v6142_v3 = vpack.i.bf16 %v7300_v26, %v1849_v34  ;;  %v1722_v34 = vadd.f32 %v5953_v31, %v7304_v5  ;;  %v1736_v7 = vadd.f32 %v5951_v4, %v7305_v35  ;;  %v3353_v22 = vpack.i.bf16 %v1814_v12, %v1813_v10  ;;  %v7309_v26 = vld [vmem:[#allocation87_spill] sm:$0xff] }
 0x2c3   :  { %v6154_v2 = vpack.i.bf16 %v7303_v40, %v7302_v1  ;;  %v1848_v57 = vmax.f32 %v1720_v43, 0.0  ;;  %v1738_v16 = vadd.f32 %v5953_v31, %v7306_v29  ;;  %v1723_v41 = vadd.f32 %v5980_v51, %v7307_v54  ;;  %v7311_v1 = vld [vmem:[#allocation125_spill] sm:$0xff] }
 0x2c4   :  { %v1830_v60 = vmax.f32 %v6135_v59, 0.0  ;;  %v1850_v37 = vmax.f32 %v1722_v34, 0.0  ;;  %v1864_v58 = vmax.f32 %v1736_v7, 0.0  ;;  %v1752_v15 = vadd.f32 %v5951_v4, %v7308_v56  ;;  %v7313_v34 = vld [vmem:[#allocation72_spill] sm:$0xff]  ;;  %v7315_v56 = vld [vmem:[#allocation99_spill] sm:$0xff] }
 0x2c5   :  { %3329 = vperm.xlu1 %3282, %v6068_v42   ;;  %3324 = vperm.xlu0 %3276, %v6032_v13   ;;  %v7310_v10 = vmax.f32 %v7309_v26, 0.0  ;;  %v1866_v11 = vmax.f32 %v1738_v16, 0.0  ;;  %v1851_v43 = vmax.f32 %v1723_v41, 0.0  ;;  %v1724_v40 = vadd.f32 %v5982_v17, %v7311_v1  ;;  %v7312_v13 = vld [vmem:[#allocation22_spill] sm:$0xff]  ;;  %v7316_v41 = vld [vmem:[#allocation88_spill] sm:$0xff]  ;;  %v7318_v1 = vld [vmem:[#allocation123_spill] sm:$0xff] }
 0x2c6   :  { %v6177_v5 = vpack.i.bf16 %v1850_v37, %v1864_v58  ;;  %v1880_v42 = vmax.f32 %v1752_v15, 0.0  ;;  %v1739_v35 = vadd.f32 %v5980_v51, %v7312_v13  ;;  %v1768_v7 = vadd.f32 %v5951_v4, %v7313_v34  ;;  %v7317_v4 = vld [vmem:[#allocation85_spill] sm:$0xff]  ;;  %v7319_v13 = vld [vmem:[#allocation139_spill] sm:$0xff] }
 0x2c7   :  { %v6173_v12 = vpack.i.bf16 %v1848_v57, %v7310_v10  ;;  %v7314_v29 = vmax.f32 %v5978_v61, 0.0  ;;  %v1852_v57 = vmax.f32 %v1724_v40, 0.0  ;;  %v1725_v16 = vadd.f32 %v6004_v18, %v7315_v56  ;;  %v7355_v59 = vld [vmem:[#allocation55_spill] sm:$0xff] }
 0x2c8   :  { %v1740_v26 = vadd.f32 %v5982_v17, %v7316_v41  ;;  %v6193_v37 = vpack.i.bf16 %v1851_v43, %v1880_v42  ;;  %v1867_v58 = vmax.f32 %v1739_v35, 0.0  ;;  %v1896_v15 = vmax.f32 %v1768_v7, 0.0  ;;  %v7321_v42 = vld [vmem:[#allocation136_spill] sm:$0xff]  ;;  %v7322_v41 = vld [vmem:[#allocation31_spill] sm:$0xff] }
 0x2c9   :  { %v6185_v54 = vpack.i.bf16 %v7314_v29, %v1866_v11  ;;  %3339 = vperm.xlu1 %3282, %v6086_v14   ;;  %3334 = vperm.xlu0 %3276, %v6076_v30   ;;  %v1754_v61 = vadd.f32 %v5953_v31, %v7317_v4  ;;  %v1853_v10 = vmax.f32 %v1725_v16, 0.0  ;;  %v1726_v40 = vadd.f32 %v6006_v39, %v7318_v1 }
 0x2ca   :  { %v1868_v11 = vmax.f32 %v1740_v26, 0.0  ;;  %v1741_v34 = vadd.f32 %v6004_v18, %v7319_v13  ;;  %v6201_v29 = vpack.i.bf16 %v1867_v58, %v1852_v57  ;;  %v7320_v14 = vmax.f32 %v5925_v63, 0.0 }
 0x2cb   :  { %v1882_v43 = vmax.f32 %v1754_v61, 0.0  ;;  %v1755_v35 = vadd.f32 %v5980_v51, %v7321_v42  ;;  %v1854_v56 = vmax.f32 %v1726_v40, 0.0  ;;  %v1770_v26 = vadd.f32 %v5953_v31, %v7322_v41  ;;  %v7325_v61 = vld [vmem:[#allocation58_spill] sm:$0xff]  ;;  %v7326_v40 = vld [vmem:[#allocation124_spill] sm:$0xff]  ;;  %v7327_v31 = vld [vmem:[#allocation141_spill] sm:$0xff] }
 0x2cc   :  { %v6205_v30 = vpack.i.bf16 %v1896_v15, %v7320_v14  ;;  %v6209_v7 = vpack.i.bf16 %v1868_v11, %v1853_v10  ;;  %v1869_v16 = vmax.f32 %v1741_v34, 0.0  ;;  %v7323_v57 = vmax.f32 %v5946_v48, 0.0  ;;  %v7324_v15 = vld [vmem:[#allocation23_spill] sm:$0xff]  ;;  %v7328_v34 = vld [vmem:[#allocation68_spill] sm:$0xff] }
 0x2cd   :  { %3349 = vperm.xlu1 %3282, %v3348_v9   ;;  %3344 = vperm.xlu0 %3276, %v3343_v62   ;;  %v1883_v63 = vmax.f32 %v1755_v35, 0.0  ;;  %v1727_v4 = vadd.f32 %v6026_v27, %v7324_v15  ;;  %v1742_v1 = vadd.f32 %v6006_v39, %v7325_v61  ;;  %v1898_v11 = vmax.f32 %v1770_v26, 0.0 }
 0x2ce   :  { %v6215_v58 = vpack.i.bf16 %v7323_v57, %v1882_v43  ;;  %v6221_v10 = vpack.i.bf16 %v1869_v16, %v1854_v56  ;;  %v1756_v13 = vadd.f32 %v5982_v17, %v7326_v40  ;;  %v1771_v62 = vadd.f32 %v5980_v51, %v7327_v31  ;;  %v7329_v43 = vld [vmem:[#allocation20_spill] sm:$0xff]  ;;  %v7330_v16 = vld [vmem:[#allocation115_spill] sm:$0xff] }
 0x2cf   :  { %v1855_v9 = vmax.f32 %v1727_v4, 0.0  ;;  %v1870_v48 = vmax.f32 %v1742_v1, 0.0  ;;  %v1713_v14 = vadd.f32 %v6050_v53, %v7328_v34  ;;  %v1728_v42 = vadd.f32 %v6028_v21, %v7329_v43  ;;  %v7331_v4 = vld [vmem:[#allocation15_spill] sm:$0xff]  ;;  %v7336_v43 = vld [vmem:[#allocation101_spill] sm:$0xff] }
 0x2d0   :  { %v6231_v35 = vpack.i.bf16 %v1898_v11, %v1883_v63  ;;  %v1884_v41 = vmax.f32 %v1756_v13, 0.0  ;;  %v1899_v56 = vmax.f32 %v1771_v62, 0.0  ;;  %v1757_v26 = vadd.f32 %v6004_v18, %v7330_v16  ;;  %v7332_v63 = vld [vmem:[#allocation82_spill] sm:$0xff]  ;;  %v7333_v13 = vld [vmem:[#allocation60_spill] sm:$0xff] }
 0x2d1   :  { %3359 = vperm.xlu1 %3282, %v6044_v44   ;;  %3354 = vperm.xlu0 %3276, %v3353_v22   ;;  %v6236_v57 = vpack.i.bf16 %v1870_v48, %v1855_v9  ;;  %v1841_v51 = vmax.f32 %v1713_v14, 0.0  ;;  %v1856_v15 = vmax.f32 %v1728_v42, 0.0  ;;  %v1772_v61 = vadd.f32 %v5982_v17, %v7331_v4  ;;  %v7334_v22 = vld [vmem:[#allocation117_spill] sm:$0xff]  ;;  %v7335_v48 = vld [vmem:[#allocation127_spill] sm:$0xff] }
 0x2d2   :  { %v6240_v1 = vpack.i.bf16 %v1899_v56, %v1884_v41  ;;  %v1885_v40 = vmax.f32 %v1757_v26, 0.0  ;;  %v1714_v11 = vadd.f32 %v6052_v6, %v7332_v63  ;;  %v1773_v31 = vadd.f32 %v6004_v18, %v7333_v13  ;;  %v7337_v41 = vld [vmem:[#allocation73_spill] sm:$0xff] }
 0x2d3   :  { %v6246_v62 = vpack.i.bf16 %v1856_v15, %v1841_v51  ;;  %v1900_v44 = vmax.f32 %v1772_v61, 0.0  ;;  %v1743_v9 = vadd.f32 %v6026_v27, %v7334_v22  ;;  %v1758_v34 = vadd.f32 %v6006_v39, %v7335_v48  ;;  %v7338_v15 = vld [vmem:[#allocation114_spill] sm:$0xff]  ;;  %v7339_v13 = vld [vmem:[#allocation45_spill] sm:$0xff] }
 0x2d4   :  { %v1842_v14 = vmax.f32 %v1714_v11, 0.0  ;;  %v1901_v17 = vmax.f32 %v1773_v31, 0.0  ;;  %v1759_v42 = vadd.f32 %v6026_v27, %v7336_v43  ;;  %v1774_v56 = vadd.f32 %v6006_v39, %v7337_v41  ;;  %v7342_v43 = vld [vmem:[#allocation111_spill] sm:$0xff] }
 0x2d5   :  { %3369 = vperm.xlu1 %3282, %v6070_v46   ;;  %3364 = vperm.xlu0 %3276, %v6064_v55   ;;  %v6258_v16 = vpack.i.bf16 %v1900_v44, %v1885_v40  ;;  %v1871_v26 = vmax.f32 %v1743_v9, 0.0  ;;  %v1886_v51 = vmax.f32 %v1758_v34, 0.0  ;;  %v1729_v4 = vadd.f32 %v6050_v53, %v7338_v15  ;;  %v7340_v46 = vld [vmem:[#allocation16_spill] sm:$0xff] }
 0x2d6   :  { %v6262_v61 = vpack.i.bf16 %v1842_v14, %v1901_v17  ;;  %v1887_v63 = vmax.f32 %v1759_v42, 0.0  ;;  %v1902_v11 = vmax.f32 %v1774_v56, 0.0  ;;  %v1744_v31 = vadd.f32 %v6028_v21, %v7339_v13  ;;  %v7341_v40 = vld [vmem:[#allocation140_spill] sm:$0xff]  ;;  %v7343_v17 = vld [vmem:[#allocation89_spill] sm:$0xff] }
 0x2d7   :  { %v6266_v22 = vpack.i.bf16 %v1886_v51, %v1871_v26  ;;  %v1857_v48 = vmax.f32 %v1729_v4, 0.0  ;;  %v1745_v55 = vadd.f32 %v6050_v53, %v7340_v46  ;;  %v1760_v44 = vadd.f32 %v6028_v21, %v7341_v40  ;;  %v7344_v26 = vld [vmem:[#allocation138_spill] sm:$0xff]  ;;  %v7345_v15 = vld [vmem:[#allocation48_spill] sm:$0xff] }
 0x2d8   :  { %v6272_v9 = vpack.i.bf16 %v1902_v11, %v1887_v63  ;;  %v1872_v34 = vmax.f32 %v1744_v31, 0.0  ;;  %v1715_v14 = vadd.f32 %v6072_v19, %v7342_v43  ;;  %v1730_v42 = vadd.f32 %v6052_v6, %v7343_v17  ;;  %v7346_v31 = vld [vmem:[#allocation98_spill] sm:$0xff] }
 0x2d9   :  { %3379 = vperm.xlu1 %3282, %v6112_v25   ;;  %3374 = vperm.xlu0 %3276, %v6118_v33   ;;  %v1873_v41 = vmax.f32 %v1745_v55, 0.0  ;;  %v1888_v56 = vmax.f32 %v1760_v44, 0.0  ;;  %v1731_v51 = vadd.f32 %v6072_v19, %v7344_v26  ;;  %v1746_v4 = vadd.f32 %v6052_v6, %v7345_v15  ;;  %v7347_v33 = vld [vmem:[#allocation13_spill] sm:$0xff]  ;;  %v7348_v17 = vld [vmem:[#allocation54_spill] sm:$0xff] }
 0x2da   :  { %v6284_v63 = vpack.i.bf16 %v1872_v34, %v1857_v48  ;;  %v1843_v11 = vmax.f32 %v1715_v14, 0.0  ;;  %v1858_v13 = vmax.f32 %v1730_v42, 0.0  ;;  %v1716_v46 = vadd.f32 %v6074_v28, %v7346_v31  ;;  %v7349_v42 = vld [vmem:[#allocation119_spill] sm:$0xff] }
 0x2db   :  { %v6288_v40 = vpack.i.bf16 %v1888_v56, %v1873_v41  ;;  %v1859_v25 = vmax.f32 %v1731_v51, 0.0  ;;  %v1874_v43 = vmax.f32 %v1746_v4, 0.0  ;;  %v1775_v55 = vadd.f32 %v6026_v27, %v7347_v33  ;;  %v7350_v56 = vld [vmem:[#allocation75_spill] sm:$0xff] }
 0x2dc   :  { %v1836_v44 = vmax.f32 %v6130_v23, 0.0  ;;  %v1711_v26 = vadd.f32 %v6026_v27, %v7348_v17  ;;  %v6295_v15 = vpack.i.bf16 %v1858_v13, %v1843_v11  ;;  %v1844_v48 = vmax.f32 %v1716_v46, 0.0  ;;  %v7351_v23 = vld [vmem:[#allocation57_spill] sm:$0xff]  ;;  %v7353_v11 = vld [vmem:[#allocation43_spill] sm:$0xff] }
 0x2dd   :  { %3389 = vperm.xlu1 %3282, %v6144_v45   ;;  %3384 = vperm.xlu0 %3276, %v6146_v20   ;;  %v6299_v34 = vpack.i.bf16 %v1874_v43, %v1859_v25  ;;  %v1903_v14 = vmax.f32 %v1775_v55, 0.0  ;;  %v1761_v41 = vadd.f32 %v6050_v53, %v7349_v42  ;;  %v1776_v51 = vadd.f32 %v6028_v21, %v7350_v56  ;;  %v7352_v45 = vld [vmem:[#allocation56_spill] sm:$0xff]  ;;  %v7354_v43 = vld [vmem:[#allocation70_spill] sm:$0xff] }
 0x2de   :  { %v3393_v27 = vpack.i.bf16 %v1830_v60, %v1829_v32  ;;  %v1712_v4 = vadd.f32 %v6028_v21, %v7351_v23  ;;  %v1709_v20 = vadd.f32 %v6004_v18, %v7352_v45  ;;  %v1710_v13 = vadd.f32 %v6006_v39, %v7353_v11  ;;  %v7357_v56 = vld [vmem:[#allocation62_spill] sm:$0xff]  ;;  %v7359_v23 = vld [vmem:[#allocation17_spill] sm:$0xff] }
 0x2df   :  { %v6315_v31 = vpack.i.bf16 %v1844_v48, %v1903_v14  ;;  %v1889_v46 = vmax.f32 %v1761_v41, 0.0  ;;  %v1904_v25 = vmax.f32 %v1776_v51, 0.0  ;;  %v1747_v33 = vadd.f32 %v6072_v19, %v7354_v43  ;;  %v7356_v41 = vld [vmem:[#allocation14_spill] sm:$0xff] }
 0x2e0   :  { %v1833_v24 = vmax.f32 %v5969_v0, 0.0  ;;  %v1762_v32 = vadd.f32 %v6052_v6, %v7355_v59  ;;  %v3408_v39 = vpack.i.bf16 %v1836_v44, %v1835_v50  ;;  %v1839_v17 = vmax.f32 %v1711_v26, 0.0  ;;  %v7358_v26 = vld [vmem:[#allocation137_spill] sm:$0xff] }
 0x2e1   :  { %3399 = vperm.xlu1 %3282, %v6080_v52   ;;  %3394 = vperm.xlu0 %3276, %v3393_v27   ;;  %v6323_v21 = vpack.i.bf16 %v1904_v25, %v1889_v46  ;;  %v1875_v18 = vmax.f32 %v1747_v33, 0.0  ;;  %v1840_v48 = vmax.f32 %v1712_v4, 0.0  ;;  %v1837_v14 = vmax.f32 %v1709_v20, 0.0  ;;  %v7369_v25 = vld [vmem:[#allocation12_spill] sm:$0xff] }
 0x2e2   :  { %v3403_v60 = vpack.i.bf16 %v1834_v8, %v1833_v24  ;;  %v1890_v55 = vmax.f32 %v1762_v32, 0.0  ;;  %v1838_v0 = vmax.f32 %v1710_v13, 0.0  ;;  %v1763_v52 = vadd.f32 %v6072_v19, %v7356_v41  ;;  %v7368_v13 = vld [vmem:[#allocation84_spill] sm:$0xff] }
 0x2e3   :  { %v1778_v51 = vadd.f32 %v6052_v6, %v7357_v56  ;;  %v3418_v44 = vpack.i.bf16 %v1840_v48, %v1839_v17  ;;  %v1764_v27 = vadd.f32 %v6074_v28, %v7358_v26  ;;  %v1779_v4 = vadd.f32 %v6072_v19, %v7359_v23  ;;  %v7360_v6 = vld [vmem:[#allocation69_spill] sm:$0xff]  ;;  %v1924_v33 = vld [vmem:[#allocation7 + $0x68] sm:$0xff] }
 0x2e4   :  { %v6329_v42 = vpack.i.bf16 %v1890_v55, %v1875_v18  ;;  %v1891_v36 = vmax.f32 %v1763_v52, 0.0  ;;  %v3413_v49 = vpack.i.bf16 %v1838_v0, %v1837_v14  ;;  %v1717_v19 = vadd.f32 %v6096_v47, %v7360_v6  ;;  %v1923_v55 = vld [vmem:[#allocation7 + $0x60] sm:$0xff]  ;;  %v7370_v0 = vld [vmem:[#allocation46_spill] sm:$0xff] }
 0x2e5   :  { %3409 = vperm.xlu1 %3282, %v3408_v39   ;;  %3404 = vperm.xlu0 %3276, %v3403_v60   ;;  %v1906_v50 = vmax.f32 %v1778_v51, 0.0  ;;  %v1892_v45 = vmax.f32 %v1764_v27, 0.0  ;;  %v1907_v20 = vmax.f32 %v1779_v4, 0.0  ;;  %v1766_v41 = vadd.f32 %v6098_v38, %v7370_v0  ;;  %v7371_v52 = vld [vmem:[#allocation74_spill] sm:$0xff]  ;;  %v7372_v51 = vld [vmem:[#allocation128_spill] sm:$0xff] }
 0x2e6   :  { %v1750_v56 = vadd.f32 %v6098_v38, %v7371_v52 }
 0x2e7   :  { %v6335_v8 = vpack.i.bf16 %v1906_v50, %v1891_v36  ;;  %v6341_v11 = vpack.i.bf16 %v1907_v20, %v1892_v45  ;;  %v1765_v36 = vadd.f32 %v6096_v47, %v7372_v51  ;;  %v7373_v20 = vld [vmem:[#allocation35_spill] sm:$0xff] }
 0x2e8   :  { %v1780_v6 = vadd.f32 %v6074_v28, %v7373_v20  ;;  %v1916_v20 = vld [vmem:[#allocation7 + $0x28] sm:$0xff] }
 0x2e9   :  { %3419 = vperm.xlu1 %3282, %v3418_v44   ;;  %3414 = vperm.xlu0 %3276, %v3413_v49   ;;  %v1922_v49 = vld [vmem:[#allocation7 + $0x58] sm:$0xff] }
 0x2ed   :  { %3429 = vperm.xlu1 %3282, %v6142_v3   ;;  %3424 = vperm.xlu0 %3276, %v6173_v12   ;;  %v7361_v3 = vld [vmem:[#allocation71_spill] sm:$0xff] }
 0x2ee   :  { %v7362_v12 = vld [vmem:[#allocation83_spill] sm:$0xff] }
 0x2f1   :  { %3439 = vperm.xlu1 %3282, %v6154_v2   ;;  %3434 = vperm.xlu0 %3276, %v6177_v5   ;;  %v1732_v2 = vadd.f32 %v6074_v28, %v7361_v3  ;;  %v1718_v5 = vadd.f32 %v6098_v38, %v7362_v12 }
 0x2f5   :  { %3449 = vperm.xlu1 %3282, %v6185_v54   ;;  %3444 = vperm.xlu0 %3276, %v6193_v37   ;;  %v1845_v54 = vmax.f32 %v1717_v19, 0.0  ;;  %v3694_v37 = vmov 0.0  }
 0x2f6   :  { %3229 = vmatprep.subr.mxu0 %v3694_v37  ;;  %3261 = vmatprep.mubr.msk.f32.mxu0 %vm3695_vm10, %v3694_v37  ;;  %vm3108_vm10 = vcmask 1041409  }
 0x2f9   :  { %3459 = vperm.xlu1 %3282, %v6201_v29   ;;  %3454 = vperm.xlu0 %3276, %v6205_v30   ;;  %v7363_v29 = vld [vmem:[#allocation47_spill] sm:$0xff] }
 0x2fa   :  { %v1777_v30 = vadd.f32 %v6050_v53, %v7363_v29  ;;  %v7367_v53 = vld [vmem:[#allocation59_spill] sm:$0xff]  ;;  %v1878_v29 = vmax.f32 %v1750_v56, 0.0 }
 0x2fd   :  { %3469 = vperm.xlu1 %3282, %v6209_v7   ;;  %3464 = vperm.xlu0 %3276, %v6215_v58   ;;  %v1860_v7 = vmax.f32 %v1732_v2, 0.0  ;;  %v1846_v58 = vmax.f32 %v1718_v5, 0.0  ;;  %v1921_v5 = vld [vmem:[#allocation7 + $0x50] sm:$0xff] }
 0x301   :  { %3479 = vperm.xlu1 %3282, %v6221_v10   ;;  %3474 = vperm.xlu0 %3276, %v6231_v35   ;;  %v1926_v10 = vld [vmem:[#allocation7 + $0x78] sm:$0xff]  ;;  %v3548_v35 = vpack.i.bf16 %v1860_v7, %v1845_v54  ;;  %v1894_v54 = vmax.f32 %v1766_v41, 0.0 }
 0x302   :  { %3230 = vmatpush3.msra.mxu0 %v1926_v10  ;;  %v7374_v7 = vld [vmem:[#allocation30_spill] sm:$0xff] }
 0x303   :  { %3231 = vmatprep.subr.mxu0 %v3694_v37 }
 0x305   :  { %3489 = vperm.xlu1 %3282, %v6236_v57   ;;  %3484 = vperm.xlu0 %3276, %v6240_v1   ;;  %v7364_v57 = vld [vmem:[#allocation33_spill] sm:$0xff] }
 0x306   :  { %v2450_v1 = vadd.s32 4294967288, %v7364_v57  ;;  %v6391_v43 = vsub.s32 %v7364_v57, %v7369_v25  ;;  %v2471_v32 = vadd.s32 4294967264, %v7364_v57  ;;  %v2485_v60 = vadd.s32 4294967248, %v7364_v57 }
 0x307   :  { %v2492_v45 = vadd.s32 4294967240, %v7364_v57  ;;  %v2513_v52 = vadd.s32 4294967216, %v7364_v57  ;;  %v2520_v56 = vadd.s32 4294967208, %v7364_v57 }
 0x308   :  { %v6394_v24 = vsub.s32 %v2450_v1, %v7369_v25  ;;  %v6415_v50 = vsub.s32 %v2471_v32, %v7369_v25  ;;  %v6421_v4 = vsub.s32 %v2485_v60, %v7369_v25  ;;  %v7375_v1 = vld [vmem:[#allocation86_spill] sm:$0xff] }
 0x309   :  { %3499 = vperm.xlu1 %3282, %v6246_v62   ;;  %3494 = vperm.xlu0 %3276, %v6258_v16   ;;  %v7365_v62 = vld [vmem:[#allocation126_spill] sm:$0xff] }
 0x30a   :  { %v1733_v16 = vadd.f32 %v6096_v47, %v7365_v62  ;;  %v1782_v62 = vadd.f32 %v6098_v38, %v7375_v1 }
 0x30c   :  { %v1861_v59 = vmax.f32 %v1733_v16, 0.0  ;;  %v6437_v16 = vsub.s32 %v2492_v45, %v7369_v25  ;;  %v1910_v32 = vmax.f32 %v1782_v62, 0.0  ;;  %v2541_v62 = vadd.s32 4294967184, %v7364_v57 }
 0x30d   :  { %3509 = vperm.xlu1 %3282, %v6262_v61   ;;  %3504 = vperm.xlu0 %3276, %v6266_v22   ;;  %v1925_v61 = vld [vmem:[#allocation7 + $0x70] sm:$0xff]  ;;  %v1905_v22 = vmax.f32 %v1777_v30, 0.0  ;;  %v1893_v30 = vmax.f32 %v1765_v36, 0.0 }
 0x30e   :  { %3232 = vmatpush3.msra.mxu0 %v1925_v61  ;;  %v1908_v61 = vmax.f32 %v1780_v6, 0.0 }
 0x30f   :  { %v3558_v46 = vpack.i.bf16 %v1846_v58, %v1905_v22  ;;  %3233 = vmatprep.subr.mxu0 %v3694_v37  ;;  %v1781_v58 = vadd.f32 %v6096_v47, %v7374_v7  ;;  %v2499_v22 = vadd.s32 4294967232, %v7364_v57 }
 0x310   :  { %3234 = vmatpush3.msra.mxu0 %v1924_v33 }
 0x311   :  { %3519 = vperm.xlu1 %3282, %v6272_v9   ;;  %3514 = vperm.xlu0 %3276, %v6284_v63   ;;  %v7366_v9 = vld [vmem:[#allocation44_spill] sm:$0xff] }
 0x312   :  { %v1734_v63 = vadd.f32 %v6098_v38, %v7366_v9  ;;  %3235 = vmatprep.subr.mxu0 %v3694_v37  ;;  %v1920_v9 = vld [vmem:[#allocation7 + $0x48] sm:$0xff] }
 0x313   :  { %3236 = vmatpush3.msra.mxu0 %v1923_v55  ;;  %v6452_v55 = vsub.s32 %v2499_v22, %v7369_v25 }
 0x314   :  { %v1862_v18 = vmax.f32 %v1734_v63, 0.0  ;;  %3237 = vmatprep.subr.mxu0 %v3694_v37 }
 0x315   :  { %3529 = vperm.xlu1 %3282, %v6288_v40   ;;  %3524 = vperm.xlu0 %3276, %v6295_v15   ;;  %v1749_v40 = vadd.f32 %v6096_v47, %v7367_v53  ;;  %v2457_v15 = vadd.s32 4294967280, %v7364_v57  ;;  %v2506_v47 = vadd.s32 4294967224, %v7364_v57 }
 0x316   :  { %3238 = vmatpush3.msra.mxu0 %v1922_v49  ;;  %v1917_v49 = vld [vmem:[#allocation7 + $0x30] sm:$0xff] }
 0x317   :  { %v1877_v39 = vmax.f32 %v1749_v40, 0.0  ;;  %v6402_v17 = vsub.s32 %v2457_v15, %v7369_v25  ;;  %3239 = vmatprep.subr.mxu0 %v3694_v37  ;;  %v6456_v41 = vsub.s32 %v2506_v47, %v7369_v25  ;;  %v2548_v47 = vadd.s32 4294967176, %v7364_v57 }
 0x318   :  { %3240 = vmatpush3.msra.mxu0 %v1921_v5  ;;  %v6474_v5 = vsub.s32 %v2520_v56, %v7369_v25 }
 0x319   :  { %3539 = vperm.xlu1 %3282, %v6299_v34   ;;  %3534 = vperm.xlu0 %3276, %v6315_v31   ;;  %v2464_v34 = vadd.s32 4294967272, %v7364_v57  ;;  %v1748_v31 = vadd.f32 %v6074_v28, %v7368_v13  ;;  %v3573_v23 = vpack.i.bf16 %v1877_v39, %v1862_v18  ;;  %v3583_v13 = vpack.i.bf16 %v1893_v30, %v1878_v29  ;;  %v1915_v29 = vld [vmem:[#allocation7 + $0x20] sm:$0xff] }
 0x31a   :  { %3241 = vmatprep.subr.mxu0 %v3694_v37 }
 0x31b   :  { %v6405_v48 = vsub.s32 %v2464_v34, %v7369_v25  ;;  %v1876_v14 = vmax.f32 %v1748_v31, 0.0  ;;  %v3588_v34 = vpack.i.bf16 %v1894_v54, %v1908_v61  ;;  %v1909_v31 = vmax.f32 %v1781_v58, 0.0  ;;  %3242 = vmatpush3.msra.mxu0 %v1920_v9  ;;  %v1913_v9 = vld [vmem:[#allocation7 + $0x10] sm:$0xff] }
 0x31c   :  { %3243 = vmatprep.subr.mxu0 %v3694_v37  ;;  %v2534_v54 = vadd.s32 4294967192, %v7364_v57 }
 0x31d   :  { %3549 = vperm.xlu1 %3282, %v3548_v35   ;;  %3544 = vperm.xlu0 %3276, %v6323_v21   ;;  %v2478_v21 = vadd.s32 4294967256, %v7364_v57 }
 0x31e   :  { %v6488_v22 = vsub.s32 %v2534_v54, %v7369_v25 }
 0x31f   :  { %v6418_v44 = vsub.s32 %v2478_v21, %v7369_v25  ;;  %v1919_v21 = vld [vmem:[#allocation7 + $0x40] sm:$0xff] }
 0x320   :  { %3244 = vmatpush3.msra.mxu0 %v1919_v21 }
 0x321   :  { %3559 = vperm.xlu1 %3282, %v3558_v46   ;;  %3554 = vperm.xlu0 %3276, %v6329_v42   ;;  %v3563_v42 = vpack.i.bf16 %v1876_v14, %v1861_v59  ;;  %v1918_v14 = vld [vmem:[#allocation7 + $0x38] sm:$0xff] }
 0x322   :  { %3245 = vmatprep.subr.mxu0 %v3694_v37 }
 0x323   :  { %v3285_v27 = vpop.permute.xlu1 %3284  ;;  %3246 = vmatpush3.msra.mxu0 %v1918_v14 }
 0x324   :  { %v3279_v26 = vpop.permute.xlu0 %3278  ;;  %v3287_v2 = vunpack.i.h.bf16 %v3285_v27  ;;  %v3286_v12 = vunpack.i.l.bf16 %v3285_v27  ;;  %3247 = vmatprep.subr.mxu0 %v3694_v37 }
 0x325   :  { %v3281_v19 = vunpack.i.h.bf16 %v3279_v26  ;;  %v3280_v3 = vunpack.i.l.bf16 %v3279_v26  ;;  %3569 = vperm.xlu1 %3282, %v6335_v8   ;;  %3564 = vperm.xlu0 %3276, %v3563_v42   ;;  %v3593_v42 = vpack.i.bf16 %v1910_v32, %v1909_v31  ;;  %v6498_v31 = vsub.s32 %v2541_v62, %v7369_v25 }
 0x326   :  { %v2461_v35 = vrot.slane %v3286_v12, %v6402_v17  ;;  %v2468_v53 = vrot.slane %v3287_v2, %v6405_v48  ;;  %3248 = vmatpush3.msra.mxu0 %v1917_v49 }
 0x327   :  { %v2454_v10 = vrot.slane %v3281_v19, %v6394_v24  ;;  %v2449_v28 = vrot.slane %v3280_v3, %v6391_v43  ;;  %v6468_v19 = vsub.s32 %v2513_v52, %v7369_v25  ;;  %v2527_v3 = vadd.s32 4294967200, %v7364_v57  ;;  %3249 = vmatprep.subr.mxu0 %v3694_v37 }
 0x328   :  { %v3290_v8 = vpop.permute.xlu1 %3289  ;;  %3250 = vmatpush3.msra.mxu0 %v1916_v20 }
 0x329   :  { %v2456_v63 = vsel %vm2455_vm3, %v2454_v10, %v2449_v28  ;;  %v3292_v40 = vunpack.i.h.bf16 %v3290_v8  ;;  %v3291_v15 = vunpack.i.l.bf16 %v3290_v8  ;;  %3579 = vperm.xlu1 %3282, %v6341_v11   ;;  %3574 = vperm.xlu0 %3276, %v3573_v23   ;;  %v1914_v28 = vld [vmem:[#allocation7 + $0x18] sm:$0xff]  ;;  %v6482_v1 = vsub.s32 %v2527_v3, %v7369_v25 }
 0x32a   :  { %v2463_v38 = vsel %vm2462_vm4, %v2461_v35, %v2456_v63  ;;  %3251 = vmatprep.subr.mxu0 %v3694_v37 }
 0x32b   :  { %v2470_v46 = vsel %vm2469_vm5, %v2468_v53, %v2463_v38  ;;  %v2482_v33 = vrot.slane %v3292_v40, %v6418_v44  ;;  %v2475_v59 = vrot.slane %v3291_v15, %v6415_v50  ;;  %3252 = vmatpush3.msra.mxu0 %v1915_v29  ;;  %v1912_v38 = vld [vmem:[#allocation7 + $0x8] sm:$0xff] }
 0x32c   :  { %v3295_v11 = vpop.permute.xlu0 %3294  ;;  %3253 = vmatprep.subr.mxu0 %v3694_v37 }
 0x32d   :  { %v2477_v18 = vsel %vm2476_vm6, %v2475_v59, %v2470_v46  ;;  %v3297_v39 = vunpack.i.h.bf16 %v3295_v11  ;;  %v3296_v60 = vunpack.i.l.bf16 %v3295_v11  ;;  %3589 = vperm.xlu1 %3282, %v3588_v34   ;;  %3584 = vperm.xlu0 %3276, %v3583_v13   ;;  %v6501_v46 = vsub.s32 %v2548_v47, %v7369_v25 }
 0x32e   :  { %v2484_v0 = vsel %vm2483_vm7, %v2482_v33, %v2477_v18  ;;  %3254 = vmatpush3.msra.mxu0 %v1914_v28  ;;  %v1911_v33 = vld [vmem:[#allocation7] sm:$0xff] }
 0x32f   :  { %v2496_v51 = vrot.slane %v3297_v39, %v6437_v16  ;;  %v2489_v36 = vrot.slane %v3296_v60, %v6421_v4  ;;  %3255 = vmatprep.subr.mxu0 %v3694_v37 }
 0x330   :  { %v3300_v26 = vpop.permute.xlu1 %3299  ;;  %3256 = vmatpush3.msra.mxu0 %v1913_v9 }
 0x331   :  { %v2491_v27 = vsel %vm2490_vm8, %v2489_v36, %v2484_v0  ;;  %v3302_v23 = vunpack.i.h.bf16 %v3300_v26  ;;  %v3301_v45 = vunpack.i.l.bf16 %v3300_v26  ;;  %3594 = vperm.xlu0 %3276, %v3593_v42   ;;  %3257 = vmatprep.subr.mxu0 %v3694_v37 }
 0x332   :  { %v2498_v6 = vsel %vm2497_vm9, %v2496_v51, %v2491_v27  ;;  %3258 = vmatpush3.msra.mxu0 %v1912_v38 }
 0x333   :  { %v2510_v2 = vrot.slane %v3302_v23, %v6456_v41  ;;  %v2503_v12 = vrot.slane %v3301_v45, %v6452_v55  ;;  %3259 = vmatprep.subr.mxu0 %v3694_v37 }
 0x334   :  { %v3305_v30 = vpop.permute.xlu0 %3304  ;;  %3260 = vmatpush3.msra.mxu0 %v1911_v33 }
 0x335   :  { %v2505_v7 = vsel %vm2504_vm11, %v2503_v12, %v2498_v6  ;;  %v3307_v58 = vunpack.i.h.bf16 %v3305_v30  ;;  %v3306_v10 = vunpack.i.l.bf16 %v3305_v30 }
 0x336   :  { %v2512_v35 = vsel %vm2511_vm12, %v2510_v2, %v2505_v7 }
 0x337   :  { %v2524_v8 = vrot.slane %v3307_v58, %v6474_v5  ;;  %v2517_v61 = vrot.slane %v3306_v10, %v6468_v19 }
 0x338   :  { %v3310_v63 = vpop.permute.xlu1 %3309 }
 0x339   :  { %v2519_v53 = vsel %vm2518_vm13, %v2517_v61, %v2512_v35  ;;  %v3312_v40 = vunpack.i.h.bf16 %v3310_v63  ;;  %v3311_v15 = vunpack.i.l.bf16 %v3310_v63 }
 0x33a   :  { %v2526_v34 = vsel %vm2525_vm14, %v2524_v8, %v2519_v53 }
 0x33b   :  { %v2538_v13 = vrot.slane %v3312_v40, %v6488_v22  ;;  %v2531_v57 = vrot.slane %v3311_v15, %v6482_v1 }
 0x33c   :  { %v3315_v59 = vpop.permute.xlu0 %3314  ;;  %v3320_v32 = vpop.permute.xlu1 %3319 }
 0x33d   :  { %v2533_v21 = vsel %vm2532_vm15, %v2531_v57, %v2526_v34  ;;  %v3317_v11 = vunpack.i.h.bf16 %v3315_v59  ;;  %v3316_v18 = vunpack.i.l.bf16 %v3315_v59  ;;  %v3322_v39 = vunpack.i.h.bf16 %v3320_v32 }
 0x33e   :  { %v2540_v60 = vsel %vm2539_vm0, %v2538_v13, %v2533_v21  ;;  %v3321_v14 = vunpack.i.l.bf16 %v3320_v32 }
 0x33f   :  { %v2552_v25 = vrot.slane %v3317_v11, %v6501_v46  ;;  %v2545_v0 = vrot.slane %v3316_v18, %v6498_v31  ;;  %v2562_v52 = vrot.slane %v3322_v39, %v6394_v24 }
 0x340   :  { %v2558_v56 = vrot.slane %v3321_v14, %v6391_v43  ;;  %v3325_v51 = vpop.permute.xlu0 %3324  ;;  %v3330_v36 = vpop.permute.xlu1 %3329 }
 0x341   :  { %v2547_v42 = vsel %vm2546_vm1, %v2545_v0, %v2540_v60  ;;  %v3327_v49 = vunpack.i.h.bf16 %v3325_v51  ;;  %v3326_v37 = vunpack.i.l.bf16 %v3325_v51  ;;  %v3332_v27 = vunpack.i.h.bf16 %v3330_v36 }
 0x342   :  { %v2554_v26 = vsel %vm2553_vm2, %v2552_v25, %v2547_v42  ;;  %v3331_v23 = vunpack.i.l.bf16 %v3330_v36  ;;  %v2563_v6 = vsel %vm2455_vm3, %v2562_v52, %v2558_v56 }
 0x343   :  { %v2572_v45 = vrot.slane %v3327_v49, %v6405_v48  ;;  %v2567_v20 = vrot.slane %v3326_v37, %v6402_v17  ;;  %v2582_v58 = vrot.slane %v3332_v27, %v6418_v44 }
 0x344   :  { %v3335_v3 = vpop.permute.xlu0 %3334  ;;  %v3340_v2 = vpop.permute.xlu1 %3339  ;;  %v2577_v54 = vrot.slane %v3331_v23, %v6415_v50 }
 0x345   :  { %v2568_v12 = vsel %vm2462_vm4, %v2567_v20, %v2563_v6  ;;  %v3337_v29 = vunpack.i.h.bf16 %v3335_v3  ;;  %v3336_v30 = vunpack.i.l.bf16 %v3335_v3  ;;  %v3342_v10 = vunpack.i.h.bf16 %v3340_v2 }
 0x346   :  { %v2573_v7 = vsel %vm2469_vm5, %v2572_v45, %v2568_v12  ;;  %v3341_v28 = vunpack.i.l.bf16 %v3340_v2 }
 0x347   :  { %v2578_v35 = vsel %vm2476_vm6, %v2577_v54, %v2573_v7  ;;  %v2592_v62 = vrot.slane %v3337_v29, %v6437_v16  ;;  %v2587_v8 = vrot.slane %v3336_v30, %v6421_v4  ;;  %v2602_v34 = vrot.slane %v3342_v10, %v6456_v41 }
 0x348   :  { %v2583_v61 = vsel %vm2483_vm7, %v2582_v58, %v2578_v35  ;;  %v3345_v47 = vpop.permute.xlu0 %3344  ;;  %v3350_v9 = vpop.permute.xlu1 %3349  ;;  %v2597_v53 = vrot.slane %v3341_v28, %v6452_v55 }
 0x349   :  { %v2588_v63 = vsel %vm2490_vm8, %v2587_v8, %v2583_v61  ;;  %v3347_v40 = vunpack.i.h.bf16 %v3345_v47  ;;  %v3346_v15 = vunpack.i.l.bf16 %v3345_v47  ;;  %v3352_v13 = vunpack.i.h.bf16 %v3350_v9 }
 0x34a   :  { %v2593_v38 = vsel %vm2497_vm9, %v2592_v62, %v2588_v63  ;;  %v3351_v57 = vunpack.i.l.bf16 %v3350_v9 }
 0x34b   :  { %v2598_v33 = vsel %vm2504_vm11, %v2597_v53, %v2593_v38  ;;  %v2612_v59 = vrot.slane %v3347_v40, %v6474_v5  ;;  %v2607_v32 = vrot.slane %v3346_v15, %v6468_v19  ;;  %v2622_v56 = vrot.slane %v3352_v13, %v6488_v22 }
 0x34c   :  { %v2603_v21 = vsel %vm2511_vm12, %v2602_v34, %v2598_v33  ;;  %v2617_v11 = vrot.slane %v3351_v57, %v6482_v1  ;;  %v3355_v18 = vpop.permute.xlu0 %3354  ;;  %v3360_v39 = vpop.permute.xlu1 %3359 }
 0x34d   :  { %v2608_v60 = vsel %vm2518_vm13, %v2607_v32, %v2603_v21  ;;  %v3357_v14 = vunpack.i.h.bf16 %v3355_v18  ;;  %v3356_v25 = vunpack.i.l.bf16 %v3355_v18  ;;  %v3362_v0 = vunpack.i.h.bf16 %v3360_v39 }
 0x34e   :  { %v2613_v52 = vsel %vm2525_vm14, %v2612_v59, %v2608_v60  ;;  %v3361_v51 = vunpack.i.l.bf16 %v3360_v39 }
 0x34f   :  { %v2618_v36 = vsel %vm2532_vm15, %v2617_v11, %v2613_v52  ;;  %v2632_v42 = vrot.slane %v3357_v14, %v6501_v46  ;;  %v2627_v49 = vrot.slane %v3356_v25, %v6498_v31  ;;  %v2641_v27 = vrot.slane %v3362_v0, %v6394_v24 }
 0x350   :  { %v2623_v37 = vsel %vm2539_vm0, %v2622_v56, %v2618_v36  ;;  %v2637_v23 = vrot.slane %v3361_v51, %v6391_v43  ;;  %v3365_v45 = vpop.permute.xlu0 %3364  ;;  %v3370_v20 = vpop.permute.xlu1 %3369 }
 0x351   :  { %v2628_v6 = vsel %vm2546_vm1, %v2627_v49, %v2623_v37  ;;  %v3367_v3 = vunpack.i.h.bf16 %v3365_v45  ;;  %v3366_v2 = vunpack.i.l.bf16 %v3365_v45  ;;  %v3372_v54 = vunpack.i.h.bf16 %v3370_v20 }
 0x352   :  { %v2633_v12 = vsel %vm2553_vm2, %v2632_v42, %v2628_v6  ;;  %v3371_v29 = vunpack.i.l.bf16 %v3370_v20  ;;  %v2642_v10 = vsel %vm2455_vm3, %v2641_v27, %v2637_v23 }
 0x353   :  { %v3109_v30 = vsel %vm3108_vm10, %v2633_v12, %v2554_v26  ;;  %v2651_v7 = vrot.slane %v3367_v3, %v6405_v48  ;;  %v2646_v58 = vrot.slane %v3366_v2, %v6402_v17  ;;  %v2661_v63 = vrot.slane %v3372_v54, %v6418_v44 }
 0x354   :  { %v3375_v28 = vpop.permute.xlu0 %3374  ;;  %v3380_v35 = vpop.permute.xlu1 %3379  ;;  %v2656_v8 = vrot.slane %v3371_v29, %v6415_v50  ;;  %vm3110_vm10 = vcmask 1042434  }
 0x355   :  { %v2647_v62 = vsel %vm2462_vm4, %v2646_v58, %v2642_v10  ;;  %v3377_v61 = vunpack.i.h.bf16 %v3375_v28  ;;  %v3376_v47 = vunpack.i.l.bf16 %v3375_v28  ;;  %v3382_v53 = vunpack.i.h.bf16 %v3380_v35 }
 0x356   :  { %v2652_v9 = vsel %vm2469_vm5, %v2651_v7, %v2647_v62  ;;  %v3381_v26 = vunpack.i.l.bf16 %v3380_v35 }
 0x357   :  { %v2657_v40 = vsel %vm2476_vm6, %v2656_v8, %v2652_v9  ;;  %v2671_v15 = vrot.slane %v3377_v61, %v6437_v16  ;;  %v2666_v38 = vrot.slane %v3376_v47, %v6421_v4  ;;  %v2681_v18 = vrot.slane %v3382_v53, %v6456_v41 }
 0x358   :  { %v2662_v34 = vsel %vm2483_vm7, %v2661_v63, %v2657_v40  ;;  %v3385_v13 = vpop.permute.xlu0 %3384  ;;  %v3390_v57 = vpop.permute.xlu1 %3389  ;;  %v2676_v59 = vrot.slane %v3381_v26, %v6452_v55 }
 0x359   :  { %v2667_v33 = vsel %vm2490_vm8, %v2666_v38, %v2662_v34  ;;  %v3387_v32 = vunpack.i.h.bf16 %v3385_v13  ;;  %v3386_v21 = vunpack.i.l.bf16 %v3385_v13  ;;  %v3392_v39 = vunpack.i.h.bf16 %v3390_v57 }
 0x35a   :  { %v2672_v11 = vsel %vm2497_vm9, %v2671_v15, %v2667_v33  ;;  %v3391_v60 = vunpack.i.l.bf16 %v3390_v57 }
 0x35b   :  { %v2677_v14 = vsel %vm2504_vm11, %v2676_v59, %v2672_v11  ;;  %v2691_v25 = vrot.slane %v3387_v32, %v6474_v5  ;;  %v2686_v0 = vrot.slane %v3386_v21, %v6468_v19  ;;  %v2701_v23 = vrot.slane %v3392_v39, %v6488_v22 }
 0x35c   :  { %v2682_v52 = vsel %vm2511_vm12, %v2681_v18, %v2677_v14  ;;  %v3395_v56 = vpop.permute.xlu0 %3394  ;;  %v3400_v51 = vpop.permute.xlu1 %3399  ;;  %v2696_v42 = vrot.slane %v3391_v60, %v6482_v1 }
 0x35d   :  { %v2687_v36 = vsel %vm2518_vm13, %v2686_v0, %v2682_v52  ;;  %v3397_v49 = vunpack.i.h.bf16 %v3395_v56  ;;  %v3396_v37 = vunpack.i.l.bf16 %v3395_v56  ;;  %v3402_v7 = vunpack.i.h.bf16 %v3400_v51 }
 0x35e   :  { %v2692_v27 = vsel %vm2525_vm14, %v2691_v25, %v2687_v36  ;;  %v3401_v58 = vunpack.i.l.bf16 %v3400_v51 }
 0x35f   :  { %v2697_v45 = vsel %vm2532_vm15, %v2696_v42, %v2692_v27  ;;  %v2711_v20 = vrot.slane %v3397_v49, %v6501_v46  ;;  %v2706_v6 = vrot.slane %v3396_v37, %v6498_v31  ;;  %v2720_v8 = vrot.slane %v3402_v7, %v6394_v24 }
 0x360   :  { %v2702_v3 = vsel %vm2539_vm0, %v2701_v23, %v2697_v45  ;;  %v3405_v2 = vpop.permute.xlu0 %3404  ;;  %v3410_v12 = vpop.permute.xlu1 %3409  ;;  %v2716_v61 = vrot.slane %v3401_v58, %v6391_v43 }
 0x361   :  { %v2707_v54 = vsel %vm2546_vm1, %v2706_v6, %v2702_v3  ;;  %v3406_v28 = vunpack.i.l.bf16 %v3405_v2  ;;  %v3407_v47 = vunpack.i.h.bf16 %v3405_v2  ;;  %v3412_v57 = vunpack.i.h.bf16 %v3410_v12 }
 0x362   :  { %v2712_v29 = vsel %vm2553_vm2, %v2711_v20, %v2707_v54  ;;  %v2721_v26 = vsel %vm2455_vm3, %v2720_v8, %v2716_v61 }
 0x363   :  { %v6573_v10 = vsel %vm3110_vm10, %v2712_v29, %v3109_v30  ;;  %v2725_v9 = vrot.slane %v3406_v28, %v6402_v17  ;;  %v2730_v40 = vrot.slane %v3407_v47, %v6405_v48  ;;  %v3411_v30 = vunpack.i.l.bf16 %v3410_v12 }
 0x364   :  { %v3415_v35 = vpop.permute.xlu0 %3414  ;;  %v3420_v62 = vpop.permute.xlu1 %3419  ;;  %v2740_v18 = vrot.slane %v3412_v57, %v6418_v44 }
 0x365   :  { %v2726_v15 = vsel %vm2462_vm4, %v2725_v9, %v2721_v26  ;;  %v2735_v33 = vrot.slane %v3411_v30, %v6415_v50  ;;  %v3416_v59 = vunpack.i.l.bf16 %v3415_v35  ;;  %v3417_v39 = vunpack.i.h.bf16 %v3415_v35 }
 0x366   :  { %v2731_v13 = vsel %vm2469_vm5, %v2730_v40, %v2726_v15  ;;  %v3421_v42 = vunpack.i.l.bf16 %v3420_v62  ;;  %v3422_v45 = vunpack.i.h.bf16 %v3420_v62 }
 0x367   :  { %v2736_v11 = vsel %vm2476_vm6, %v2735_v33, %v2731_v13  ;;  %v2745_v60 = vrot.slane %v3416_v59, %v6421_v4  ;;  %v2750_v52 = vrot.slane %v3417_v39, %v6437_v16 }
 0x368   :  { %v3425_v63 = vpop.permute.xlu0 %3424  ;;  %v3430_v53 = vpop.permute.xlu1 %3429  ;;  %v2741_v14 = vsel %vm2483_vm7, %v2740_v18, %v2736_v11  ;;  %v2755_v29 = vrot.slane %v3421_v42, %v6452_v55  ;;  %v2760_v62 = vrot.slane %v3422_v45, %v6456_v41 }
 0x369   :  { %v2746_v56 = vsel %vm2490_vm8, %v2745_v60, %v2741_v14  ;;  %v3427_v51 = vunpack.i.h.bf16 %v3425_v63  ;;  %v3426_v36 = vunpack.i.l.bf16 %v3425_v63  ;;  %v3432_v20 = vunpack.i.h.bf16 %v3430_v53 }
 0x36a   :  { %v2751_v23 = vsel %vm2497_vm9, %v2750_v52, %v2746_v56  ;;  %v3431_v6 = vunpack.i.l.bf16 %v3430_v53 }
 0x36b   :  { %v2799_v3 = vrot.slane %v3427_v51, %v6394_v24  ;;  %v2795_v2 = vrot.slane %v3426_v36, %v6391_v43  ;;  %v2756_v61 = vsel %vm2504_vm11, %v2755_v29, %v2751_v23  ;;  %v2874_v47 = vrot.slane %v3432_v20, %v6391_v43 }
 0x36c   :  { %v3435_v38 = vpop.permute.xlu0 %3434  ;;  %v3440_v34 = vpop.permute.xlu1 %3439  ;;  %v2804_v9 = vrot.slane %v3431_v6, %v6402_v17  ;;  %v6611_v33 = vsel %vm2511_vm12, %v2760_v62, %v2756_v61 }
 0x36d   :  { %v3436_v49 = vunpack.i.l.bf16 %v3435_v38  ;;  %v3437_v12 = vunpack.i.h.bf16 %v3435_v38  ;;  %v3441_v54 = vunpack.i.l.bf16 %v3440_v34  ;;  %v2800_v63 = vsel %vm2455_vm3, %v2799_v3, %v2795_v2 }
 0x36e   :  { %v3442_v26 = vunpack.i.h.bf16 %v3440_v34  ;;  %v2805_v18 = vsel %vm2462_vm4, %v2804_v9, %v2800_v63 }
 0x36f   :  { %v2878_v7 = vrot.slane %v3436_v49, %v6394_v24  ;;  %v2809_v53 = vrot.slane %v3437_v12, %v6405_v48  ;;  %v2883_v40 = vrot.slane %v3441_v54, %v6402_v17 }
 0x370   :  { %v3445_v32 = vpop.permute.xlu0 %3444  ;;  %v3450_v21 = vpop.permute.xlu1 %3449 }
 0x371   :  { %v3447_v35 = vunpack.i.h.bf16 %v3445_v32  ;;  %v3446_v8 = vunpack.i.l.bf16 %v3445_v32  ;;  %v2879_v15 = vsel %vm2455_vm3, %v2878_v7, %v2874_v47  ;;  %v3452_v30 = vunpack.i.h.bf16 %v3450_v21 }
 0x372   :  { %v3451_v38 = vunpack.i.l.bf16 %v3450_v21  ;;  %v2810_v14 = vsel %vm2469_vm5, %v2809_v53, %v2805_v18  ;;  %v2953_v21 = vrot.slane %v3442_v26, %v6391_v43  ;;  %v2884_v52 = vsel %vm2462_vm4, %v2883_v40, %v2879_v15 }
 0x373   :  { %v2814_v59 = vrot.slane %v3447_v35, %v6415_v50  ;;  %v2957_v32 = vrot.slane %v3446_v8, %v6394_v24  ;;  %v2962_v51 = vrot.slane %v3452_v30, %v6402_v17 }
 0x374   :  { %v3455_v25 = vpop.permute.xlu0 %3454  ;;  %v3460_v0 = vpop.permute.xlu1 %3459  ;;  %v2888_v36 = vrot.slane %v3451_v38, %v6405_v48 }
 0x375   :  { %v3457_v11 = vunpack.i.h.bf16 %v3455_v25  ;;  %v3456_v34 = vunpack.i.l.bf16 %v3455_v25  ;;  %v3462_v39 = vunpack.i.h.bf16 %v3460_v0  ;;  %v3461_v60 = vunpack.i.l.bf16 %v3460_v0 }
 0x376   :  { %v2815_v25 = vsel %vm2476_vm6, %v2814_v59, %v2810_v14  ;;  %v2958_v0 = vsel %vm2455_vm3, %v2957_v32, %v2953_v21 }
 0x377   :  { %v3036_v20 = vrot.slane %v3457_v11, %v6394_v24  ;;  %v3032_v3 = vrot.slane %v3456_v34, %v6391_v43  ;;  %v2893_v2 = vrot.slane %v3462_v39, %v6415_v50  ;;  %v2819_v12 = vrot.slane %v3461_v60, %v6418_v44 }
 0x378   :  { %v3465_v37 = vpop.permute.xlu0 %3464  ;;  %v6589_v27 = vpop.permute.xlu1 %3469  ;;  %v2889_v24 = vsel %vm2469_vm5, %v2888_v36, %v2884_v52  ;;  %v2963_v47 = vsel %vm2462_vm4, %v2962_v51, %v2958_v0 }
 0x379   :  { %v3466_v56 = vunpack.i.l.bf16 %v3465_v37  ;;  %v3467_v42 = vunpack.i.h.bf16 %v3465_v37  ;;  %v3472_v49 = vunpack.i.h.bf16 %v6589_v27  ;;  %v3471_v6 = vunpack.i.l.bf16 %v6589_v27 }
 0x37a   :  { %v3037_v53 = vsel %vm2455_vm3, %v3036_v20, %v3032_v3  ;;  %v2894_v26 = vsel %vm2476_vm6, %v2893_v2, %v2889_v24  ;;  %vm3112_vm3 = vcmask 1043459  }
 0x37b   :  { %v2967_v54 = vrot.slane %v3466_v56, %v6405_v48  ;;  %v3041_v27 = vrot.slane %v3467_v42, %v6402_v17  ;;  %v2898_v43 = vrot.slane %v3472_v49, %v6418_v44  ;;  %v2824_v9 = vrot.slane %v3471_v6, %v6421_v4 }
 0x37c   :  { %v6596_v58 = vpop.permute.xlu0 %3474  ;;  %v6598_v28 = vpop.permute.xlu1 %3479 }
 0x37d   :  { %v3477_v37 = vunpack.i.h.bf16 %v6596_v58  ;;  %v3476_v29 = vunpack.i.l.bf16 %v6596_v58  ;;  %v3482_v7 = vunpack.i.h.bf16 %v6598_v28  ;;  %v3481_v35 = vunpack.i.l.bf16 %v6598_v28 }
 0x37e   :  { %v2820_v28 = vsel %vm2483_vm7, %v2819_v12, %v2815_v25  ;;  %v2968_v40 = vsel %vm2469_vm5, %v2967_v54, %v2963_v47  ;;  %v2899_v59 = vsel %vm2483_vm7, %v2898_v43, %v2894_v26 }
 0x37f   :  { %v3046_v17 = vrot.slane %v3477_v37, %v6405_v48  ;;  %v2972_v15 = vrot.slane %v3476_v29, %v6415_v50  ;;  %v2903_v30 = vrot.slane %v3482_v7, %v6421_v4  ;;  %v2829_v38 = vrot.slane %v3481_v35, %v6437_v16 }
 0x380   :  { %v3485_v13 = vpop.permute.xlu0 %3484  ;;  %v6608_v57 = vpop.permute.xlu1 %3489  ;;  %v2825_v48 = vsel %vm2490_vm8, %v2824_v9, %v2820_v28 }
 0x381   :  { %v3486_v8 = vunpack.i.l.bf16 %v3485_v13  ;;  %v3487_v63 = vunpack.i.h.bf16 %v3485_v13  ;;  %v3492_v58 = vunpack.i.h.bf16 %v6608_v57  ;;  %v3042_v13 = vsel %vm2462_vm4, %v3041_v27, %v3037_v53 }
 0x382   :  { %v3491_v11 = vunpack.i.l.bf16 %v6608_v57  ;;  %v3047_v21 = vsel %vm2469_vm5, %v3046_v17, %v3042_v13  ;;  %v2973_v36 = vsel %vm2476_vm6, %v2972_v15, %v2968_v40  ;;  %v2830_v42 = vsel %vm2497_vm9, %v2829_v38, %v2825_v48 }
 0x383   :  { %v2977_v32 = vrot.slane %v3486_v8, %v6418_v44  ;;  %v3051_v39 = vrot.slane %v3487_v63, %v6415_v50  ;;  %v2908_v60 = vrot.slane %v3492_v58, %v6437_v16  ;;  %v2904_v57 = vsel %vm2490_vm8, %v2903_v30, %v2899_v59 }
 0x384   :  { %v3495_v23 = vpop.permute.xlu0 %3494  ;;  %v3500_v45 = vpop.permute.xlu1 %3499  ;;  %v2834_v0 = vrot.slane %v3491_v11, %v6452_v55  ;;  %vm3114_vm4 = vcmask 1044484   ;;  %vm3116_vm5 = vcmask 1045509  }
 0x385   :  { %v3497_v14 = vunpack.i.h.bf16 %v3495_v23  ;;  %v3496_v52 = vunpack.i.l.bf16 %v3495_v23  ;;  %v3502_v56 = vunpack.i.h.bf16 %v3500_v45  ;;  %v3501_v51 = vunpack.i.l.bf16 %v3500_v45 }
 0x386   :  { %v2978_v25 = vsel %vm2483_vm7, %v2977_v32, %v2973_v36  ;;  %v3052_v2 = vsel %vm2476_vm6, %v3051_v39, %v3047_v21  ;;  %v2909_v23 = vsel %vm2497_vm9, %v2908_v60, %v2904_v57  ;;  %v2835_v8 = vsel %vm2504_vm11, %v2834_v0, %v2830_v42 }
 0x387   :  { %v3056_v45 = vrot.slane %v3497_v14, %v6418_v44  ;;  %v2982_v37 = vrot.slane %v3496_v52, %v6421_v4  ;;  %v2839_v54 = vrot.slane %v3502_v56, %v6456_v41  ;;  %v2765_v29 = vrot.slane %v3501_v51, %v6468_v19 }
 0x388   :  { %v3505_v62 = vpop.permute.xlu0 %3504  ;;  %v3510_v61 = vpop.permute.xlu1 %3509  ;;  %vm3118_vm6 = vcmask 1046534  }
 0x389   :  { %v3506_v49 = vunpack.i.l.bf16 %v3505_v62  ;;  %v3507_v50 = vunpack.i.h.bf16 %v3505_v62  ;;  %v3512_v20 = vunpack.i.h.bf16 %v3510_v61  ;;  %v3511_v12 = vunpack.i.l.bf16 %v3510_v61 }
 0x38a   :  { %v3057_v63 = vsel %vm2483_vm7, %v3056_v45, %v3052_v2  ;;  %v2983_v26 = vsel %vm2490_vm8, %v2982_v37, %v2978_v25  ;;  %v2766_v17 = vsel %vm2518_vm13, %v2765_v29, %v6611_v33  ;;  %v2840_v40 = vsel %vm2511_vm12, %v2839_v54, %v2835_v8 }
 0x38b   :  { %v2913_v35 = vrot.slane %v3506_v49, %v6452_v55  ;;  %v2987_v62 = vrot.slane %v3507_v50, %v6437_v16  ;;  %v2770_v47 = vrot.slane %v3512_v20, %v6474_v5  ;;  %v3061_v58 = vrot.slane %v3511_v12, %v6421_v4 }
 0x38c   :  { %v3515_v18 = vpop.permute.xlu0 %3514  ;;  %v3520_v34 = vpop.permute.xlu1 %3519  ;;  %vm3120_vm7 = vcmask 1047559  }
 0x38d   :  { %v3517_v7 = vunpack.i.h.bf16 %v3515_v18  ;;  %v3516_v24 = vunpack.i.l.bf16 %v3515_v18  ;;  %v3522_v27 = vunpack.i.h.bf16 %v3520_v34  ;;  %v3521_v43 = vunpack.i.l.bf16 %v3520_v34 }
 0x38e   :  { %v2914_v30 = vsel %vm2504_vm11, %v2913_v35, %v2909_v23  ;;  %v2988_v4 = vsel %vm2497_vm9, %v2987_v62, %v2983_v26  ;;  %v2771_v32 = vsel %vm2525_vm14, %v2770_v47, %v2766_v17  ;;  %v3062_v48 = vsel %vm2490_vm8, %v3061_v58, %v3057_v63 }
 0x38f   :  { %v2918_v15 = vrot.slane %v3517_v7, %v6456_v41  ;;  %v2844_v38 = vrot.slane %v3516_v24, %v6468_v19  ;;  %v3066_v13 = vrot.slane %v3522_v27, %v6437_v16  ;;  %v2992_v59 = vrot.slane %v3521_v43, %v6452_v55 }
 0x390   :  { %v3525_v6 = vpop.permute.xlu0 %3524  ;;  %v3530_v3 = vpop.permute.xlu1 %3529 }
 0x391   :  { %v3526_v44 = vunpack.i.l.bf16 %v3525_v6  ;;  %v3527_v53 = vunpack.i.h.bf16 %v3525_v6  ;;  %v3532_v28 = vunpack.i.h.bf16 %v3530_v3  ;;  %v3531_v18 = vunpack.i.l.bf16 %v3530_v3 }
 0x392   :  { %v2919_v16 = vsel %vm2511_vm12, %v2918_v15, %v2914_v30  ;;  %v2845_v51 = vsel %vm2518_vm13, %v2844_v38, %v2840_v40  ;;  %v2993_v36 = vsel %vm2504_vm11, %v2992_v59, %v2988_v4  ;;  %v3067_v42 = vsel %vm2497_vm9, %v3066_v13, %v3062_v48 }
 0x393   :  { %v2775_v11 = vrot.slane %v3526_v44, %v6482_v1  ;;  %v2849_v39 = vrot.slane %v3527_v53, %v6474_v5  ;;  %v2997_v60 = vrot.slane %v3532_v28, %v6456_v41  ;;  %v2923_v25 = vrot.slane %v3531_v18, %v6468_v19 }
 0x394   :  { %v3535_v61 = vpop.permute.xlu0 %3534  ;;  %v3540_v9 = vpop.permute.xlu1 %3539 }
 0x395   :  { %v3537_v14 = vunpack.i.h.bf16 %v3535_v61  ;;  %v3536_v21 = vunpack.i.l.bf16 %v3535_v61  ;;  %v3542_v52 = vunpack.i.h.bf16 %v3540_v9  ;;  %v3541_v56 = vunpack.i.l.bf16 %v3540_v9 }
 0x396   :  { %v2776_v49 = vsel %vm2532_vm15, %v2775_v11, %v2771_v32  ;;  %v2850_v3 = vsel %vm2525_vm14, %v2849_v39, %v2845_v51  ;;  %v2998_v2 = vsel %vm2511_vm12, %v2997_v60, %v2993_v36  ;;  %v2924_v43 = vsel %vm2518_vm13, %v2923_v25, %v2919_v16 }
 0x397   :  { %v2780_v23 = vrot.slane %v3537_v14, %v6488_v22  ;;  %v3071_v12 = vrot.slane %v3536_v21, %v6452_v55  ;;  %v2928_v37 = vrot.slane %v3542_v52, %v6474_v5  ;;  %v2854_v54 = vrot.slane %v3541_v56, %v6482_v1 }
 0x398   :  { %v3545_v33 = vpop.permute.xlu0 %3544  ;;  %v3550_v34 = vpop.permute.xlu1 %3549 }
 0x399   :  { %v3551_v57 = vunpack.i.l.bf16 %v3550_v34  ;;  %v3547_v0 = vunpack.i.h.bf16 %v3545_v33  ;;  %v3546_v50 = vunpack.i.l.bf16 %v3545_v33  ;;  %v3552_v45 = vunpack.i.h.bf16 %v3550_v34 }
 0x39a   :  { %v2781_v61 = vsel %vm2539_vm0, %v2780_v23, %v2776_v49  ;;  %v3072_v53 = vsel %vm2504_vm11, %v3071_v12, %v3067_v42  ;;  %v2855_v28 = vsel %vm2532_vm15, %v2854_v54, %v2850_v3  ;;  %v2929_v26 = vsel %vm2525_vm14, %v2928_v37, %v2924_v43 }
 0x39b   :  { %v2785_v7 = vrot.slane %v3551_v57, %v6498_v31  ;;  %v3076_v8 = vrot.slane %v3547_v0, %v6456_v41  ;;  %v3002_v62 = vrot.slane %v3546_v50, %v6468_v19  ;;  %v2859_v9 = vrot.slane %v3552_v45, %v6488_v22 }
 0x39c   :  { %v3555_v20 = vpop.permute.xlu0 %3554  ;;  %v3560_v6 = vpop.permute.xlu1 %3559 }
 0x39d   :  { %v3562_v29 = vunpack.i.h.bf16 %v3560_v6  ;;  %v3557_v35 = vunpack.i.h.bf16 %v3555_v20  ;;  %v3556_v24 = vunpack.i.l.bf16 %v3555_v20  ;;  %v3561_v27 = vunpack.i.l.bf16 %v3560_v6 }
 0x39e   :  { %v2786_v41 = vsel %vm2546_vm1, %v2785_v7, %v2781_v61  ;;  %v3003_v38 = vsel %vm2518_vm13, %v3002_v62, %v2998_v2  ;;  %v3077_v13 = vsel %vm2511_vm12, %v3076_v8, %v3072_v53  ;;  %v2860_v18 = vsel %vm2539_vm0, %v2859_v9, %v2855_v28 }
 0x39f   :  { %v2790_v47 = vrot.slane %v3562_v29, %v6501_v46  ;;  %v3007_v40 = vrot.slane %v3557_v35, %v6474_v5  ;;  %v2933_v15 = vrot.slane %v3556_v24, %v6482_v1  ;;  %v3081_v30 = vrot.slane %v3561_v27, %v6468_v19 }
 0x3a0   :  { %v3565_v44 = vpop.permute.xlu0 %3564  ;;  %v3570_v55 = vpop.permute.xlu1 %3569 }
 0x3a1   :  { %v3567_v63 = vunpack.i.h.bf16 %v3565_v44  ;;  %v3566_v58 = vunpack.i.l.bf16 %v3565_v44  ;;  %v3571_v17 = vunpack.i.l.bf16 %v3570_v55  ;;  %v2791_v59 = vsel %vm2553_vm2, %v2790_v47, %v2786_v41 }
 0x3a2   :  { %v3572_v4 = vunpack.i.h.bf16 %v3570_v55  ;;  %v2934_v16 = vsel %vm2532_vm15, %v2933_v15, %v2929_v26  ;;  %v3008_v21 = vsel %vm2525_vm14, %v3007_v40, %v3003_v38  ;;  %v3082_v52 = vsel %vm2518_vm13, %v3081_v30, %v3077_v13 }
 0x3a3   :  { %v2938_v33 = vrot.slane %v3567_v63, %v6488_v22  ;;  %v2864_v34 = vrot.slane %v3566_v58, %v6498_v31  ;;  %v3012_v19 = vrot.slane %v3571_v17, %v6482_v1  ;;  %v3113_v56 = vsel %vm3112_vm3, %v2791_v59, %v6573_v10 }
 0x3a4   :  { %v3575_v32 = vpop.permute.xlu0 %3574  ;;  %v3580_v11 = vpop.permute.xlu1 %3579  ;;  %v3086_v51 = vrot.slane %v3572_v4, %v6474_v5 }
 0x3a5   :  { %v3577_v48 = vunpack.i.h.bf16 %v3575_v32  ;;  %v3576_v39 = vunpack.i.l.bf16 %v3575_v32  ;;  %v3582_v60 = vunpack.i.h.bf16 %v3580_v11  ;;  %v3581_v14 = vunpack.i.l.bf16 %v3580_v11 }
 0x3a6   :  { %v2865_v0 = vsel %vm2546_vm1, %v2864_v34, %v2860_v18  ;;  %v2939_v3 = vsel %vm2539_vm0, %v2938_v33, %v2934_v16  ;;  %v3013_v2 = vsel %vm2532_vm15, %v3012_v19, %v3008_v21  ;;  %v3087_v54 = vsel %vm2525_vm14, %v3086_v51, %v3082_v52 }
 0x3a7   :  { %v2943_v36 = vrot.slane %v3577_v48, %v6498_v31  ;;  %v2869_v42 = vrot.slane %v3576_v39, %v6501_v46  ;;  %v3017_v57 = vrot.slane %v3581_v14, %v6488_v22  ;;  %v3091_v10 = vrot.slane %v3582_v60, %v6482_v1 }
 0x3a8   :  { %v3585_v49 = vpop.permute.xlu0 %3584  ;;  %v3590_v25 = vpop.permute.xlu1 %3589 }
 0x3a9   :  { %v3587_v50 = vunpack.i.h.bf16 %v3585_v49  ;;  %v3586_v20 = vunpack.i.l.bf16 %v3585_v49  ;;  %v3592_v6 = vunpack.i.h.bf16 %v3590_v25  ;;  %v3591_v5 = vunpack.i.l.bf16 %v3590_v25 }
 0x3aa   :  { %v2870_v23 = vsel %vm2553_vm2, %v2869_v42, %v2865_v0  ;;  %v2944_v29 = vsel %vm2546_vm1, %v2943_v36, %v2939_v3  ;;  %v3018_v7 = vsel %vm2539_vm0, %v3017_v57, %v3013_v2  ;;  %v3092_v62 = vsel %vm2532_vm15, %v3091_v10, %v3087_v54 }
 0x3ab   :  { %v3022_v45 = vrot.slane %v3587_v50, %v6498_v31  ;;  %v2948_v12 = vrot.slane %v3586_v20, %v6501_v46  ;;  %v3027_v37 = vrot.slane %v3592_v6, %v6501_v46  ;;  %v3096_v35 = vrot.slane %v3591_v5, %v6488_v22 }
 0x3ac   :  { %v3595_v24 = vpop.permute.xlu0 %3594  ;;  %v3115_v47 = vsel %vm3114_vm4, %v2870_v23, %v3113_v56 }
 0x3ad   :  { %v2949_v1 = vsel %vm2553_vm2, %v2948_v12, %v2944_v29  ;;  %v3023_v27 = vsel %vm2546_vm1, %v3022_v45, %v3018_v7  ;;  %v3597_v43 = vunpack.i.h.bf16 %v3595_v24  ;;  %v3596_v8 = vunpack.i.l.bf16 %v3595_v24 }
 0x3ae   :  { %v3028_v61 = vsel %vm2553_vm2, %v3027_v37, %v3023_v27  ;;  %v3117_v22 = vsel %vm3116_vm5, %v2949_v1, %v3115_v47  ;;  %v3097_v9 = vsel %vm2539_vm0, %v3096_v35, %v3092_v62 }
 0x3af   :  { %v3106_v44 = vrot.slane %v3597_v43, %v6501_v46  ;;  %v3101_v55 = vrot.slane %v3596_v8, %v6498_v31  ;;  %v3119_v53 = vsel %vm3118_vm6, %v3028_v61, %v3117_v22  ;;  %v3211_v46 = vld [vmem:[%s6763_s4] ss:$0 sm:$0xff] }
 0x3b1   :  { %v3102_v63 = vsel %vm2546_vm1, %v3101_v55, %v3097_v9 }
 0x3b2   :  { %v3107_v58 = vsel %vm2553_vm2, %v3106_v44, %v3102_v63 }
 0x3b3   :  { %v3121_v28 = vsel %vm3120_vm7, %v3107_v58, %v3119_v53 }
 0x3b4   :  { %3262 = vmatmul.mubr.f32.vlgmr.msra.gmra.mxu0 %v3121_v28 }
 0x474   :  { %v3189_v31 = vpop.f32.mrf.mxu0 }
 0x475   :  { %v3190_v26 = vadd.f32 %v3211_v46, %v3189_v31 }
 0x476   :  { %v3263_v17 = vpop.f32.mrf.mxu0 }
 0x477   :  { %3193 = vst [vmem:[#allocation8] sm:$0xff] %v3190_v26 }
 0x478   :  { %3670 = shalt.err (!%p3667_p5)
}
 0x479   :  { %3203 = dma.vmem_to_hbm [thread:$0]  %s3201_s13, 128, %s6764_s5, [#allocation4]  }
 0x47a   :  { %3683 = dma.done.wait [#allocation4], 128  }
 0x47b   :  { %3684 = vsyncadd [#allocation4], 4294967168 }
 0x47c   :  { %3207 = vsyncpa [#allocation3], 1 }
 0x47d   :  { %3208 = vsyncpa [#allocation6], 1 }
 0x47e   :  { %3209 = vsyncpa [#allocation4], 1 }

</bundles_post_ra>
